<compile_context>
chip_gen: v5e
topology: v5e:2x2
jax: 0.10.0
libtpu: 0.0.40
codegen_flags: <defaults>
</compile_context>

<pallas_src>
import functools

import jax
import jax.numpy as jnp
from jax.experimental import pallas as pl
from jax.experimental.pallas import tpu as pltpu

# Hyperparameters from the PyTorch module
N_EMBD = 32
BLOCK_SIZE = 8
N_HEAD = 4
HEAD_SIZE = N_EMBD // N_HEAD   # Block uses n_embd // n_head = 8 (the global head_size=16 is unused there)
N_LAYER = 3
VOCAB_SIZE = 65                # synthetic char-vocab size (len(chars) in the original script)
VOCAB_PAD = 128                # lane-dense padded lm_head width


def transformer_kernel(x_ref, bias_ref, wqkv_ref, wp_ref, bp_ref,
                       w1_ref, b1_ref, w2_ref, b2_ref,
                       wlm_ref, blm_ref, out_ref, *, T):
    """One (ROW_BLK, C) block of whole sequences through all N_LAYER blocks + lm_head."""
    f32 = jnp.float32
    bf16 = jnp.bfloat16
    C = N_EMBD
    D = HEAD_SIZE

    rows = x_ref.shape[0]          # static block row count (multiple of T)
    nb = rows // T                 # whole sequences in this row block

    x = x_ref[...]                 # (rows, C) float32
    causal_bias = bias_ref[...]    # (T, T) float32: 0 on/below diagonal, -1e30 above

    # TODO(synk): if N_LAYER ever grows, move this static unroll onto an 'arbitrary' grid axis with
    # layer-indexed BlockSpecs so layer weights pipeline instead of all sitting resident in VMEM.
    for l in range(N_LAYER):
        # ---- MultiHeadAttention: fused QKV projection (scale already folded into the Q columns) ----
        qkv = jnp.dot(x.astype(bf16), wqkv_ref[l],
                      preferred_element_type=f32)            # (rows, 3C), f32 accumulate
        qkv3 = qkv.reshape(nb, T, 3 * C)

        # Output projection fused into the head loop: sa = b_p + sum_h head_h @ Wp[h*D:(h+1)*D, :]
        # (identical math to torch.cat(heads, -1) @ Wp + b_p, without the lane concat).
        sa = jnp.zeros((rows, C), f32) + bp_ref[l]           # (rows, C)
        # TODO(synk): the 12 8-lane q/k/v extracts per layer could be collapsed into one
        # head-batched dot_general after a (nb,T,H,D)->(nb*H,T,D) relayout; at T=D=8 the shuffle
        # cost is not a clear win over the known-good 3-D einsum path, so kept per-head.
        for h in range(N_HEAD):
            q = qkv3[:, :, 0 * C + h * D: 0 * C + (h + 1) * D].astype(bf16)   # (nb, T, D)
            k = qkv3[:, :, 1 * C + h * D: 1 * C + (h + 1) * D].astype(bf16)
            v = qkv3[:, :, 2 * C + h * D: 2 * C + (h + 1) * D].astype(bf16)
            wei = jnp.einsum('bqd,bkd->bqk', q, k,
                             preferred_element_type=f32) + causal_bias[None, :, :]
            m = jnp.max(wei, axis=-1, keepdims=True)
            e = jnp.exp(wei - m)
            p = e * pl.reciprocal(jnp.sum(e, axis=-1, keepdims=True), approx=False)
            head = jnp.einsum('bqk,bkd->bqd', p.astype(bf16), v,
                              preferred_element_type=f32)    # (nb, T, D)
            sa = sa + jnp.dot(head.reshape(rows, D).astype(bf16), wp_ref[l, h],
                              preferred_element_type=f32)
        x = x + sa                                           # skip connection

        # ---- FeedForward ----
        h1 = jnp.dot(x.astype(bf16), w1_ref[l], preferred_element_type=f32) + b1_ref[l]
        h1 = jnp.maximum(h1, 0.0)                            # ReLU (f32 on the VPU)
        ff = jnp.dot(h1.astype(bf16), w2_ref[l], preferred_element_type=f32) + b2_ref[l]
        x = x + ff                                           # skip connection

    # ---- lm_head: lane-dense (rows, 128) store; the wrapper slices back to the 65-wide vocab ----
    out_ref[...] = jnp.dot(x.astype(bf16), wlm_ref[...],
                           preferred_element_type=f32) + blm_ref[...]


def init_params(key):
    keys = jax.random.split(key, 13)
    s = 0.02
    return {
        'tok_emb': jax.random.normal(keys[0], (VOCAB_SIZE, N_EMBD), jnp.float32) * s,
        'pos_emb': jax.random.normal(keys[1], (BLOCK_SIZE, N_EMBD), jnp.float32) * s,
        'wq':  jax.random.normal(keys[2], (N_LAYER, N_EMBD, N_EMBD), jnp.float32) * s,
        'wk':  jax.random.normal(keys[3], (N_LAYER, N_EMBD, N_EMBD), jnp.float32) * s,
        'wv':  jax.random.normal(keys[4], (N_LAYER, N_EMBD, N_EMBD), jnp.float32) * s,
        'wp':  jax.random.normal(keys[5], (N_LAYER, N_EMBD, N_EMBD), jnp.float32) * s,
        'bp':  jax.random.normal(keys[6], (N_LAYER, 1, N_EMBD), jnp.float32) * s,
        'w1':  jax.random.normal(keys[7], (N_LAYER, N_EMBD, 4 * N_EMBD), jnp.float32) * s,
        'b1':  jax.random.normal(keys[8], (N_LAYER, 1, 4 * N_EMBD), jnp.float32) * s,
        'w2':  jax.random.normal(keys[9], (N_LAYER, 4 * N_EMBD, N_EMBD), jnp.float32) * s,
        'b2':  jax.random.normal(keys[10], (N_LAYER, 1, N_EMBD), jnp.float32) * s,
        'wlm': jax.random.normal(keys[11], (N_EMBD, VOCAB_SIZE), jnp.float32) * s,
        'blm': jax.random.normal(keys[12], (1, VOCAB_SIZE), jnp.float32) * s,
    }


@jax.jit
def run_model(idx, params):
    B, T = idx.shape
    C = N_EMBD
    bf16 = jnp.bfloat16

    # Embedding gathers + positional add are plain-JAX glue outside the kernel.
    tok_emb = params['tok_emb'][idx]                  # (B, T, C)
    pos_emb = params['pos_emb'][:T]                   # (T, C)
    x2d = (tok_emb + pos_emb[None, :, :]).astype(jnp.float32).reshape(B * T, C)

    # Row blocking: whole T-token sequences per block; >=2 blocks once B*T >= 256 so v7x's second
    # TensorCore participates via the ('parallel',) grid axis.  Per-block working set (~0.4 MB incl.
    # double buffering) is far below every generation's VMEM (64 MiB physical on v7x), so no
    # vmem_limit override is needed.
    R = B * T
    ROW_BLK = R if R <= 128 else 128
    n_blocks = pl.cdiv(R, ROW_BLK)
    R_pad = n_blocks * ROW_BLK
    if R_pad != R:
        x2d = jnp.pad(x2d, ((0, R_pad - R), (0, 0)))  # zero whole sequences; sliced off below

    # Fuse / fold / cast the weights once outside the kernel (done per-compile by XLA).
    scale = C ** (-0.5)        # PyTorch Head scales by C**-0.5 == n_embd**-0.5 (intentional, matches the spec)
    wqkv = jnp.concatenate([params['wq'] * scale, params['wk'], params['wv']],
                           axis=-1).astype(bf16)      # (L, C, 3C), columns [Q*scale | K | V]
    wp4 = params['wp'].reshape(N_LAYER, N_HEAD, HEAD_SIZE, C).astype(bf16)   # per-head proj rows
    w1 = params['w1'].astype(bf16)
    w2 = params['w2'].astype(bf16)
    wlm = jnp.zeros((C, VOCAB_PAD), jnp.float32).at[:, :VOCAB_SIZE].set(params['wlm']).astype(bf16)
    blm = jnp.zeros((1, VOCAB_PAD), jnp.float32).at[:, :VOCAB_SIZE].set(params['blm'])
    causal_bias = jnp.where(jnp.tril(jnp.ones((T, T), dtype=bool)), 0.0, -1e30).astype(jnp.float32)

    args = (x2d, causal_bias, wqkv, wp4, params['bp'], w1, params['b1'],
            w2, params['b2'], wlm, blm)

    def full_spec(a):           # whole array, constant block index -> no re-DMA across grid steps
        nd = a.ndim
        return pl.BlockSpec(a.shape, lambda i, _nd=nd: (0,) * _nd)

    in_specs = [pl.BlockSpec((ROW_BLK, C), lambda i: (i, 0))] + [full_spec(a) for a in args[1:]]
    out_specs = pl.BlockSpec((ROW_BLK, VOCAB_PAD), lambda i: (i, 0))

    flops = int(R_pad * (N_LAYER * (2 * C * 3 * C + 4 * T * C + 2 * C * C + 16 * C * C)
                         + 2 * C * VOCAB_PAD))
    transcendentals = int(R_pad * N_LAYER * N_HEAD * T)
    bytes_accessed = int(sum(a.size * a.dtype.itemsize for a in args) + R_pad * VOCAB_PAD * 4)

    out2d = pl.pallas_call(
        functools.partial(transformer_kernel, T=T),
        grid=(n_blocks,),
        out_shape=jax.ShapeDtypeStruct((R_pad, VOCAB_PAD), jnp.float32),
        in_specs=in_specs,
        out_specs=out_specs,
        compiler_params=pltpu.CompilerParams(dimension_semantics=("parallel",)),
        cost_estimate=pl.CostEstimate(flops=flops, transcendentals=transcendentals,
                                      bytes_accessed=bytes_accessed),
    )(*args)
    return out2d[:R, :VOCAB_SIZE].reshape(B, T, VOCAB_SIZE)


def reference(idx, params, matmul_dtype=jnp.float32):
    """Pure-JAX forward mirroring the PyTorch module (targets=None path).

    matmul_dtype=float32  -> PyTorch-faithful f32 math (scale folded into W_q; differs from the
                             post-matmul scale only by f32 rounding).
    matmul_dtype=bfloat16 -> mirrors the kernel's bf16-operand / f32-accumulate matmuls.
    """
    B, T = idx.shape
    C, D = N_EMBD, HEAD_SIZE
    f32 = jnp.float32
    cast = lambda a: a.astype(matmul_dtype)
    mm = lambda a, b: jnp.dot(cast(a), cast(b), preferred_element_type=f32)

    x = (params['tok_emb'][idx] + params['pos_emb'][:T][None, :, :]).astype(f32).reshape(B * T, C)
    wqkv = jnp.concatenate([params['wq'] * (C ** -0.5), params['wk'], params['wv']], axis=-1)
    bias = jnp.where(jnp.tril(jnp.ones((T, T), dtype=bool)), 0.0, -1e30).astype(f32)

    for l in range(N_LAYER):
        qkv = mm(x, wqkv[l]).reshape(B, T, 3 * C)
        heads = []
        for h in range(N_HEAD):
            q = qkv[:, :, 0 * C + h * D: 0 * C + (h + 1) * D]
            k = qkv[:, :, 1 * C + h * D: 1 * C + (h + 1) * D]
            v = qkv[:, :, 2 * C + h * D: 2 * C + (h + 1) * D]
            wei = jnp.einsum('bqd,bkd->bqk', cast(q), cast(k), preferred_element_type=f32)
            wei = jax.nn.softmax(wei + bias[None], axis=-1)
            heads.append(jnp.einsum('bqk,bkd->bqd', cast(wei), cast(v), preferred_element_type=f32))
        sa = jnp.concatenate(heads, axis=-1).reshape(B * T, C)
        x = x + mm(sa, params['wp'][l]) + params['bp'][l]
        h1 = jnp.maximum(mm(x, params['w1'][l]) + params['b1'][l], 0.0)
        x = x + mm(h1, params['w2'][l]) + params['b2'][l]

    logits = mm(x, params['wlm']) + params['blm']
    return logits.reshape(B, T, VOCAB_SIZE)


if __name__ == "__main__":
    key = jax.random.PRNGKey(0)
    pkey, ikey, ikey2 = jax.random.split(key, 3)
    params = init_params(pkey)

    # --- spec-sized check: (B, T) = (2, 8) token indices, single row block ---
    B, T = 2, BLOCK_SIZE
    idx = jax.random.randint(ikey, (B, T), 0, VOCAB_SIZE, dtype=jnp.int32)
    logits = jax.block_until_ready(run_model(idx, params))
    assert logits.shape == (B, T, VOCAB_SIZE), logits.shape

    err_mirror = float(jnp.max(jnp.abs(logits - reference(idx, params, jnp.bfloat16))))
    err_exact = float(jnp.max(jnp.abs(logits - reference(idx, params, jnp.float32))))
    assert err_mirror < 5e-4, f"kernel vs bf16-mirror reference: max abs err {err_mirror}"
    assert err_exact < 3e-3, f"kernel vs f32 reference: max abs err {err_exact}"

    # --- batched check: B*T = 256 rows -> two 128-row blocks over the ('parallel',) grid axis ---
    # (exercises the multi-block / megacore path the perf review asked for)
    B2 = 32
    idx2 = jax.random.randint(ikey2, (B2, T), 0, VOCAB_SIZE, dtype=jnp.int32)
    logits2 = jax.block_until_ready(run_model(idx2, params))
    assert logits2.shape == (B2, T, VOCAB_SIZE), logits2.shape

    err2_mirror = float(jnp.max(jnp.abs(logits2 - reference(idx2, params, jnp.bfloat16))))
    err2_exact = float(jnp.max(jnp.abs(logits2 - reference(idx2, params, jnp.float32))))
    assert err2_mirror < 5e-4, f"batched kernel vs bf16-mirror reference: max abs err {err2_mirror}"
    assert err2_exact < 3e-3, f"batched kernel vs f32 reference: max abs err {err2_exact}"

    print("KERNEL_OK")
</pallas_src>

<mosaic_0001>
module attributes {stable_mosaic.version = 11 : i64} {
  func.func @transformer_kernel(%arg0: i32, %arg1: memref<16x32xf32, #tpu.memory_space<vmem>>, %arg2: memref<8x8xf32, #tpu.memory_space<vmem>>, %arg3: memref<3x32x96xbf16, #tpu.memory_space<vmem>>, %arg4: memref<3x4x8x32xbf16, #tpu.memory_space<vmem>>, %arg5: memref<3x1x32xf32, #tpu.memory_space<vmem>>, %arg6: memref<3x32x128xbf16, #tpu.memory_space<vmem>>, %arg7: memref<3x1x128xf32, #tpu.memory_space<vmem>>, %arg8: memref<3x128x32xbf16, #tpu.memory_space<vmem>>, %arg9: memref<3x1x32xf32, #tpu.memory_space<vmem>>, %arg10: memref<32x128xbf16, #tpu.memory_space<vmem>>, %arg11: memref<1x128xf32, #tpu.memory_space<vmem>>, %arg12: memref<16x128xf32, #tpu.memory_space<vmem>>) attributes {dimension_semantics = [#tpu.dimension_semantics<parallel>], iteration_bounds = array<i64: 1>, scalar_prefetch = 0 : i64, scratch_operands = 0 : i64, tpu.core_type = #tpu.core_type<tc>, window_params = [{transform_indices = @transform_0, window_bounds = array<i64: 16, 32>}, {pipeline_mode = #tpu.pipeline_mode<synchronous>, transform_indices = @transform_1, window_bounds = array<i64: 8, 8>}, {pipeline_mode = #tpu.pipeline_mode<synchronous>, transform_indices = @transform_2, window_bounds = array<i64: 3, 32, 96>}, {pipeline_mode = #tpu.pipeline_mode<synchronous>, transform_indices = @transform_3, window_bounds = array<i64: 3, 4, 8, 32>}, {pipeline_mode = #tpu.pipeline_mode<synchronous>, transform_indices = @transform_4, window_bounds = array<i64: 3, 1, 32>}, {pipeline_mode = #tpu.pipeline_mode<synchronous>, transform_indices = @transform_5, window_bounds = array<i64: 3, 32, 128>}, {pipeline_mode = #tpu.pipeline_mode<synchronous>, transform_indices = @transform_6, window_bounds = array<i64: 3, 1, 128>}, {pipeline_mode = #tpu.pipeline_mode<synchronous>, transform_indices = @transform_7, window_bounds = array<i64: 3, 128, 32>}, {pipeline_mode = #tpu.pipeline_mode<synchronous>, transform_indices = @transform_8, window_bounds = array<i64: 3, 1, 32>}, {pipeline_mode = #tpu.pipeline_mode<synchronous>, transform_indices = @transform_9, window_bounds = array<i64: 32, 128>}, {pipeline_mode = #tpu.pipeline_mode<synchronous>, transform_indices = @transform_10, window_bounds = array<i64: 1, 128>}, {transform_indices = @transform_11, window_bounds = array<i64: 16, 128>}]} {
    %c0 = arith.constant 0 : index
    %c0_0 = arith.constant 0 : index
    %0 = vector.load %arg1[%c0, %c0_0] : memref<16x32xf32, #tpu.memory_space<vmem>>, vector<16x32xf32>
    %c0_1 = arith.constant 0 : index
    %c0_2 = arith.constant 0 : index
    %1 = vector.load %arg2[%c0_1, %c0_2] : memref<8x8xf32, #tpu.memory_space<vmem>>, vector<8x8xf32>
    %2 = arith.truncf %0 : vector<16x32xf32> to vector<16x32xbf16>
    %c0_3 = arith.constant 0 : index
    %c0_4 = arith.constant 0 : index
    %c0_5 = arith.constant 0 : index
    %3 = vector.load %arg3[%c0_3, %c0_4, %c0_5] : memref<3x32x96xbf16, #tpu.memory_space<vmem>>, vector<1x32x96xbf16>
    %4 = vector.shape_cast %3 : vector<1x32x96xbf16> to vector<32x96xbf16>
    %cst = arith.constant dense<0.000000e+00> : vector<16x96xf32>
    %5 = tpu.matmul %2, %4, %cst {dimension_numbers = #tpu.dot_dimension_numbers<[1], [0], [0], [1], [0, 0, 1, 1], [], []>} : vector<16x32xbf16>, vector<32x96xbf16>, vector<16x96xf32> -> vector<16x96xf32>
    %6 = vector.shape_cast %5 : vector<16x96xf32> to vector<2x8x96xf32>
    %cst_6 = arith.constant 0.000000e+00 : f32
    %7 = vector.broadcast %cst_6 : f32 to vector<16x32xf32>
    %c0_7 = arith.constant 0 : index
    %c0_8 = arith.constant 0 : index
    %c0_9 = arith.constant 0 : index
    %8 = vector.load %arg5[%c0_7, %c0_8, %c0_9] : memref<3x1x32xf32, #tpu.memory_space<vmem>>, vector<1x1x32xf32>
    %9 = vector.shape_cast %8 : vector<1x1x32xf32> to vector<1x32xf32>
    %10 = vector.broadcast %9 : vector<1x32xf32> to vector<16x32xf32>
    %11 = arith.addf %7, %10 : vector<16x32xf32>
    %12 = vector.extract_strided_slice %6 {offsets = [0, 0, 0], sizes = [2, 8, 8], strides = [1, 1, 1]} : vector<2x8x96xf32> to vector<2x8x8xf32>
    %13 = arith.truncf %12 : vector<2x8x8xf32> to vector<2x8x8xbf16>
    %14 = vector.extract_strided_slice %6 {offsets = [0, 0, 32], sizes = [2, 8, 8], strides = [1, 1, 1]} : vector<2x8x96xf32> to vector<2x8x8xf32>
    %15 = arith.truncf %14 : vector<2x8x8xf32> to vector<2x8x8xbf16>
    %16 = vector.extract_strided_slice %6 {offsets = [0, 0, 64], sizes = [2, 8, 8], strides = [1, 1, 1]} : vector<2x8x96xf32> to vector<2x8x8xf32>
    %17 = arith.truncf %16 : vector<2x8x8xf32> to vector<2x8x8xbf16>
    "tpu.trace_start"() <{level = 10 : i32, message = "bqd,bkd->bqk"}> : () -> ()
    %cst_10 = arith.constant dense<0.000000e+00> : vector<2x8x8xf32>
    %18 = tpu.matmul %13, %15, %cst_10 {dimension_numbers = #tpu.dot_dimension_numbers<[2], [2], [1], [1], [0, 0, 0, 1, 1, 1], [0], [0]>} : vector<2x8x8xbf16>, vector<2x8x8xbf16>, vector<2x8x8xf32> -> vector<2x8x8xf32>
    "tpu.trace_stop"() : () -> ()
    %19 = vector.shape_cast %1 : vector<8x8xf32> to vector<1x8x8xf32>
    %20 = vector.broadcast %19 : vector<1x8x8xf32> to vector<2x8x8xf32>
    %21 = arith.addf %18, %20 : vector<2x8x8xf32>
    %cst_11 = arith.constant dense<0xFF800000> : vector<2x8xf32>
    %22 = vector.multi_reduction <maximumf>, %21, %cst_11 [2] : vector<2x8x8xf32> to vector<2x8xf32>
    %23 = vector.shape_cast %22 : vector<2x8xf32> to vector<2x8x1xf32>
    %24 = vector.broadcast %23 : vector<2x8x1xf32> to vector<2x8x8xf32>
    %25 = arith.subf %21, %24 : vector<2x8x8xf32>
    %26 = math.exp %25 : vector<2x8x8xf32>
    %cst_12 = arith.constant dense<0.000000e+00> : vector<2x8xf32>
    %27 = vector.multi_reduction <add>, %26, %cst_12 [2] : vector<2x8x8xf32> to vector<2x8xf32>
    %28 = vector.shape_cast %27 : vector<2x8xf32> to vector<2x8x1xf32>
    %29 = tpu.reciprocal %28 : vector<2x8x1xf32> -> vector<2x8x1xf32>
    %30 = vector.broadcast %29 : vector<2x8x1xf32> to vector<2x8x8xf32>
    %31 = arith.mulf %26, %30 : vector<2x8x8xf32>
    %32 = arith.truncf %31 : vector<2x8x8xf32> to vector<2x8x8xbf16>
    "tpu.trace_start"() <{level = 10 : i32, message = "bqk,bkd->bqd"}> : () -> ()
    %cst_13 = arith.constant dense<0.000000e+00> : vector<2x8x8xf32>
    %33 = tpu.matmul %32, %17, %cst_13 {dimension_numbers = #tpu.dot_dimension_numbers<[2], [1], [1], [2], [0, 0, 0, 1, 1, 2], [0], [0]>} : vector<2x8x8xbf16>, vector<2x8x8xbf16>, vector<2x8x8xf32> -> vector<2x8x8xf32>
    "tpu.trace_stop"() : () -> ()
    %34 = vector.shape_cast %33 : vector<2x8x8xf32> to vector<16x8xf32>
    %35 = arith.truncf %34 : vector<16x8xf32> to vector<16x8xbf16>
    %c0_14 = arith.constant 0 : index
    %c0_15 = arith.constant 0 : index
    %c0_16 = arith.constant 0 : index
    %c0_17 = arith.constant 0 : index
    %36 = vector.load %arg4[%c0_14, %c0_15, %c0_16, %c0_17] : memref<3x4x8x32xbf16, #tpu.memory_space<vmem>>, vector<1x1x8x32xbf16>
    %37 = vector.shape_cast %36 : vector<1x1x8x32xbf16> to vector<8x32xbf16>
    %cst_18 = arith.constant dense<0.000000e+00> : vector<16x32xf32>
    %38 = tpu.matmul %35, %37, %cst_18 {dimension_numbers = #tpu.dot_dimension_numbers<[1], [0], [0], [1], [0, 0, 1, 1], [], []>} : vector<16x8xbf16>, vector<8x32xbf16>, vector<16x32xf32> -> vector<16x32xf32>
    %39 = arith.addf %11, %38 : vector<16x32xf32>
    %40 = vector.extract_strided_slice %6 {offsets = [0, 0, 8], sizes = [2, 8, 8], strides = [1, 1, 1]} : vector<2x8x96xf32> to vector<2x8x8xf32>
    %41 = arith.truncf %40 : vector<2x8x8xf32> to vector<2x8x8xbf16>
    %42 = vector.extract_strided_slice %6 {offsets = [0, 0, 40], sizes = [2, 8, 8], strides = [1, 1, 1]} : vector<2x8x96xf32> to vector<2x8x8xf32>
    %43 = arith.truncf %42 : vector<2x8x8xf32> to vector<2x8x8xbf16>
    %44 = vector.extract_strided_slice %6 {offsets = [0, 0, 72], sizes = [2, 8, 8], strides = [1, 1, 1]} : vector<2x8x96xf32> to vector<2x8x8xf32>
    %45 = arith.truncf %44 : vector<2x8x8xf32> to vector<2x8x8xbf16>
    "tpu.trace_start"() <{level = 10 : i32, message = "bqd,bkd->bqk"}> : () -> ()
    %cst_19 = arith.constant dense<0.000000e+00> : vector<2x8x8xf32>
    %46 = tpu.matmul %41, %43, %cst_19 {dimension_numbers = #tpu.dot_dimension_numbers<[2], [2], [1], [1], [0, 0, 0, 1, 1, 1], [0], [0]>} : vector<2x8x8xbf16>, vector<2x8x8xbf16>, vector<2x8x8xf32> -> vector<2x8x8xf32>
    "tpu.trace_stop"() : () -> ()
    %47 = vector.shape_cast %1 : vector<8x8xf32> to vector<1x8x8xf32>
    %48 = vector.broadcast %47 : vector<1x8x8xf32> to vector<2x8x8xf32>
    %49 = arith.addf %46, %48 : vector<2x8x8xf32>
    %cst_20 = arith.constant dense<0xFF800000> : vector<2x8xf32>
    %50 = vector.multi_reduction <maximumf>, %49, %cst_20 [2] : vector<2x8x8xf32> to vector<2x8xf32>
    %51 = vector.shape_cast %50 : vector<2x8xf32> to vector<2x8x1xf32>
    %52 = vector.broadcast %51 : vector<2x8x1xf32> to vector<2x8x8xf32>
    %53 = arith.subf %49, %52 : vector<2x8x8xf32>
    %54 = math.exp %53 : vector<2x8x8xf32>
    %cst_21 = arith.constant dense<0.000000e+00> : vector<2x8xf32>
    %55 = vector.multi_reduction <add>, %54, %cst_21 [2] : vector<2x8x8xf32> to vector<2x8xf32>
    %56 = vector.shape_cast %55 : vector<2x8xf32> to vector<2x8x1xf32>
    %57 = tpu.reciprocal %56 : vector<2x8x1xf32> -> vector<2x8x1xf32>
    %58 = vector.broadcast %57 : vector<2x8x1xf32> to vector<2x8x8xf32>
    %59 = arith.mulf %54, %58 : vector<2x8x8xf32>
    %60 = arith.truncf %59 : vector<2x8x8xf32> to vector<2x8x8xbf16>
    "tpu.trace_start"() <{level = 10 : i32, message = "bqk,bkd->bqd"}> : () -> ()
    %cst_22 = arith.constant dense<0.000000e+00> : vector<2x8x8xf32>
    %61 = tpu.matmul %60, %45, %cst_22 {dimension_numbers = #tpu.dot_dimension_numbers<[2], [1], [1], [2], [0, 0, 0, 1, 1, 2], [0], [0]>} : vector<2x8x8xbf16>, vector<2x8x8xbf16>, vector<2x8x8xf32> -> vector<2x8x8xf32>
    "tpu.trace_stop"() : () -> ()
    %62 = vector.shape_cast %61 : vector<2x8x8xf32> to vector<16x8xf32>
    %63 = arith.truncf %62 : vector<16x8xf32> to vector<16x8xbf16>
    %c0_23 = arith.constant 0 : index
    %c1 = arith.constant 1 : index
    %c0_24 = arith.constant 0 : index
    %c0_25 = arith.constant 0 : index
    %64 = vector.load %arg4[%c0_23, %c1, %c0_24, %c0_25] : memref<3x4x8x32xbf16, #tpu.memory_space<vmem>>, vector<1x1x8x32xbf16>
    %65 = vector.shape_cast %64 : vector<1x1x8x32xbf16> to vector<8x32xbf16>
    %cst_26 = arith.constant dense<0.000000e+00> : vector<16x32xf32>
    %66 = tpu.matmul %63, %65, %cst_26 {dimension_numbers = #tpu.dot_dimension_numbers<[1], [0], [0], [1], [0, 0, 1, 1], [], []>} : vector<16x8xbf16>, vector<8x32xbf16>, vector<16x32xf32> -> vector<16x32xf32>
    %67 = arith.addf %39, %66 : vector<16x32xf32>
    %68 = vector.extract_strided_slice %6 {offsets = [0, 0, 16], sizes = [2, 8, 8], strides = [1, 1, 1]} : vector<2x8x96xf32> to vector<2x8x8xf32>
    %69 = arith.truncf %68 : vector<2x8x8xf32> to vector<2x8x8xbf16>
    %70 = vector.extract_strided_slice %6 {offsets = [0, 0, 48], sizes = [2, 8, 8], strides = [1, 1, 1]} : vector<2x8x96xf32> to vector<2x8x8xf32>
    %71 = arith.truncf %70 : vector<2x8x8xf32> to vector<2x8x8xbf16>
    %72 = vector.extract_strided_slice %6 {offsets = [0, 0, 80], sizes = [2, 8, 8], strides = [1, 1, 1]} : vector<2x8x96xf32> to vector<2x8x8xf32>
    %73 = arith.truncf %72 : vector<2x8x8xf32> to vector<2x8x8xbf16>
    "tpu.trace_start"() <{level = 10 : i32, message = "bqd,bkd->bqk"}> : () -> ()
    %cst_27 = arith.constant dense<0.000000e+00> : vector<2x8x8xf32>
    %74 = tpu.matmul %69, %71, %cst_27 {dimension_numbers = #tpu.dot_dimension_numbers<[2], [2], [1], [1], [0, 0, 0, 1, 1, 1], [0], [0]>} : vector<2x8x8xbf16>, vector<2x8x8xbf16>, vector<2x8x8xf32> -> vector<2x8x8xf32>
    "tpu.trace_stop"() : () -> ()
    %75 = vector.shape_cast %1 : vector<8x8xf32> to vector<1x8x8xf32>
    %76 = vector.broadcast %75 : vector<1x8x8xf32> to vector<2x8x8xf32>
    %77 = arith.addf %74, %76 : vector<2x8x8xf32>
    %cst_28 = arith.constant dense<0xFF800000> : vector<2x8xf32>
    %78 = vector.multi_reduction <maximumf>, %77, %cst_28 [2] : vector<2x8x8xf32> to vector<2x8xf32>
    %79 = vector.shape_cast %78 : vector<2x8xf32> to vector<2x8x1xf32>
    %80 = vector.broadcast %79 : vector<2x8x1xf32> to vector<2x8x8xf32>
    %81 = arith.subf %77, %80 : vector<2x8x8xf32>
    %82 = math.exp %81 : vector<2x8x8xf32>
    %cst_29 = arith.constant dense<0.000000e+00> : vector<2x8xf32>
    %83 = vector.multi_reduction <add>, %82, %cst_29 [2] : vector<2x8x8xf32> to vector<2x8xf32>
    %84 = vector.shape_cast %83 : vector<2x8xf32> to vector<2x8x1xf32>
    %85 = tpu.reciprocal %84 : vector<2x8x1xf32> -> vector<2x8x1xf32>
    %86 = vector.broadcast %85 : vector<2x8x1xf32> to vector<2x8x8xf32>
    %87 = arith.mulf %82, %86 : vector<2x8x8xf32>
    %88 = arith.truncf %87 : vector<2x8x8xf32> to vector<2x8x8xbf16>
    "tpu.trace_start"() <{level = 10 : i32, message = "bqk,bkd->bqd"}> : () -> ()
    %cst_30 = arith.constant dense<0.000000e+00> : vector<2x8x8xf32>
    %89 = tpu.matmul %88, %73, %cst_30 {dimension_numbers = #tpu.dot_dimension_numbers<[2], [1], [1], [2], [0, 0, 0, 1, 1, 2], [0], [0]>} : vector<2x8x8xbf16>, vector<2x8x8xbf16>, vector<2x8x8xf32> -> vector<2x8x8xf32>
    "tpu.trace_stop"() : () -> ()
    %90 = vector.shape_cast %89 : vector<2x8x8xf32> to vector<16x8xf32>
    %91 = arith.truncf %90 : vector<16x8xf32> to vector<16x8xbf16>
    %c0_31 = arith.constant 0 : index
    %c2 = arith.constant 2 : index
    %c0_32 = arith.constant 0 : index
    %c0_33 = arith.constant 0 : index
    %92 = vector.load %arg4[%c0_31, %c2, %c0_32, %c0_33] : memref<3x4x8x32xbf16, #tpu.memory_space<vmem>>, vector<1x1x8x32xbf16>
    %93 = vector.shape_cast %92 : vector<1x1x8x32xbf16> to vector<8x32xbf16>
    %cst_34 = arith.constant dense<0.000000e+00> : vector<16x32xf32>
    %94 = tpu.matmul %91, %93, %cst_34 {dimension_numbers = #tpu.dot_dimension_numbers<[1], [0], [0], [1], [0, 0, 1, 1], [], []>} : vector<16x8xbf16>, vector<8x32xbf16>, vector<16x32xf32> -> vector<16x32xf32>
    %95 = arith.addf %67, %94 : vector<16x32xf32>
    %96 = vector.extract_strided_slice %6 {offsets = [0, 0, 24], sizes = [2, 8, 8], strides = [1, 1, 1]} : vector<2x8x96xf32> to vector<2x8x8xf32>
    %97 = arith.truncf %96 : vector<2x8x8xf32> to vector<2x8x8xbf16>
    %98 = vector.extract_strided_slice %6 {offsets = [0, 0, 56], sizes = [2, 8, 8], strides = [1, 1, 1]} : vector<2x8x96xf32> to vector<2x8x8xf32>
    %99 = arith.truncf %98 : vector<2x8x8xf32> to vector<2x8x8xbf16>
    %100 = vector.extract_strided_slice %6 {offsets = [0, 0, 88], sizes = [2, 8, 8], strides = [1, 1, 1]} : vector<2x8x96xf32> to vector<2x8x8xf32>
    %101 = arith.truncf %100 : vector<2x8x8xf32> to vector<2x8x8xbf16>
    "tpu.trace_start"() <{level = 10 : i32, message = "bqd,bkd->bqk"}> : () -> ()
    %cst_35 = arith.constant dense<0.000000e+00> : vector<2x8x8xf32>
    %102 = tpu.matmul %97, %99, %cst_35 {dimension_numbers = #tpu.dot_dimension_numbers<[2], [2], [1], [1], [0, 0, 0, 1, 1, 1], [0], [0]>} : vector<2x8x8xbf16>, vector<2x8x8xbf16>, vector<2x8x8xf32> -> vector<2x8x8xf32>
    "tpu.trace_stop"() : () -> ()
    %103 = vector.shape_cast %1 : vector<8x8xf32> to vector<1x8x8xf32>
    %104 = vector.broadcast %103 : vector<1x8x8xf32> to vector<2x8x8xf32>
    %105 = arith.addf %102, %104 : vector<2x8x8xf32>
    %cst_36 = arith.constant dense<0xFF800000> : vector<2x8xf32>
    %106 = vector.multi_reduction <maximumf>, %105, %cst_36 [2] : vector<2x8x8xf32> to vector<2x8xf32>
    %107 = vector.shape_cast %106 : vector<2x8xf32> to vector<2x8x1xf32>
    %108 = vector.broadcast %107 : vector<2x8x1xf32> to vector<2x8x8xf32>
    %109 = arith.subf %105, %108 : vector<2x8x8xf32>
    %110 = math.exp %109 : vector<2x8x8xf32>
    %cst_37 = arith.constant dense<0.000000e+00> : vector<2x8xf32>
    %111 = vector.multi_reduction <add>, %110, %cst_37 [2] : vector<2x8x8xf32> to vector<2x8xf32>
    %112 = vector.shape_cast %111 : vector<2x8xf32> to vector<2x8x1xf32>
    %113 = tpu.reciprocal %112 : vector<2x8x1xf32> -> vector<2x8x1xf32>
    %114 = vector.broadcast %113 : vector<2x8x1xf32> to vector<2x8x8xf32>
    %115 = arith.mulf %110, %114 : vector<2x8x8xf32>
    %116 = arith.truncf %115 : vector<2x8x8xf32> to vector<2x8x8xbf16>
    "tpu.trace_start"() <{level = 10 : i32, message = "bqk,bkd->bqd"}> : () -> ()
    %cst_38 = arith.constant dense<0.000000e+00> : vector<2x8x8xf32>
    %117 = tpu.matmul %116, %101, %cst_38 {dimension_numbers = #tpu.dot_dimension_numbers<[2], [1], [1], [2], [0, 0, 0, 1, 1, 2], [0], [0]>} : vector<2x8x8xbf16>, vector<2x8x8xbf16>, vector<2x8x8xf32> -> vector<2x8x8xf32>
    "tpu.trace_stop"() : () -> ()
    %118 = vector.shape_cast %117 : vector<2x8x8xf32> to vector<16x8xf32>
    %119 = arith.truncf %118 : vector<16x8xf32> to vector<16x8xbf16>
    %c0_39 = arith.constant 0 : index
    %c3 = arith.constant 3 : index
    %c0_40 = arith.constant 0 : index
    %c0_41 = arith.constant 0 : index
    %120 = vector.load %arg4[%c0_39, %c3, %c0_40, %c0_41] : memref<3x4x8x32xbf16, #tpu.memory_space<vmem>>, vector<1x1x8x32xbf16>
    %121 = vector.shape_cast %120 : vector<1x1x8x32xbf16> to vector<8x32xbf16>
    %cst_42 = arith.constant dense<0.000000e+00> : vector<16x32xf32>
    %122 = tpu.matmul %119, %121, %cst_42 {dimension_numbers = #tpu.dot_dimension_numbers<[1], [0], [0], [1], [0, 0, 1, 1], [], []>} : vector<16x8xbf16>, vector<8x32xbf16>, vector<16x32xf32> -> vector<16x32xf32>
    %123 = arith.addf %95, %122 : vector<16x32xf32>
    %124 = arith.addf %0, %123 : vector<16x32xf32>
    %125 = arith.truncf %124 : vector<16x32xf32> to vector<16x32xbf16>
    %c0_43 = arith.constant 0 : index
    %c0_44 = arith.constant 0 : index
    %c0_45 = arith.constant 0 : index
    %126 = vector.load %arg6[%c0_43, %c0_44, %c0_45] : memref<3x32x128xbf16, #tpu.memory_space<vmem>>, vector<1x32x128xbf16>
    %127 = vector.shape_cast %126 : vector<1x32x128xbf16> to vector<32x128xbf16>
    %cst_46 = arith.constant dense<0.000000e+00> : vector<16x128xf32>
    %128 = tpu.matmul %125, %127, %cst_46 {dimension_numbers = #tpu.dot_dimension_numbers<[1], [0], [0], [1], [0, 0, 1, 1], [], []>} : vector<16x32xbf16>, vector<32x128xbf16>, vector<16x128xf32> -> vector<16x128xf32>
    %c0_47 = arith.constant 0 : index
    %c0_48 = arith.constant 0 : index
    %c0_49 = arith.constant 0 : index
    %129 = vector.load %arg7[%c0_47, %c0_48, %c0_49] : memref<3x1x128xf32, #tpu.memory_space<vmem>>, vector<1x1x128xf32>
    %130 = vector.shape_cast %129 : vector<1x1x128xf32> to vector<1x128xf32>
    %131 = vector.broadcast %130 : vector<1x128xf32> to vector<16x128xf32>
    %132 = arith.addf %128, %131 : vector<16x128xf32>
    %cst_50 = arith.constant 0.000000e+00 : f32
    %133 = vector.broadcast %cst_50 : f32 to vector<16x128xf32>
    %134 = arith.maximumf %132, %133 : vector<16x128xf32>
    %135 = arith.truncf %134 : vector<16x128xf32> to vector<16x128xbf16>
    %c0_51 = arith.constant 0 : index
    %c0_52 = arith.constant 0 : index
    %c0_53 = arith.constant 0 : index
    %136 = vector.load %arg8[%c0_51, %c0_52, %c0_53] : memref<3x128x32xbf16, #tpu.memory_space<vmem>>, vector<1x128x32xbf16>
    %137 = vector.shape_cast %136 : vector<1x128x32xbf16> to vector<128x32xbf16>
    %cst_54 = arith.constant dense<0.000000e+00> : vector<16x32xf32>
    %138 = tpu.matmul %135, %137, %cst_54 {dimension_numbers = #tpu.dot_dimension_numbers<[1], [0], [0], [1], [0, 0, 1, 1], [], []>} : vector<16x128xbf16>, vector<128x32xbf16>, vector<16x32xf32> -> vector<16x32xf32>
    %c0_55 = arith.constant 0 : index
    %c0_56 = arith.constant 0 : index
    %c0_57 = arith.constant 0 : index
    %139 = vector.load %arg9[%c0_55, %c0_56, %c0_57] : memref<3x1x32xf32, #tpu.memory_space<vmem>>, vector<1x1x32xf32>
    %140 = vector.shape_cast %139 : vector<1x1x32xf32> to vector<1x32xf32>
    %141 = vector.broadcast %140 : vector<1x32xf32> to vector<16x32xf32>
    %142 = arith.addf %138, %141 : vector<16x32xf32>
    %143 = arith.addf %124, %142 : vector<16x32xf32>
    %144 = arith.truncf %143 : vector<16x32xf32> to vector<16x32xbf16>
    %c1_58 = arith.constant 1 : index
    %c0_59 = arith.constant 0 : index
    %c0_60 = arith.constant 0 : index
    %145 = vector.load %arg3[%c1_58, %c0_59, %c0_60] : memref<3x32x96xbf16, #tpu.memory_space<vmem>>, vector<1x32x96xbf16>
    %146 = vector.shape_cast %145 : vector<1x32x96xbf16> to vector<32x96xbf16>
    %cst_61 = arith.constant dense<0.000000e+00> : vector<16x96xf32>
    %147 = tpu.matmul %144, %146, %cst_61 {dimension_numbers = #tpu.dot_dimension_numbers<[1], [0], [0], [1], [0, 0, 1, 1], [], []>} : vector<16x32xbf16>, vector<32x96xbf16>, vector<16x96xf32> -> vector<16x96xf32>
    %148 = vector.shape_cast %147 : vector<16x96xf32> to vector<2x8x96xf32>
    %cst_62 = arith.constant 0.000000e+00 : f32
    %149 = vector.broadcast %cst_62 : f32 to vector<16x32xf32>
    %c1_63 = arith.constant 1 : index
    %c0_64 = arith.constant 0 : index
    %c0_65 = arith.constant 0 : index
    %150 = vector.load %arg5[%c1_63, %c0_64, %c0_65] : memref<3x1x32xf32, #tpu.memory_space<vmem>>, vector<1x1x32xf32>
    %151 = vector.shape_cast %150 : vector<1x1x32xf32> to vector<1x32xf32>
    %152 = vector.broadcast %151 : vector<1x32xf32> to vector<16x32xf32>
    %153 = arith.addf %149, %152 : vector<16x32xf32>
    %154 = vector.extract_strided_slice %148 {offsets = [0, 0, 0], sizes = [2, 8, 8], strides = [1, 1, 1]} : vector<2x8x96xf32> to vector<2x8x8xf32>
    %155 = arith.truncf %154 : vector<2x8x8xf32> to vector<2x8x8xbf16>
    %156 = vector.extract_strided_slice %148 {offsets = [0, 0, 32], sizes = [2, 8, 8], strides = [1, 1, 1]} : vector<2x8x96xf32> to vector<2x8x8xf32>
    %157 = arith.truncf %156 : vector<2x8x8xf32> to vector<2x8x8xbf16>
    %158 = vector.extract_strided_slice %148 {offsets = [0, 0, 64], sizes = [2, 8, 8], strides = [1, 1, 1]} : vector<2x8x96xf32> to vector<2x8x8xf32>
    %159 = arith.truncf %158 : vector<2x8x8xf32> to vector<2x8x8xbf16>
    "tpu.trace_start"() <{level = 10 : i32, message = "bqd,bkd->bqk"}> : () -> ()
    %cst_66 = arith.constant dense<0.000000e+00> : vector<2x8x8xf32>
    %160 = tpu.matmul %155, %157, %cst_66 {dimension_numbers = #tpu.dot_dimension_numbers<[2], [2], [1], [1], [0, 0, 0, 1, 1, 1], [0], [0]>} : vector<2x8x8xbf16>, vector<2x8x8xbf16>, vector<2x8x8xf32> -> vector<2x8x8xf32>
    "tpu.trace_stop"() : () -> ()
    %161 = vector.shape_cast %1 : vector<8x8xf32> to vector<1x8x8xf32>
    %162 = vector.broadcast %161 : vector<1x8x8xf32> to vector<2x8x8xf32>
    %163 = arith.addf %160, %162 : vector<2x8x8xf32>
    %cst_67 = arith.constant dense<0xFF800000> : vector<2x8xf32>
    %164 = vector.multi_reduction <maximumf>, %163, %cst_67 [2] : vector<2x8x8xf32> to vector<2x8xf32>
    %165 = vector.shape_cast %164 : vector<2x8xf32> to vector<2x8x1xf32>
    %166 = vector.broadcast %165 : vector<2x8x1xf32> to vector<2x8x8xf32>
    %167 = arith.subf %163, %166 : vector<2x8x8xf32>
    %168 = math.exp %167 : vector<2x8x8xf32>
    %cst_68 = arith.constant dense<0.000000e+00> : vector<2x8xf32>
    %169 = vector.multi_reduction <add>, %168, %cst_68 [2] : vector<2x8x8xf32> to vector<2x8xf32>
    %170 = vector.shape_cast %169 : vector<2x8xf32> to vector<2x8x1xf32>
    %171 = tpu.reciprocal %170 : vector<2x8x1xf32> -> vector<2x8x1xf32>
    %172 = vector.broadcast %171 : vector<2x8x1xf32> to vector<2x8x8xf32>
    %173 = arith.mulf %168, %172 : vector<2x8x8xf32>
    %174 = arith.truncf %173 : vector<2x8x8xf32> to vector<2x8x8xbf16>
    "tpu.trace_start"() <{level = 10 : i32, message = "bqk,bkd->bqd"}> : () -> ()
    %cst_69 = arith.constant dense<0.000000e+00> : vector<2x8x8xf32>
    %175 = tpu.matmul %174, %159, %cst_69 {dimension_numbers = #tpu.dot_dimension_numbers<[2], [1], [1], [2], [0, 0, 0, 1, 1, 2], [0], [0]>} : vector<2x8x8xbf16>, vector<2x8x8xbf16>, vector<2x8x8xf32> -> vector<2x8x8xf32>
    "tpu.trace_stop"() : () -> ()
    %176 = vector.shape_cast %175 : vector<2x8x8xf32> to vector<16x8xf32>
    %177 = arith.truncf %176 : vector<16x8xf32> to vector<16x8xbf16>
    %c1_70 = arith.constant 1 : index
    %c0_71 = arith.constant 0 : index
    %c0_72 = arith.constant 0 : index
    %c0_73 = arith.constant 0 : index
    %178 = vector.load %arg4[%c1_70, %c0_71, %c0_72, %c0_73] : memref<3x4x8x32xbf16, #tpu.memory_space<vmem>>, vector<1x1x8x32xbf16>
    %179 = vector.shape_cast %178 : vector<1x1x8x32xbf16> to vector<8x32xbf16>
    %cst_74 = arith.constant dense<0.000000e+00> : vector<16x32xf32>
    %180 = tpu.matmul %177, %179, %cst_74 {dimension_numbers = #tpu.dot_dimension_numbers<[1], [0], [0], [1], [0, 0, 1, 1], [], []>} : vector<16x8xbf16>, vector<8x32xbf16>, vector<16x32xf32> -> vector<16x32xf32>
    %181 = arith.addf %153, %180 : vector<16x32xf32>
    %182 = vector.extract_strided_slice %148 {offsets = [0, 0, 8], sizes = [2, 8, 8], strides = [1, 1, 1]} : vector<2x8x96xf32> to vector<2x8x8xf32>
    %183 = arith.truncf %182 : vector<2x8x8xf32> to vector<2x8x8xbf16>
    %184 = vector.extract_strided_slice %148 {offsets = [0, 0, 40], sizes = [2, 8, 8], strides = [1, 1, 1]} : vector<2x8x96xf32> to vector<2x8x8xf32>
    %185 = arith.truncf %184 : vector<2x8x8xf32> to vector<2x8x8xbf16>
    %186 = vector.extract_strided_slice %148 {offsets = [0, 0, 72], sizes = [2, 8, 8], strides = [1, 1, 1]} : vector<2x8x96xf32> to vector<2x8x8xf32>
    %187 = arith.truncf %186 : vector<2x8x8xf32> to vector<2x8x8xbf16>
    "tpu.trace_start"() <{level = 10 : i32, message = "bqd,bkd->bqk"}> : () -> ()
    %cst_75 = arith.constant dense<0.000000e+00> : vector<2x8x8xf32>
    %188 = tpu.matmul %183, %185, %cst_75 {dimension_numbers = #tpu.dot_dimension_numbers<[2], [2], [1], [1], [0, 0, 0, 1, 1, 1], [0], [0]>} : vector<2x8x8xbf16>, vector<2x8x8xbf16>, vector<2x8x8xf32> -> vector<2x8x8xf32>
    "tpu.trace_stop"() : () -> ()
    %189 = vector.shape_cast %1 : vector<8x8xf32> to vector<1x8x8xf32>
    %190 = vector.broadcast %189 : vector<1x8x8xf32> to vector<2x8x8xf32>
    %191 = arith.addf %188, %190 : vector<2x8x8xf32>
    %cst_76 = arith.constant dense<0xFF800000> : vector<2x8xf32>
    %192 = vector.multi_reduction <maximumf>, %191, %cst_76 [2] : vector<2x8x8xf32> to vector<2x8xf32>
    %193 = vector.shape_cast %192 : vector<2x8xf32> to vector<2x8x1xf32>
    %194 = vector.broadcast %193 : vector<2x8x1xf32> to vector<2x8x8xf32>
    %195 = arith.subf %191, %194 : vector<2x8x8xf32>
    %196 = math.exp %195 : vector<2x8x8xf32>
    %cst_77 = arith.constant dense<0.000000e+00> : vector<2x8xf32>
    %197 = vector.multi_reduction <add>, %196, %cst_77 [2] : vector<2x8x8xf32> to vector<2x8xf32>
    %198 = vector.shape_cast %197 : vector<2x8xf32> to vector<2x8x1xf32>
    %199 = tpu.reciprocal %198 : vector<2x8x1xf32> -> vector<2x8x1xf32>
    %200 = vector.broadcast %199 : vector<2x8x1xf32> to vector<2x8x8xf32>
    %201 = arith.mulf %196, %200 : vector<2x8x8xf32>
    %202 = arith.truncf %201 : vector<2x8x8xf32> to vector<2x8x8xbf16>
    "tpu.trace_start"() <{level = 10 : i32, message = "bqk,bkd->bqd"}> : () -> ()
    %cst_78 = arith.constant dense<0.000000e+00> : vector<2x8x8xf32>
    %203 = tpu.matmul %202, %187, %cst_78 {dimension_numbers = #tpu.dot_dimension_numbers<[2], [1], [1], [2], [0, 0, 0, 1, 1, 2], [0], [0]>} : vector<2x8x8xbf16>, vector<2x8x8xbf16>, vector<2x8x8xf32> -> vector<2x8x8xf32>
    "tpu.trace_stop"() : () -> ()
    %204 = vector.shape_cast %203 : vector<2x8x8xf32> to vector<16x8xf32>
    %205 = arith.truncf %204 : vector<16x8xf32> to vector<16x8xbf16>
    %c1_79 = arith.constant 1 : index
    %c1_80 = arith.constant 1 : index
    %c0_81 = arith.constant 0 : index
    %c0_82 = arith.constant 0 : index
    %206 = vector.load %arg4[%c1_79, %c1_80, %c0_81, %c0_82] : memref<3x4x8x32xbf16, #tpu.memory_space<vmem>>, vector<1x1x8x32xbf16>
    %207 = vector.shape_cast %206 : vector<1x1x8x32xbf16> to vector<8x32xbf16>
    %cst_83 = arith.constant dense<0.000000e+00> : vector<16x32xf32>
    %208 = tpu.matmul %205, %207, %cst_83 {dimension_numbers = #tpu.dot_dimension_numbers<[1], [0], [0], [1], [0, 0, 1, 1], [], []>} : vector<16x8xbf16>, vector<8x32xbf16>, vector<16x32xf32> -> vector<16x32xf32>
    %209 = arith.addf %181, %208 : vector<16x32xf32>
    %210 = vector.extract_strided_slice %148 {offsets = [0, 0, 16], sizes = [2, 8, 8], strides = [1, 1, 1]} : vector<2x8x96xf32> to vector<2x8x8xf32>
    %211 = arith.truncf %210 : vector<2x8x8xf32> to vector<2x8x8xbf16>
    %212 = vector.extract_strided_slice %148 {offsets = [0, 0, 48], sizes = [2, 8, 8], strides = [1, 1, 1]} : vector<2x8x96xf32> to vector<2x8x8xf32>
    %213 = arith.truncf %212 : vector<2x8x8xf32> to vector<2x8x8xbf16>
    %214 = vector.extract_strided_slice %148 {offsets = [0, 0, 80], sizes = [2, 8, 8], strides = [1, 1, 1]} : vector<2x8x96xf32> to vector<2x8x8xf32>
    %215 = arith.truncf %214 : vector<2x8x8xf32> to vector<2x8x8xbf16>
    "tpu.trace_start"() <{level = 10 : i32, message = "bqd,bkd->bqk"}> : () -> ()
    %cst_84 = arith.constant dense<0.000000e+00> : vector<2x8x8xf32>
    %216 = tpu.matmul %211, %213, %cst_84 {dimension_numbers = #tpu.dot_dimension_numbers<[2], [2], [1], [1], [0, 0, 0, 1, 1, 1], [0], [0]>} : vector<2x8x8xbf16>, vector<2x8x8xbf16>, vector<2x8x8xf32> -> vector<2x8x8xf32>
    "tpu.trace_stop"() : () -> ()
    %217 = vector.shape_cast %1 : vector<8x8xf32> to vector<1x8x8xf32>
    %218 = vector.broadcast %217 : vector<1x8x8xf32> to vector<2x8x8xf32>
    %219 = arith.addf %216, %218 : vector<2x8x8xf32>
    %cst_85 = arith.constant dense<0xFF800000> : vector<2x8xf32>
    %220 = vector.multi_reduction <maximumf>, %219, %cst_85 [2] : vector<2x8x8xf32> to vector<2x8xf32>
    %221 = vector.shape_cast %220 : vector<2x8xf32> to vector<2x8x1xf32>
    %222 = vector.broadcast %221 : vector<2x8x1xf32> to vector<2x8x8xf32>
    %223 = arith.subf %219, %222 : vector<2x8x8xf32>
    %224 = math.exp %223 : vector<2x8x8xf32>
    %cst_86 = arith.constant dense<0.000000e+00> : vector<2x8xf32>
    %225 = vector.multi_reduction <add>, %224, %cst_86 [2] : vector<2x8x8xf32> to vector<2x8xf32>
    %226 = vector.shape_cast %225 : vector<2x8xf32> to vector<2x8x1xf32>
    %227 = tpu.reciprocal %226 : vector<2x8x1xf32> -> vector<2x8x1xf32>
    %228 = vector.broadcast %227 : vector<2x8x1xf32> to vector<2x8x8xf32>
    %229 = arith.mulf %224, %228 : vector<2x8x8xf32>
    %230 = arith.truncf %229 : vector<2x8x8xf32> to vector<2x8x8xbf16>
    "tpu.trace_start"() <{level = 10 : i32, message = "bqk,bkd->bqd"}> : () -> ()
    %cst_87 = arith.constant dense<0.000000e+00> : vector<2x8x8xf32>
    %231 = tpu.matmul %230, %215, %cst_87 {dimension_numbers = #tpu.dot_dimension_numbers<[2], [1], [1], [2], [0, 0, 0, 1, 1, 2], [0], [0]>} : vector<2x8x8xbf16>, vector<2x8x8xbf16>, vector<2x8x8xf32> -> vector<2x8x8xf32>
    "tpu.trace_stop"() : () -> ()
    %232 = vector.shape_cast %231 : vector<2x8x8xf32> to vector<16x8xf32>
    %233 = arith.truncf %232 : vector<16x8xf32> to vector<16x8xbf16>
    %c1_88 = arith.constant 1 : index
    %c2_89 = arith.constant 2 : index
    %c0_90 = arith.constant 0 : index
    %c0_91 = arith.constant 0 : index
    %234 = vector.load %arg4[%c1_88, %c2_89, %c0_90, %c0_91] : memref<3x4x8x32xbf16, #tpu.memory_space<vmem>>, vector<1x1x8x32xbf16>
    %235 = vector.shape_cast %234 : vector<1x1x8x32xbf16> to vector<8x32xbf16>
    %cst_92 = arith.constant dense<0.000000e+00> : vector<16x32xf32>
    %236 = tpu.matmul %233, %235, %cst_92 {dimension_numbers = #tpu.dot_dimension_numbers<[1], [0], [0], [1], [0, 0, 1, 1], [], []>} : vector<16x8xbf16>, vector<8x32xbf16>, vector<16x32xf32> -> vector<16x32xf32>
    %237 = arith.addf %209, %236 : vector<16x32xf32>
    %238 = vector.extract_strided_slice %148 {offsets = [0, 0, 24], sizes = [2, 8, 8], strides = [1, 1, 1]} : vector<2x8x96xf32> to vector<2x8x8xf32>
    %239 = arith.truncf %238 : vector<2x8x8xf32> to vector<2x8x8xbf16>
    %240 = vector.extract_strided_slice %148 {offsets = [0, 0, 56], sizes = [2, 8, 8], strides = [1, 1, 1]} : vector<2x8x96xf32> to vector<2x8x8xf32>
    %241 = arith.truncf %240 : vector<2x8x8xf32> to vector<2x8x8xbf16>
    %242 = vector.extract_strided_slice %148 {offsets = [0, 0, 88], sizes = [2, 8, 8], strides = [1, 1, 1]} : vector<2x8x96xf32> to vector<2x8x8xf32>
    %243 = arith.truncf %242 : vector<2x8x8xf32> to vector<2x8x8xbf16>
    "tpu.trace_start"() <{level = 10 : i32, message = "bqd,bkd->bqk"}> : () -> ()
    %cst_93 = arith.constant dense<0.000000e+00> : vector<2x8x8xf32>
    %244 = tpu.matmul %239, %241, %cst_93 {dimension_numbers = #tpu.dot_dimension_numbers<[2], [2], [1], [1], [0, 0, 0, 1, 1, 1], [0], [0]>} : vector<2x8x8xbf16>, vector<2x8x8xbf16>, vector<2x8x8xf32> -> vector<2x8x8xf32>
    "tpu.trace_stop"() : () -> ()
    %245 = vector.shape_cast %1 : vector<8x8xf32> to vector<1x8x8xf32>
    %246 = vector.broadcast %245 : vector<1x8x8xf32> to vector<2x8x8xf32>
    %247 = arith.addf %244, %246 : vector<2x8x8xf32>
    %cst_94 = arith.constant dense<0xFF800000> : vector<2x8xf32>
    %248 = vector.multi_reduction <maximumf>, %247, %cst_94 [2] : vector<2x8x8xf32> to vector<2x8xf32>
    %249 = vector.shape_cast %248 : vector<2x8xf32> to vector<2x8x1xf32>
    %250 = vector.broadcast %249 : vector<2x8x1xf32> to vector<2x8x8xf32>
    %251 = arith.subf %247, %250 : vector<2x8x8xf32>
    %252 = math.exp %251 : vector<2x8x8xf32>
    %cst_95 = arith.constant dense<0.000000e+00> : vector<2x8xf32>
    %253 = vector.multi_reduction <add>, %252, %cst_95 [2] : vector<2x8x8xf32> to vector<2x8xf32>
    %254 = vector.shape_cast %253 : vector<2x8xf32> to vector<2x8x1xf32>
    %255 = tpu.reciprocal %254 : vector<2x8x1xf32> -> vector<2x8x1xf32>
    %256 = vector.broadcast %255 : vector<2x8x1xf32> to vector<2x8x8xf32>
    %257 = arith.mulf %252, %256 : vector<2x8x8xf32>
    %258 = arith.truncf %257 : vector<2x8x8xf32> to vector<2x8x8xbf16>
    "tpu.trace_start"() <{level = 10 : i32, message = "bqk,bkd->bqd"}> : () -> ()
    %cst_96 = arith.constant dense<0.000000e+00> : vector<2x8x8xf32>
    %259 = tpu.matmul %258, %243, %cst_96 {dimension_numbers = #tpu.dot_dimension_numbers<[2], [1], [1], [2], [0, 0, 0, 1, 1, 2], [0], [0]>} : vector<2x8x8xbf16>, vector<2x8x8xbf16>, vector<2x8x8xf32> -> vector<2x8x8xf32>
    "tpu.trace_stop"() : () -> ()
    %260 = vector.shape_cast %259 : vector<2x8x8xf32> to vector<16x8xf32>
    %261 = arith.truncf %260 : vector<16x8xf32> to vector<16x8xbf16>
    %c1_97 = arith.constant 1 : index
    %c3_98 = arith.constant 3 : index
    %c0_99 = arith.constant 0 : index
    %c0_100 = arith.constant 0 : index
    %262 = vector.load %arg4[%c1_97, %c3_98, %c0_99, %c0_100] : memref<3x4x8x32xbf16, #tpu.memory_space<vmem>>, vector<1x1x8x32xbf16>
    %263 = vector.shape_cast %262 : vector<1x1x8x32xbf16> to vector<8x32xbf16>
    %cst_101 = arith.constant dense<0.000000e+00> : vector<16x32xf32>
    %264 = tpu.matmul %261, %263, %cst_101 {dimension_numbers = #tpu.dot_dimension_numbers<[1], [0], [0], [1], [0, 0, 1, 1], [], []>} : vector<16x8xbf16>, vector<8x32xbf16>, vector<16x32xf32> -> vector<16x32xf32>
    %265 = arith.addf %237, %264 : vector<16x32xf32>
    %266 = arith.addf %143, %265 : vector<16x32xf32>
    %267 = arith.truncf %266 : vector<16x32xf32> to vector<16x32xbf16>
    %c1_102 = arith.constant 1 : index
    %c0_103 = arith.constant 0 : index
    %c0_104 = arith.constant 0 : index
    %268 = vector.load %arg6[%c1_102, %c0_103, %c0_104] : memref<3x32x128xbf16, #tpu.memory_space<vmem>>, vector<1x32x128xbf16>
    %269 = vector.shape_cast %268 : vector<1x32x128xbf16> to vector<32x128xbf16>
    %cst_105 = arith.constant dense<0.000000e+00> : vector<16x128xf32>
    %270 = tpu.matmul %267, %269, %cst_105 {dimension_numbers = #tpu.dot_dimension_numbers<[1], [0], [0], [1], [0, 0, 1, 1], [], []>} : vector<16x32xbf16>, vector<32x128xbf16>, vector<16x128xf32> -> vector<16x128xf32>
    %c1_106 = arith.constant 1 : index
    %c0_107 = arith.constant 0 : index
    %c0_108 = arith.constant 0 : index
    %271 = vector.load %arg7[%c1_106, %c0_107, %c0_108] : memref<3x1x128xf32, #tpu.memory_space<vmem>>, vector<1x1x128xf32>
    %272 = vector.shape_cast %271 : vector<1x1x128xf32> to vector<1x128xf32>
    %273 = vector.broadcast %272 : vector<1x128xf32> to vector<16x128xf32>
    %274 = arith.addf %270, %273 : vector<16x128xf32>
    %cst_109 = arith.constant 0.000000e+00 : f32
    %275 = vector.broadcast %cst_109 : f32 to vector<16x128xf32>
    %276 = arith.maximumf %274, %275 : vector<16x128xf32>
    %277 = arith.truncf %276 : vector<16x128xf32> to vector<16x128xbf16>
    %c1_110 = arith.constant 1 : index
    %c0_111 = arith.constant 0 : index
    %c0_112 = arith.constant 0 : index
    %278 = vector.load %arg8[%c1_110, %c0_111, %c0_112] : memref<3x128x32xbf16, #tpu.memory_space<vmem>>, vector<1x128x32xbf16>
    %279 = vector.shape_cast %278 : vector<1x128x32xbf16> to vector<128x32xbf16>
    %cst_113 = arith.constant dense<0.000000e+00> : vector<16x32xf32>
    %280 = tpu.matmul %277, %279, %cst_113 {dimension_numbers = #tpu.dot_dimension_numbers<[1], [0], [0], [1], [0, 0, 1, 1], [], []>} : vector<16x128xbf16>, vector<128x32xbf16>, vector<16x32xf32> -> vector<16x32xf32>
    %c1_114 = arith.constant 1 : index
    %c0_115 = arith.constant 0 : index
    %c0_116 = arith.constant 0 : index
    %281 = vector.load %arg9[%c1_114, %c0_115, %c0_116] : memref<3x1x32xf32, #tpu.memory_space<vmem>>, vector<1x1x32xf32>
    %282 = vector.shape_cast %281 : vector<1x1x32xf32> to vector<1x32xf32>
    %283 = vector.broadcast %282 : vector<1x32xf32> to vector<16x32xf32>
    %284 = arith.addf %280, %283 : vector<16x32xf32>
    %285 = arith.addf %266, %284 : vector<16x32xf32>
    %286 = arith.truncf %285 : vector<16x32xf32> to vector<16x32xbf16>
    %c2_117 = arith.constant 2 : index
    %c0_118 = arith.constant 0 : index
    %c0_119 = arith.constant 0 : index
    %287 = vector.load %arg3[%c2_117, %c0_118, %c0_119] : memref<3x32x96xbf16, #tpu.memory_space<vmem>>, vector<1x32x96xbf16>
    %288 = vector.shape_cast %287 : vector<1x32x96xbf16> to vector<32x96xbf16>
    %cst_120 = arith.constant dense<0.000000e+00> : vector<16x96xf32>
    %289 = tpu.matmul %286, %288, %cst_120 {dimension_numbers = #tpu.dot_dimension_numbers<[1], [0], [0], [1], [0, 0, 1, 1], [], []>} : vector<16x32xbf16>, vector<32x96xbf16>, vector<16x96xf32> -> vector<16x96xf32>
    %290 = vector.shape_cast %289 : vector<16x96xf32> to vector<2x8x96xf32>
    %cst_121 = arith.constant 0.000000e+00 : f32
    %291 = vector.broadcast %cst_121 : f32 to vector<16x32xf32>
    %c2_122 = arith.constant 2 : index
    %c0_123 = arith.constant 0 : index
    %c0_124 = arith.constant 0 : index
    %292 = vector.load %arg5[%c2_122, %c0_123, %c0_124] : memref<3x1x32xf32, #tpu.memory_space<vmem>>, vector<1x1x32xf32>
    %293 = vector.shape_cast %292 : vector<1x1x32xf32> to vector<1x32xf32>
    %294 = vector.broadcast %293 : vector<1x32xf32> to vector<16x32xf32>
    %295 = arith.addf %291, %294 : vector<16x32xf32>
    %296 = vector.extract_strided_slice %290 {offsets = [0, 0, 0], sizes = [2, 8, 8], strides = [1, 1, 1]} : vector<2x8x96xf32> to vector<2x8x8xf32>
    %297 = arith.truncf %296 : vector<2x8x8xf32> to vector<2x8x8xbf16>
    %298 = vector.extract_strided_slice %290 {offsets = [0, 0, 32], sizes = [2, 8, 8], strides = [1, 1, 1]} : vector<2x8x96xf32> to vector<2x8x8xf32>
    %299 = arith.truncf %298 : vector<2x8x8xf32> to vector<2x8x8xbf16>
    %300 = vector.extract_strided_slice %290 {offsets = [0, 0, 64], sizes = [2, 8, 8], strides = [1, 1, 1]} : vector<2x8x96xf32> to vector<2x8x8xf32>
    %301 = arith.truncf %300 : vector<2x8x8xf32> to vector<2x8x8xbf16>
    "tpu.trace_start"() <{level = 10 : i32, message = "bqd,bkd->bqk"}> : () -> ()
    %cst_125 = arith.constant dense<0.000000e+00> : vector<2x8x8xf32>
    %302 = tpu.matmul %297, %299, %cst_125 {dimension_numbers = #tpu.dot_dimension_numbers<[2], [2], [1], [1], [0, 0, 0, 1, 1, 1], [0], [0]>} : vector<2x8x8xbf16>, vector<2x8x8xbf16>, vector<2x8x8xf32> -> vector<2x8x8xf32>
    "tpu.trace_stop"() : () -> ()
    %303 = vector.shape_cast %1 : vector<8x8xf32> to vector<1x8x8xf32>
    %304 = vector.broadcast %303 : vector<1x8x8xf32> to vector<2x8x8xf32>
    %305 = arith.addf %302, %304 : vector<2x8x8xf32>
    %cst_126 = arith.constant dense<0xFF800000> : vector<2x8xf32>
    %306 = vector.multi_reduction <maximumf>, %305, %cst_126 [2] : vector<2x8x8xf32> to vector<2x8xf32>
    %307 = vector.shape_cast %306 : vector<2x8xf32> to vector<2x8x1xf32>
    %308 = vector.broadcast %307 : vector<2x8x1xf32> to vector<2x8x8xf32>
    %309 = arith.subf %305, %308 : vector<2x8x8xf32>
    %310 = math.exp %309 : vector<2x8x8xf32>
    %cst_127 = arith.constant dense<0.000000e+00> : vector<2x8xf32>
    %311 = vector.multi_reduction <add>, %310, %cst_127 [2] : vector<2x8x8xf32> to vector<2x8xf32>
    %312 = vector.shape_cast %311 : vector<2x8xf32> to vector<2x8x1xf32>
    %313 = tpu.reciprocal %312 : vector<2x8x1xf32> -> vector<2x8x1xf32>
    %314 = vector.broadcast %313 : vector<2x8x1xf32> to vector<2x8x8xf32>
    %315 = arith.mulf %310, %314 : vector<2x8x8xf32>
    %316 = arith.truncf %315 : vector<2x8x8xf32> to vector<2x8x8xbf16>
    "tpu.trace_start"() <{level = 10 : i32, message = "bqk,bkd->bqd"}> : () -> ()
    %cst_128 = arith.constant dense<0.000000e+00> : vector<2x8x8xf32>
    %317 = tpu.matmul %316, %301, %cst_128 {dimension_numbers = #tpu.dot_dimension_numbers<[2], [1], [1], [2], [0, 0, 0, 1, 1, 2], [0], [0]>} : vector<2x8x8xbf16>, vector<2x8x8xbf16>, vector<2x8x8xf32> -> vector<2x8x8xf32>
    "tpu.trace_stop"() : () -> ()
    %318 = vector.shape_cast %317 : vector<2x8x8xf32> to vector<16x8xf32>
    %319 = arith.truncf %318 : vector<16x8xf32> to vector<16x8xbf16>
    %c2_129 = arith.constant 2 : index
    %c0_130 = arith.constant 0 : index
    %c0_131 = arith.constant 0 : index
    %c0_132 = arith.constant 0 : index
    %320 = vector.load %arg4[%c2_129, %c0_130, %c0_131, %c0_132] : memref<3x4x8x32xbf16, #tpu.memory_space<vmem>>, vector<1x1x8x32xbf16>
    %321 = vector.shape_cast %320 : vector<1x1x8x32xbf16> to vector<8x32xbf16>
    %cst_133 = arith.constant dense<0.000000e+00> : vector<16x32xf32>
    %322 = tpu.matmul %319, %321, %cst_133 {dimension_numbers = #tpu.dot_dimension_numbers<[1], [0], [0], [1], [0, 0, 1, 1], [], []>} : vector<16x8xbf16>, vector<8x32xbf16>, vector<16x32xf32> -> vector<16x32xf32>
    %323 = arith.addf %295, %322 : vector<16x32xf32>
    %324 = vector.extract_strided_slice %290 {offsets = [0, 0, 8], sizes = [2, 8, 8], strides = [1, 1, 1]} : vector<2x8x96xf32> to vector<2x8x8xf32>
    %325 = arith.truncf %324 : vector<2x8x8xf32> to vector<2x8x8xbf16>
    %326 = vector.extract_strided_slice %290 {offsets = [0, 0, 40], sizes = [2, 8, 8], strides = [1, 1, 1]} : vector<2x8x96xf32> to vector<2x8x8xf32>
    %327 = arith.truncf %326 : vector<2x8x8xf32> to vector<2x8x8xbf16>
    %328 = vector.extract_strided_slice %290 {offsets = [0, 0, 72], sizes = [2, 8, 8], strides = [1, 1, 1]} : vector<2x8x96xf32> to vector<2x8x8xf32>
    %329 = arith.truncf %328 : vector<2x8x8xf32> to vector<2x8x8xbf16>
    "tpu.trace_start"() <{level = 10 : i32, message = "bqd,bkd->bqk"}> : () -> ()
    %cst_134 = arith.constant dense<0.000000e+00> : vector<2x8x8xf32>
    %330 = tpu.matmul %325, %327, %cst_134 {dimension_numbers = #tpu.dot_dimension_numbers<[2], [2], [1], [1], [0, 0, 0, 1, 1, 1], [0], [0]>} : vector<2x8x8xbf16>, vector<2x8x8xbf16>, vector<2x8x8xf32> -> vector<2x8x8xf32>
    "tpu.trace_stop"() : () -> ()
    %331 = vector.shape_cast %1 : vector<8x8xf32> to vector<1x8x8xf32>
    %332 = vector.broadcast %331 : vector<1x8x8xf32> to vector<2x8x8xf32>
    %333 = arith.addf %330, %332 : vector<2x8x8xf32>
    %cst_135 = arith.constant dense<0xFF800000> : vector<2x8xf32>
    %334 = vector.multi_reduction <maximumf>, %333, %cst_135 [2] : vector<2x8x8xf32> to vector<2x8xf32>
    %335 = vector.shape_cast %334 : vector<2x8xf32> to vector<2x8x1xf32>
    %336 = vector.broadcast %335 : vector<2x8x1xf32> to vector<2x8x8xf32>
    %337 = arith.subf %333, %336 : vector<2x8x8xf32>
    %338 = math.exp %337 : vector<2x8x8xf32>
    %cst_136 = arith.constant dense<0.000000e+00> : vector<2x8xf32>
    %339 = vector.multi_reduction <add>, %338, %cst_136 [2] : vector<2x8x8xf32> to vector<2x8xf32>
    %340 = vector.shape_cast %339 : vector<2x8xf32> to vector<2x8x1xf32>
    %341 = tpu.reciprocal %340 : vector<2x8x1xf32> -> vector<2x8x1xf32>
    %342 = vector.broadcast %341 : vector<2x8x1xf32> to vector<2x8x8xf32>
    %343 = arith.mulf %338, %342 : vector<2x8x8xf32>
    %344 = arith.truncf %343 : vector<2x8x8xf32> to vector<2x8x8xbf16>
    "tpu.trace_start"() <{level = 10 : i32, message = "bqk,bkd->bqd"}> : () -> ()
    %cst_137 = arith.constant dense<0.000000e+00> : vector<2x8x8xf32>
    %345 = tpu.matmul %344, %329, %cst_137 {dimension_numbers = #tpu.dot_dimension_numbers<[2], [1], [1], [2], [0, 0, 0, 1, 1, 2], [0], [0]>} : vector<2x8x8xbf16>, vector<2x8x8xbf16>, vector<2x8x8xf32> -> vector<2x8x8xf32>
    "tpu.trace_stop"() : () -> ()
    %346 = vector.shape_cast %345 : vector<2x8x8xf32> to vector<16x8xf32>
    %347 = arith.truncf %346 : vector<16x8xf32> to vector<16x8xbf16>
    %c2_138 = arith.constant 2 : index
    %c1_139 = arith.constant 1 : index
    %c0_140 = arith.constant 0 : index
    %c0_141 = arith.constant 0 : index
    %348 = vector.load %arg4[%c2_138, %c1_139, %c0_140, %c0_141] : memref<3x4x8x32xbf16, #tpu.memory_space<vmem>>, vector<1x1x8x32xbf16>
    %349 = vector.shape_cast %348 : vector<1x1x8x32xbf16> to vector<8x32xbf16>
    %cst_142 = arith.constant dense<0.000000e+00> : vector<16x32xf32>
    %350 = tpu.matmul %347, %349, %cst_142 {dimension_numbers = #tpu.dot_dimension_numbers<[1], [0], [0], [1], [0, 0, 1, 1], [], []>} : vector<16x8xbf16>, vector<8x32xbf16>, vector<16x32xf32> -> vector<16x32xf32>
    %351 = arith.addf %323, %350 : vector<16x32xf32>
    %352 = vector.extract_strided_slice %290 {offsets = [0, 0, 16], sizes = [2, 8, 8], strides = [1, 1, 1]} : vector<2x8x96xf32> to vector<2x8x8xf32>
    %353 = arith.truncf %352 : vector<2x8x8xf32> to vector<2x8x8xbf16>
    %354 = vector.extract_strided_slice %290 {offsets = [0, 0, 48], sizes = [2, 8, 8], strides = [1, 1, 1]} : vector<2x8x96xf32> to vector<2x8x8xf32>
    %355 = arith.truncf %354 : vector<2x8x8xf32> to vector<2x8x8xbf16>
    %356 = vector.extract_strided_slice %290 {offsets = [0, 0, 80], sizes = [2, 8, 8], strides = [1, 1, 1]} : vector<2x8x96xf32> to vector<2x8x8xf32>
    %357 = arith.truncf %356 : vector<2x8x8xf32> to vector<2x8x8xbf16>
    "tpu.trace_start"() <{level = 10 : i32, message = "bqd,bkd->bqk"}> : () -> ()
    %cst_143 = arith.constant dense<0.000000e+00> : vector<2x8x8xf32>
    %358 = tpu.matmul %353, %355, %cst_143 {dimension_numbers = #tpu.dot_dimension_numbers<[2], [2], [1], [1], [0, 0, 0, 1, 1, 1], [0], [0]>} : vector<2x8x8xbf16>, vector<2x8x8xbf16>, vector<2x8x8xf32> -> vector<2x8x8xf32>
    "tpu.trace_stop"() : () -> ()
    %359 = vector.shape_cast %1 : vector<8x8xf32> to vector<1x8x8xf32>
    %360 = vector.broadcast %359 : vector<1x8x8xf32> to vector<2x8x8xf32>
    %361 = arith.addf %358, %360 : vector<2x8x8xf32>
    %cst_144 = arith.constant dense<0xFF800000> : vector<2x8xf32>
    %362 = vector.multi_reduction <maximumf>, %361, %cst_144 [2] : vector<2x8x8xf32> to vector<2x8xf32>
    %363 = vector.shape_cast %362 : vector<2x8xf32> to vector<2x8x1xf32>
    %364 = vector.broadcast %363 : vector<2x8x1xf32> to vector<2x8x8xf32>
    %365 = arith.subf %361, %364 : vector<2x8x8xf32>
    %366 = math.exp %365 : vector<2x8x8xf32>
    %cst_145 = arith.constant dense<0.000000e+00> : vector<2x8xf32>
    %367 = vector.multi_reduction <add>, %366, %cst_145 [2] : vector<2x8x8xf32> to vector<2x8xf32>
    %368 = vector.shape_cast %367 : vector<2x8xf32> to vector<2x8x1xf32>
    %369 = tpu.reciprocal %368 : vector<2x8x1xf32> -> vector<2x8x1xf32>
    %370 = vector.broadcast %369 : vector<2x8x1xf32> to vector<2x8x8xf32>
    %371 = arith.mulf %366, %370 : vector<2x8x8xf32>
    %372 = arith.truncf %371 : vector<2x8x8xf32> to vector<2x8x8xbf16>
    "tpu.trace_start"() <{level = 10 : i32, message = "bqk,bkd->bqd"}> : () -> ()
    %cst_146 = arith.constant dense<0.000000e+00> : vector<2x8x8xf32>
    %373 = tpu.matmul %372, %357, %cst_146 {dimension_numbers = #tpu.dot_dimension_numbers<[2], [1], [1], [2], [0, 0, 0, 1, 1, 2], [0], [0]>} : vector<2x8x8xbf16>, vector<2x8x8xbf16>, vector<2x8x8xf32> -> vector<2x8x8xf32>
    "tpu.trace_stop"() : () -> ()
    %374 = vector.shape_cast %373 : vector<2x8x8xf32> to vector<16x8xf32>
    %375 = arith.truncf %374 : vector<16x8xf32> to vector<16x8xbf16>
    %c2_147 = arith.constant 2 : index
    %c2_148 = arith.constant 2 : index
    %c0_149 = arith.constant 0 : index
    %c0_150 = arith.constant 0 : index
    %376 = vector.load %arg4[%c2_147, %c2_148, %c0_149, %c0_150] : memref<3x4x8x32xbf16, #tpu.memory_space<vmem>>, vector<1x1x8x32xbf16>
    %377 = vector.shape_cast %376 : vector<1x1x8x32xbf16> to vector<8x32xbf16>
    %cst_151 = arith.constant dense<0.000000e+00> : vector<16x32xf32>
    %378 = tpu.matmul %375, %377, %cst_151 {dimension_numbers = #tpu.dot_dimension_numbers<[1], [0], [0], [1], [0, 0, 1, 1], [], []>} : vector<16x8xbf16>, vector<8x32xbf16>, vector<16x32xf32> -> vector<16x32xf32>
    %379 = arith.addf %351, %378 : vector<16x32xf32>
    %380 = vector.extract_strided_slice %290 {offsets = [0, 0, 24], sizes = [2, 8, 8], strides = [1, 1, 1]} : vector<2x8x96xf32> to vector<2x8x8xf32>
    %381 = arith.truncf %380 : vector<2x8x8xf32> to vector<2x8x8xbf16>
    %382 = vector.extract_strided_slice %290 {offsets = [0, 0, 56], sizes = [2, 8, 8], strides = [1, 1, 1]} : vector<2x8x96xf32> to vector<2x8x8xf32>
    %383 = arith.truncf %382 : vector<2x8x8xf32> to vector<2x8x8xbf16>
    %384 = vector.extract_strided_slice %290 {offsets = [0, 0, 88], sizes = [2, 8, 8], strides = [1, 1, 1]} : vector<2x8x96xf32> to vector<2x8x8xf32>
    %385 = arith.truncf %384 : vector<2x8x8xf32> to vector<2x8x8xbf16>
    "tpu.trace_start"() <{level = 10 : i32, message = "bqd,bkd->bqk"}> : () -> ()
    %cst_152 = arith.constant dense<0.000000e+00> : vector<2x8x8xf32>
    %386 = tpu.matmul %381, %383, %cst_152 {dimension_numbers = #tpu.dot_dimension_numbers<[2], [2], [1], [1], [0, 0, 0, 1, 1, 1], [0], [0]>} : vector<2x8x8xbf16>, vector<2x8x8xbf16>, vector<2x8x8xf32> -> vector<2x8x8xf32>
    "tpu.trace_stop"() : () -> ()
    %387 = vector.shape_cast %1 : vector<8x8xf32> to vector<1x8x8xf32>
    %388 = vector.broadcast %387 : vector<1x8x8xf32> to vector<2x8x8xf32>
    %389 = arith.addf %386, %388 : vector<2x8x8xf32>
    %cst_153 = arith.constant dense<0xFF800000> : vector<2x8xf32>
    %390 = vector.multi_reduction <maximumf>, %389, %cst_153 [2] : vector<2x8x8xf32> to vector<2x8xf32>
    %391 = vector.shape_cast %390 : vector<2x8xf32> to vector<2x8x1xf32>
    %392 = vector.broadcast %391 : vector<2x8x1xf32> to vector<2x8x8xf32>
    %393 = arith.subf %389, %392 : vector<2x8x8xf32>
    %394 = math.exp %393 : vector<2x8x8xf32>
    %cst_154 = arith.constant dense<0.000000e+00> : vector<2x8xf32>
    %395 = vector.multi_reduction <add>, %394, %cst_154 [2] : vector<2x8x8xf32> to vector<2x8xf32>
    %396 = vector.shape_cast %395 : vector<2x8xf32> to vector<2x8x1xf32>
    %397 = tpu.reciprocal %396 : vector<2x8x1xf32> -> vector<2x8x1xf32>
    %398 = vector.broadcast %397 : vector<2x8x1xf32> to vector<2x8x8xf32>
    %399 = arith.mulf %394, %398 : vector<2x8x8xf32>
    %400 = arith.truncf %399 : vector<2x8x8xf32> to vector<2x8x8xbf16>
    "tpu.trace_start"() <{level = 10 : i32, message = "bqk,bkd->bqd"}> : () -> ()
    %cst_155 = arith.constant dense<0.000000e+00> : vector<2x8x8xf32>
    %401 = tpu.matmul %400, %385, %cst_155 {dimension_numbers = #tpu.dot_dimension_numbers<[2], [1], [1], [2], [0, 0, 0, 1, 1, 2], [0], [0]>} : vector<2x8x8xbf16>, vector<2x8x8xbf16>, vector<2x8x8xf32> -> vector<2x8x8xf32>
    "tpu.trace_stop"() : () -> ()
    %402 = vector.shape_cast %401 : vector<2x8x8xf32> to vector<16x8xf32>
    %403 = arith.truncf %402 : vector<16x8xf32> to vector<16x8xbf16>
    %c2_156 = arith.constant 2 : index
    %c3_157 = arith.constant 3 : index
    %c0_158 = arith.constant 0 : index
    %c0_159 = arith.constant 0 : index
    %404 = vector.load %arg4[%c2_156, %c3_157, %c0_158, %c0_159] : memref<3x4x8x32xbf16, #tpu.memory_space<vmem>>, vector<1x1x8x32xbf16>
    %405 = vector.shape_cast %404 : vector<1x1x8x32xbf16> to vector<8x32xbf16>
    %cst_160 = arith.constant dense<0.000000e+00> : vector<16x32xf32>
    %406 = tpu.matmul %403, %405, %cst_160 {dimension_numbers = #tpu.dot_dimension_numbers<[1], [0], [0], [1], [0, 0, 1, 1], [], []>} : vector<16x8xbf16>, vector<8x32xbf16>, vector<16x32xf32> -> vector<16x32xf32>
    %407 = arith.addf %379, %406 : vector<16x32xf32>
    %408 = arith.addf %285, %407 : vector<16x32xf32>
    %409 = arith.truncf %408 : vector<16x32xf32> to vector<16x32xbf16>
    %c2_161 = arith.constant 2 : index
    %c0_162 = arith.constant 0 : index
    %c0_163 = arith.constant 0 : index
    %410 = vector.load %arg6[%c2_161, %c0_162, %c0_163] : memref<3x32x128xbf16, #tpu.memory_space<vmem>>, vector<1x32x128xbf16>
    %411 = vector.shape_cast %410 : vector<1x32x128xbf16> to vector<32x128xbf16>
    %cst_164 = arith.constant dense<0.000000e+00> : vector<16x128xf32>
    %412 = tpu.matmul %409, %411, %cst_164 {dimension_numbers = #tpu.dot_dimension_numbers<[1], [0], [0], [1], [0, 0, 1, 1], [], []>} : vector<16x32xbf16>, vector<32x128xbf16>, vector<16x128xf32> -> vector<16x128xf32>
    %c2_165 = arith.constant 2 : index
    %c0_166 = arith.constant 0 : index
    %c0_167 = arith.constant 0 : index
    %413 = vector.load %arg7[%c2_165, %c0_166, %c0_167] : memref<3x1x128xf32, #tpu.memory_space<vmem>>, vector<1x1x128xf32>
    %414 = vector.shape_cast %413 : vector<1x1x128xf32> to vector<1x128xf32>
    %415 = vector.broadcast %414 : vector<1x128xf32> to vector<16x128xf32>
    %416 = arith.addf %412, %415 : vector<16x128xf32>
    %cst_168 = arith.constant 0.000000e+00 : f32
    %417 = vector.broadcast %cst_168 : f32 to vector<16x128xf32>
    %418 = arith.maximumf %416, %417 : vector<16x128xf32>
    %419 = arith.truncf %418 : vector<16x128xf32> to vector<16x128xbf16>
    %c2_169 = arith.constant 2 : index
    %c0_170 = arith.constant 0 : index
    %c0_171 = arith.constant 0 : index
    %420 = vector.load %arg8[%c2_169, %c0_170, %c0_171] : memref<3x128x32xbf16, #tpu.memory_space<vmem>>, vector<1x128x32xbf16>
    %421 = vector.shape_cast %420 : vector<1x128x32xbf16> to vector<128x32xbf16>
    %cst_172 = arith.constant dense<0.000000e+00> : vector<16x32xf32>
    %422 = tpu.matmul %419, %421, %cst_172 {dimension_numbers = #tpu.dot_dimension_numbers<[1], [0], [0], [1], [0, 0, 1, 1], [], []>} : vector<16x128xbf16>, vector<128x32xbf16>, vector<16x32xf32> -> vector<16x32xf32>
    %c2_173 = arith.constant 2 : index
    %c0_174 = arith.constant 0 : index
    %c0_175 = arith.constant 0 : index
    %423 = vector.load %arg9[%c2_173, %c0_174, %c0_175] : memref<3x1x32xf32, #tpu.memory_space<vmem>>, vector<1x1x32xf32>
    %424 = vector.shape_cast %423 : vector<1x1x32xf32> to vector<1x32xf32>
    %425 = vector.broadcast %424 : vector<1x32xf32> to vector<16x32xf32>
    %426 = arith.addf %422, %425 : vector<16x32xf32>
    %427 = arith.addf %408, %426 : vector<16x32xf32>
    %428 = arith.truncf %427 : vector<16x32xf32> to vector<16x32xbf16>
    %c0_176 = arith.constant 0 : index
    %c0_177 = arith.constant 0 : index
    %429 = vector.load %arg10[%c0_176, %c0_177] : memref<32x128xbf16, #tpu.memory_space<vmem>>, vector<32x128xbf16>
    %cst_178 = arith.constant dense<0.000000e+00> : vector<16x128xf32>
    %430 = tpu.matmul %428, %429, %cst_178 {dimension_numbers = #tpu.dot_dimension_numbers<[1], [0], [0], [1], [0, 0, 1, 1], [], []>} : vector<16x32xbf16>, vector<32x128xbf16>, vector<16x128xf32> -> vector<16x128xf32>
    %c0_179 = arith.constant 0 : index
    %c0_180 = arith.constant 0 : index
    %431 = vector.load %arg11[%c0_179, %c0_180] : memref<1x128xf32, #tpu.memory_space<vmem>>, vector<1x128xf32>
    %432 = vector.broadcast %431 : vector<1x128xf32> to vector<16x128xf32>
    %433 = arith.addf %430, %432 : vector<16x128xf32>
    %c0_181 = arith.constant 0 : index
    %c0_182 = arith.constant 0 : index
    %434 = vector.load %arg12[%c0_181, %c0_182] : memref<16x128xf32, #tpu.memory_space<vmem>>, vector<16x128xf32>
    tpu.vector_store %arg12[%c0_181, %c0_182], %433 {strides = array<i32>} : memref<16x128xf32, #tpu.memory_space<vmem>>, vector<16x128xf32>,
    return
  }
  func.func @transform_0(%arg0: i32) -> (i32, i32) {
    %c0_i32 = arith.constant 0 : i32
    %c0_i32_0 = arith.constant 0 : i32
    return %arg0, %c0_i32 : i32, i32
  }
  func.func @transform_1(%arg0: i32) -> (i32, i32) {
    %c0_i32 = arith.constant 0 : i32
    %c0_i32_0 = arith.constant 0 : i32
    %c0_i32_1 = arith.constant 0 : i32
    return %c0_i32, %c0_i32_0 : i32, i32
  }
  func.func @transform_2(%arg0: i32) -> (i32, i32, i32) {
    %c0_i32 = arith.constant 0 : i32
    %c0_i32_0 = arith.constant 0 : i32
    %c0_i32_1 = arith.constant 0 : i32
    %c0_i32_2 = arith.constant 0 : i32
    return %c0_i32, %c0_i32_0, %c0_i32_1 : i32, i32, i32
  }
  func.func @transform_3(%arg0: i32) -> (i32, i32, i32, i32) {
    %c0_i32 = arith.constant 0 : i32
    %c0_i32_0 = arith.constant 0 : i32
    %c0_i32_1 = arith.constant 0 : i32
    %c0_i32_2 = arith.constant 0 : i32
    %c0_i32_3 = arith.constant 0 : i32
    return %c0_i32, %c0_i32_0, %c0_i32_1, %c0_i32_2 : i32, i32, i32, i32
  }
  func.func @transform_4(%arg0: i32) -> (i32, i32, i32) {
    %c0_i32 = arith.constant 0 : i32
    %c0_i32_0 = arith.constant 0 : i32
    %c0_i32_1 = arith.constant 0 : i32
    %c0_i32_2 = arith.constant 0 : i32
    return %c0_i32, %c0_i32_0, %c0_i32_1 : i32, i32, i32
  }
  func.func @transform_5(%arg0: i32) -> (i32, i32, i32) {
    %c0_i32 = arith.constant 0 : i32
    %c0_i32_0 = arith.constant 0 : i32
    %c0_i32_1 = arith.constant 0 : i32
    %c0_i32_2 = arith.constant 0 : i32
    return %c0_i32, %c0_i32_0, %c0_i32_1 : i32, i32, i32
  }
  func.func @transform_6(%arg0: i32) -> (i32, i32, i32) {
    %c0_i32 = arith.constant 0 : i32
    %c0_i32_0 = arith.constant 0 : i32
    %c0_i32_1 = arith.constant 0 : i32
    %c0_i32_2 = arith.constant 0 : i32
    return %c0_i32, %c0_i32_0, %c0_i32_1 : i32, i32, i32
  }
  func.func @transform_7(%arg0: i32) -> (i32, i32, i32) {
    %c0_i32 = arith.constant 0 : i32
    %c0_i32_0 = arith.constant 0 : i32
    %c0_i32_1 = arith.constant 0 : i32
    %c0_i32_2 = arith.constant 0 : i32
    return %c0_i32, %c0_i32_0, %c0_i32_1 : i32, i32, i32
  }
  func.func @transform_8(%arg0: i32) -> (i32, i32, i32) {
    %c0_i32 = arith.constant 0 : i32
    %c0_i32_0 = arith.constant 0 : i32
    %c0_i32_1 = arith.constant 0 : i32
    %c0_i32_2 = arith.constant 0 : i32
    return %c0_i32, %c0_i32_0, %c0_i32_1 : i32, i32, i32
  }
  func.func @transform_9(%arg0: i32) -> (i32, i32) {
    %c0_i32 = arith.constant 0 : i32
    %c0_i32_0 = arith.constant 0 : i32
    %c0_i32_1 = arith.constant 0 : i32
    return %c0_i32, %c0_i32_0 : i32, i32
  }
  func.func @transform_10(%arg0: i32) -> (i32, i32) {
    %c0_i32 = arith.constant 0 : i32
    %c0_i32_0 = arith.constant 0 : i32
    %c0_i32_1 = arith.constant 0 : i32
    return %c0_i32, %c0_i32_0 : i32, i32
  }
  func.func @transform_11(%arg0: i32) -> (i32, i32) {
    %c0_i32 = arith.constant 0 : i32
    %c0_i32_0 = arith.constant 0 : i32
    return %arg0, %c0_i32 : i32, i32
  }
}

</mosaic_0001>

<bundles_post_ra>
// kernel: run_model.1
= control target key start
LH: loop header
LB: loop body
LE: loop exit
PB: predicated region body
PF: predicated region fallthrough
CT: control target
= control target key end

     0   :  { %vm59_vm0 = vcmask 261120   ;;  %s3007_s25 = smov 96   ;;  %s3009_s26 = smov 120   ;;  %vm89_vm1 = vcmask 64512   ;;  %vm188_vm2 = vcmask 1043456   ;;  %s3722_s2 = inlined_call_operand.vmem [shape: bf16[3,32,96], index: 2, kind: input, shape index: {}]   ;;  %s3723_s0 = inlined_call_operand.vmem [shape: f32[16,32], index: 0, kind: input, shape index: {}]   ;;  %s3724_s1 = inlined_call_operand.vmem [shape: f32[8,8], index: 1, kind: input, shape index: {}]   ;;  %s3725_s3 = inlined_call_operand.vmem [shape: bf16[3,4,8,32], index: 3, kind: input, shape index: {}]   ;;  %s3726_s4 = inlined_call_operand.vmem [shape: f32[3,1,32], index: 4, kind: input, shape index: {}]   ;;  %s3727_s6 = inlined_call_operand.vmem [shape: f32[3,1,128], index: 6, kind: input, shape index: {}]   ;;  %s3728_s5 = inlined_call_operand.vmem [shape: bf16[3,32,128], index: 5, kind: input, shape index: {}]   ;;  %s3729_s7 = inlined_call_operand.vmem [shape: bf16[3,128,32], index: 7, kind: input, shape index: {}]   ;;  %s3730_s8 = inlined_call_operand.vmem [shape: f32[3,1,32], index: 8, kind: input, shape index: {}]   ;;  %s3731_s10 = inlined_call_operand.vmem [shape: f32[1,128], index: 10, kind: input, shape index: {}]   ;;  %s3732_s9 = inlined_call_operand.vmem [shape: bf16[32,128], index: 9, kind: input, shape index: {}]   ;;  %s3733_s11 = inlined_call_operand.vmem [shape: f32[16,128], index: 11, kind: output, shape index: {}]  }
   0x1   :  { %v2851_v0 = vld [vmem:[%s3722_s2 + $0x8] sm:$0xff]  ;;  %v2850_v1 = vld [vmem:[%s3722_s2] sm:$0xff]  ;;  %s3010_s27 = smov 88   ;;  %s3011_s30 = smov 112  }
   0x2   :  { %69 = vmatpush.bf16.msra.mxu0 %v2851_v0  ;;  %v3087_v2 = vld [vmem:[%s3723_s0] sm:$0xff]  ;;  %v3092_v3 = vld [vmem:[%s3723_s0 + $0x8] sm:$0xff]  ;;  %s3008_s0 = smov 64   ;;  %s3012_s12 = smov 56  }
   0x3   :  { %v42_v4 = vpack.c.bf16 %v3092_v3, %v3087_v2  ;;  %v3125_v23 = vld [vmem:[%s3724_s1] sm:$0xff]  ;;  %s3013_s13 = smov 80   ;;  %s3014_s14 = smov 72  }
   0x4   :  { %s3015_s15 = smov 48   ;;  %v2584_v51 = vld [vmem:[%s3725_s3 + $0x4] sm:$0xf]  ;;  %s3736_s20 = smov 104  }
   0x5   :  { %v395_v52 = vsel %vm188_vm2, %v2584_v51, 0  ;;  %s3734_s23 = smov 40   ;;  %s3738_s24 = smov 40  }
   0x6   :  { %70 = vmatpush.bf16.msra.mxu0 %v2850_v1 }
   0x9   :  { %2574 = vmatmul.msk.bf16.vlgmr.msra.gmra.mxu0 %vm59_vm0, %v42_v4 }
  0x86   :  { %v72_v5 = vpop.f32.mrf.mxu0 }
  0x87   :  { %v82_v6 = vpack.c.bf16 %v72_v5, %v72_v5 }
  0x89   :  { %v85_v7 = vunpack.c.l.b16 %v82_v6 }
  0x8b   :  { %v3097_v8 = vpack.c.b16 %v85_v7, %v85_v7 }
  0x8d   :  { %87 = vrot.lane.b32.xlu0 %v3097_v8, %s3007_s25 }
  0x8e   :  { %v74_v9 = vpop.f32.mrf.mxu0 }
  0x8f   :  { %v83_v10 = vpack.c.bf16 %v74_v9, %v74_v9 }
  0x91   :  { %v110_v11 = vunpack.c.l.b16 %v83_v10 }
  0x93   :  { %v3101_v12 = vpack.c.b16 %v110_v11, %v110_v11 }
  0x95   :  { %112 = vrot.lane.b32.xlu0 %v3101_v12, %s3007_s25 }
  0x9d   :  { %183 = vrot.lane.b32.xlu0 %v3097_v8, %s3008_s0 }
  0xa5   :  { %250 = vrot.lane.b32.xlu0 %v3097_v8, %s3009_s26 }
  0xad   :  { %275 = vrot.lane.b32.xlu0 %v3101_v12, %s3010_s27 }
  0xb5   :  { %273 = vrot.lane.b32.xlu0 %v3101_v12, %s3009_s26 }
  0xff   :  { %v88_v13 = vpop.permute.xlu0 %87 }
 0x100   :  { %v94_v14 = vsel %vm89_vm1, %v88_v13, 0 }
 0x101   :  { %103 = vmatpush.bf16.xpose.msra.mxu1 %v94_v14 }
 0x107   :  { %v113_v15 = vpop.permute.xlu0 %112 }
 0x108   :  { %2575 = vmatmul.msk.bf16.vlgmr.msra.gmra.mxu1 %vm89_vm1, %v82_v6  ;;  %v118_v16 = vsel %vm89_vm1, %v113_v15, 0 }
 0x109   :  { %127 = vmatpush.bf16.xpose.msra.mxu2 %v118_v16  ;;  %404 = vmatpush.bf16.msrb.mxu1 %v395_v52 }
 0x10f   :  { %v184_v17 = vpop.permute.xlu0 %183 }
 0x110   :  { %2576 = vmatmul.msk.bf16.vlgmr.msra.gmra.mxu2 %vm89_vm1, %v83_v10  ;;  %v190_v18 = vsel %vm188_vm2, %v184_v17, 0 }
 0x111   :  { %199 = vmatpush.bf16.msra.mxu3 %v190_v18 }
 0x117   :  { %v3118_v19 = vpop.permute.xlu0 %250 }
 0x11f   :  { %v276_v20 = vpop.permute.xlu0 %275 }
 0x120   :  { %v281_v21 = vsel %vm89_vm1, %v276_v20, 0 }
 0x121   :  { %290 = vmatpush.bf16.xpose.msrb.mxu2 %v281_v21 }
 0x127   :  { %v274_v22 = vpop.permute.xlu0 %273 }
 0x128   :  { %2581 = vmatmul.msk.bf16.vlgmr.msrb.gmra.mxu2 %vm89_vm1, %v274_v22 }
 0x185   :  { %v105_v24 = vpop.f32.mrf.mxu1 }
 0x186   :  { %v106_v25 = vadd.f32 %v105_v24, %v3125_v23 }
 0x188   :  { %v133_v26 = vsel %vm89_vm1, %v106_v25, -inf }
 0x189   :  { %134 = vmax.xlane.f32.xlu1 %v133_v26 }
 0x18d   :  { %v107_v27 = vpop.f32.mrf.mxu1 }
 0x193   :  { %v129_v28 = vpop.f32.mrf.mxu2 }
 0x194   :  { %v130_v29 = vadd.f32 %v129_v28, %v3125_v23 }
 0x196   :  { %v136_v30 = vsel %vm89_vm1, %v130_v29, -inf }
 0x197   :  { %137 = vmax.xlane.f32.xlu1 %v136_v30 }
 0x19b   :  { %v131_v31 = vpop.f32.mrf.mxu2 }
 0x1ab   :  { %v292_v32 = vpop.f32.mrf.mxu2 }
 0x1ac   :  { %v3142_v34 = vadd.f32 %v292_v32, %v3125_v23  ;;  %v227_v32 = vld [vmem:[%s3725_s3] sm:$0xf] }
 0x1ae   :  { %v299_v35 = vsel %vm89_vm1, %v3142_v34, -inf }
 0x1b0   :  { %205 = vrot.lane.b32.xlu1 %v3101_v12, %s3008_s0 }
 0x1b3   :  { %v294_v33 = vpop.f32.mrf.mxu2 }
 0x1b4   :  { %v232_v33 = vsel %vm188_vm2, %v227_v32, 0 }
 0x1b5   :  { %241 = vmatpush.bf16.msrb.mxu0 %v232_v33 }
 0x1b8   :  { %413 = vrot.lane.b32.xlu1 %v3097_v8, %s3011_s30 }
 0x1c0   :  { %346 = vrot.lane.b32.xlu1 %v3097_v8, %s3012_s12 }
 0x1c8   :  { %438 = vrot.lane.b32.xlu1 %v3101_v12, %s3013_s13 }
 0x1d0   :  { %436 = vrot.lane.b32.xlu1 %v3101_v12, %s3011_s30 }
 0x1fa   :  { %300 = vmax.xlane.f32.xlu1 %v299_v35 }
 0x1fc   :  { %v135_v36 = vpop.xlane.xlu1 %134 }
 0x1fd   :  { %v139_v37 = vsub.f32 %v106_v25, %v135_v36 }
 0x1ff   :  { %v141_v38 = vmul.f32 1.442695, %v139_v37 }
 0x201   :  { %2909 = vpow2.f32 %v141_v38 }
 0x207   :  { %v2910_v39 = vpop.eup %2909 }
 0x208   :  { %v145_v40 = vsel %vm89_vm1, %v2910_v39, 0.0 }
 0x209   :  { %146 = vadd.xlane.f32.xlu2 %v145_v40 }
 0x20a   :  { %v138_v41 = vpop.xlane.xlu1 %137 }
 0x20b   :  { %v140_v42 = vsub.f32 %v130_v29, %v138_v41 }
 0x20d   :  { %v143_v43 = vmul.f32 1.442695, %v140_v42 }
 0x20f   :  { %2911 = vpow2.f32 %v143_v43 }
 0x213   :  { %578 = vrot.lane.b32.xlu1 %v3097_v8, %s3014_s14 }
 0x215   :  { %v3149_v44 = vpop.eup %2911 }
 0x216   :  { %v148_v45 = vsel %vm89_vm1, %v3149_v44, 0.0 }
 0x217   :  { %149 = vadd.xlane.f32.xlu2 %v148_v45 }
 0x21b   :  { %530 = vrot.lane.b32.xlu1 %v3101_v12, %s3015_s15 }
 0x222   :  { %v206_v46 = vpop.permute.xlu1 %205 }
 0x223   :  { %v211_v47 = vsel %vm188_vm2, %v206_v46, 0 }
 0x224   :  { %220 = vmatpush.bf16.msrb.mxu3 %v211_v47 }
 0x22a   :  { %v414_v48 = vpop.permute.xlu1 %413 }
 0x22f   :  { %252 = vrot.lane.b32.xlu2 %v3097_v8, %s3010_s27 }
 0x232   :  { %v347_v49 = vpop.permute.xlu1 %346 }
 0x233   :  { %v352_v30 = vsel %vm188_vm2, %v347_v49, 0 }
 0x237   :  { %415 = vrot.lane.b32.xlu2 %v3097_v8, %s3013_s13 }
 0x23a   :  { %v439_v50 = vpop.permute.xlu1 %438 }
 0x23b   :  { %v444_v31 = vsel %vm89_vm1, %v439_v50, 0 }
 0x242   :  { %v3164_v53 = vpop.permute.xlu1 %436 }
 0x26d   :  { %v3166_v55 = vpop.xlane.xlu1 %300 }
 0x27c   :  { %v147_v54 = vpop.xlane.xlu2 %146 }
 0x27d   :  { %2913 = vrcp.f32 %v147_v54  ;;  %v162_v60 = vand.u32 2147483648, %v147_v54  ;;  %v160_v62 = vand.u32 2147483647, %v147_v54  ;;  %vm156_vm4 = vweird.f32 %v147_v54 }
 0x27f   :  { %v163_v1 = vor.u32 1.1754944e-38, %v162_v60  ;;  %vm161_vm6 = vcmp.eq.f32.partialorder %v160_v62, 8.507059e+37 }
 0x283   :  { %v2914_v56 = vpop.eup %2913 }
 0x284   :  { %v152_v57 = vmul.f32 %v2914_v56, %v147_v54  ;;  %vm157_vm3 = vweird.f32 %v2914_v56 }
 0x285   :  { %v3168_v58 = vpop.permute.xlu1 %578  ;;  %vm158_vm5 = vmor %vm156_vm4, %vm157_vm3 }
 0x286   :  { %v153_v59 = vsub.f32 1.0, %v152_v57  ;;  %v584_v32 = vsel %vm89_vm1, %v3168_v58, 0 }
 0x288   :  { %v154_v61 = vmul.f32 %v2914_v56, %v153_v59 }
 0x28a   :  { %v150_v63 = vpop.xlane.xlu2 %149  ;;  %v155_v0 = vadd.f32 %v2914_v56, %v154_v61 }
 0x28b   :  { %2915 = vrcp.f32 %v150_v63  ;;  %v176_v17 = vand.u32 2147483648, %v150_v63  ;;  %v174_v20 = vand.u32 2147483647, %v150_v63  ;;  %vm170_vm8 = vweird.f32 %v150_v63 }
 0x28c   :  { %v159_v4 = vsel %vm158_vm5, %v2914_v56, %v155_v0 }
 0x28d   :  { %v531_v5 = vpop.permute.xlu1 %530  ;;  %v164_v6 = vsel %vm161_vm6, %v163_v1, %v159_v4  ;;  %v177_v22 = vor.u32 1.1754944e-38, %v176_v17  ;;  %vm175_vm10 = vcmp.eq.f32.partialorder %v174_v20, 8.507059e+37 }
 0x28e   :  { %v536_v7 = vsel %vm188_vm2, %v531_v5, 0  ;;  %v179_v9 = vmul.f32 %v2910_v39, %v164_v6 }
 0x28f   :  { %545 = vmatpush.bf16.msra.mxu1 %v536_v7 }
 0x290   :  { %v181_v10 = vpack.c.bf16 %v179_v9, %v179_v9 }
 0x291   :  { %v2916_v11 = vpop.eup %2915 }
 0x292   :  { %v166_v13 = vmul.f32 %v2916_v11, %v150_v63  ;;  %v253_v14 = vpop.permute.xlu2 %252  ;;  %2577 = vmatmul.msk.bf16.vlgmr.msra.gmra.mxu3 %vm89_vm1, %v181_v10  ;;  %vm171_vm7 = vweird.f32 %v2916_v11 }
 0x293   :  { %v258_v15 = vsel %vm89_vm1, %v253_v14, 0  ;;  %vm172_vm9 = vmor %vm170_vm8, %vm171_vm7 }
 0x294   :  { %v167_v16 = vsub.f32 1.0, %v166_v13  ;;  %267 = vmatpush.bf16.xpose.msra.mxu3 %v258_v15 }
 0x296   :  { %v168_v18 = vmul.f32 %v2916_v11, %v167_v16 }
 0x298   :  { %v169_v21 = vadd.f32 %v2916_v11, %v168_v18 }
 0x29a   :  { %v416_v24 = vpop.permute.xlu2 %415  ;;  %v173_v25 = vsel %vm172_vm9, %v2916_v11, %v169_v21 }
 0x29b   :  { %v421_v26 = vsel %vm89_vm1, %v416_v24, 0  ;;  %v178_v27 = vsel %vm175_vm10, %v177_v22, %v173_v25 }
 0x29c   :  { %430 = vmatpush.bf16.xpose.msra.mxu2 %v421_v26  ;;  %v180_v28 = vmul.f32 %v3149_v44, %v178_v27 }
 0x29e   :  { %v182_v29 = vpack.c.bf16 %v180_v28, %v180_v28 }
 0x2a2   :  { %2578 = vmatmul.msk.bf16.vlgmr.msrb.gmra.mxu3 %vm89_vm1, %v182_v29 }
 0x2a3   :  { %361 = vmatpush.bf16.msrb.mxu3 %v352_v30  ;;  %2586 = vmatmul.msk.bf16.vlgmr.msra.gmra.mxu2 %vm89_vm1, %v414_v48 }
 0x2b2   :  { %2580 = vmatmul.msk.bf16.vlgmr.msra.gmra.mxu3 %vm89_vm1, %v3118_v19  ;;  %v303_v19 = vsub.f32 %v3142_v34, %v3166_v55 }
 0x2b3   :  { %453 = vmatpush.bf16.xpose.msra.mxu3 %v444_v31 }
 0x2b4   :  { %v306_v42 = vmul.f32 1.442695, %v303_v19 }
 0x2b6   :  { %2917 = vpow2.f32 %v306_v42 }
 0x2bc   :  { %v2918_v46 = vpop.eup %2917 }
 0x2bd   :  { %v311_v48 = vsel %vm89_vm1, %v2918_v46, 0.0 }
 0x315   :  { %v201_v35 = vpop.f32.mrf.mxu3 }
 0x31d   :  { %v203_v36 = vpop.f32.mrf.mxu3 }
 0x325   :  { %v222_v37 = vpop.f32.mrf.mxu3 }
 0x326   :  { %v226_v38 = vpack.c.bf16 %v222_v37, %v201_v35  ;;  %v432_v39 = vpop.f32.mrf.mxu2 }
 0x327   :  { %v433_v54 = vadd.f32 %v432_v39, %v3125_v23 }
 0x328   :  { %2579 = vmatmul.msk.bf16.vlgmr.msrb.gmra.mxu0 %vm89_vm1, %v226_v38 }
 0x329   :  { %v459_v55 = vsel %vm89_vm1, %v433_v54, -inf }
 0x32d   :  { %v224_v40 = vpop.f32.mrf.mxu3 }
 0x32e   :  { %v434_v41 = vpop.f32.mrf.mxu2 }
 0x335   :  { %v269_v43 = vpop.f32.mrf.mxu3 }
 0x336   :  { %v270_v44 = vadd.f32 %v269_v43, %v3125_v23 }
 0x338   :  { %v296_v45 = vsel %vm89_vm1, %v270_v44, -inf }
 0x339   :  { %297 = vmax.xlane.f32.xlu0 %v296_v45 }
 0x33d   :  { %v271_v47 = vpop.f32.mrf.mxu3 }
 0x341   :  { %312 = vadd.xlane.f32.xlu0 %v311_v48 }
 0x3a5   :  { %v243_v33 = vpop.f32.mrf.mxu0 }
 0x3ac   :  { %v298_v49 = vpop.xlane.xlu0 %297 }
 0x3ad   :  { %v302_v50 = vsub.f32 %v270_v44, %v298_v49  ;;  %v3212_v36 = vpop.f32.mrf.mxu0 }
 0x3af   :  { %v304_v51 = vmul.f32 1.442695, %v302_v50 }
 0x3b1   :  { %2919 = vpow2.f32 %v304_v51 }
 0x3b4   :  { %v313_v56 = vpop.xlane.xlu0 %312 }
 0x3b5   :  { %2921 = vrcp.f32 %v313_v56  ;;  %v339_v0 = vand.u32 2147483648, %v313_v56  ;;  %vm333_vm12 = vweird.f32 %v313_v56  ;;  %v337_v4 = vand.u32 2147483647, %v313_v56 }
 0x3b7   :  { %v2920_v52 = vpop.eup %2919  ;;  %v340_v10 = vor.u32 1.1754944e-38, %v339_v0  ;;  %vm338_vm14 = vcmp.eq.f32.partialorder %v337_v4, 8.507059e+37 }
 0x3b8   :  { %v308_v34 = vsel %vm89_vm1, %v2920_v52, 0.0 }
 0x3b9   :  { %309 = vadd.xlane.f32.xlu2 %v308_v34 }
 0x3bb   :  { %v2922_v57 = vpop.eup %2921 }
 0x3bc   :  { %v329_v59 = vmul.f32 %v2922_v57, %v313_v56  ;;  %vm334_vm11 = vweird.f32 %v2922_v57 }
 0x3bd   :  { %vm335_vm13 = vmor %vm333_vm12, %vm334_vm11 }
 0x3be   :  { %v330_v60 = vsub.f32 1.0, %v329_v59 }
 0x3c0   :  { %v331_v62 = vmul.f32 %v2922_v57, %v330_v60 }
 0x3c1   :  { %460 = vmax.xlane.f32.xlu2 %v459_v55 }
 0x3c2   :  { %v332_v63 = vadd.f32 %v2922_v57, %v331_v62  ;;  %v3225_v62 = vld [vmem:[%s3726_s4] ss:$0 sm:$0xff] }
 0x3c4   :  { %v336_v7 = vsel %vm335_vm13, %v2922_v57, %v332_v63  ;;  %v248_v63 = vadd.f32 %v3225_v62, %v243_v33 }
 0x3c5   :  { %v341_v15 = vsel %vm338_vm14, %v340_v10, %v336_v7 }
 0x3c6   :  { %v343_v20 = vmul.f32 %v2918_v46, %v341_v15 }
 0x3c8   :  { %v345_v29 = vpack.c.bf16 %v343_v20, %v343_v20 }
 0x3d9   :  { %367 = vrot.lane.b32.xlu2 %v3101_v12, %s3012_s12 }
 0x3e1   :  { %601 = vrot.lane.b32.xlu2 %v3101_v12, %s3014_s14 }
 0x3e9   :  { %599 = vrot.lane.b32.xlu2 %v3101_v12, %s3736_s20 }
 0x42c   :  { %v310_v61 = vpop.xlane.xlu2 %309 }
 0x42d   :  { %2923 = vrcp.f32 %v310_v61  ;;  %v325_v13 = vand.u32 2147483648, %v310_v61  ;;  %v323_v17 = vand.u32 2147483647, %v310_v61  ;;  %vm319_vm3 = vweird.f32 %v310_v61 }
 0x42f   :  { %v326_v21 = vor.u32 1.1754944e-38, %v325_v13  ;;  %vm324_vm5 = vcmp.eq.f32.partialorder %v323_v17, 8.507059e+37 }
 0x433   :  { %v2924_v1 = vpop.eup %2923 }
 0x434   :  { %v315_v5 = vmul.f32 %v2924_v1, %v310_v61  ;;  %v461_v6 = vpop.xlane.xlu2 %460  ;;  %vm320_vm15 = vweird.f32 %v2924_v1 }
 0x435   :  { %v465_v9 = vsub.f32 %v433_v54, %v461_v6  ;;  %vm321_vm4 = vmor %vm319_vm3, %vm320_vm15 }
 0x436   :  { %v316_v11 = vsub.f32 1.0, %v315_v5 }
 0x437   :  { %v467_v14 = vmul.f32 1.442695, %v465_v9 }
 0x438   :  { %v317_v16 = vmul.f32 %v2924_v1, %v316_v11 }
 0x439   :  { %2925 = vpow2.f32 %v467_v14 }
 0x43a   :  { %v318_v18 = vadd.f32 %v2924_v1, %v317_v16 }
 0x43c   :  { %v322_v22 = vsel %vm321_vm4, %v2924_v1, %v318_v18  ;;  %v368_v24 = vpop.permute.xlu2 %367 }
 0x43d   :  { %v327_v25 = vsel %vm324_vm5, %v326_v21, %v322_v22  ;;  %v373_v26 = vsel %vm188_vm2, %v368_v24, 0 }
 0x43e   :  { %v342_v27 = vmul.f32 %v2920_v52, %v327_v25  ;;  %382 = vmatpush.bf16.msra.mxu0 %v373_v26 }
 0x43f   :  { %v2926_v28 = vpop.eup %2925 }
 0x440   :  { %v471_v30 = vsel %vm89_vm1, %v2926_v28, 0.0  ;;  %v344_v31 = vpack.c.bf16 %v342_v27, %v342_v27 }
 0x441   :  { %472 = vadd.xlane.f32.xlu0 %v471_v30  ;;  %2583 = vmatmul.msk.bf16.vlgmr.msra.gmra.mxu0 %vm89_vm1, %v345_v29 }
 0x442   :  { %2582 = vmatmul.msk.bf16.vlgmr.msrb.gmra.mxu3 %vm89_vm1, %v344_v31 }
 0x443   :  { %593 = vmatpush.bf16.xpose.msrb.mxu3 %v584_v32 }
 0x444   :  { %v602_v46 = vpop.permute.xlu2 %601 }
 0x445   :  { %v607_v52 = vsel %vm89_vm1, %v602_v46, 0  ;;  %v2590_v46 = vld [vmem:[%s3725_s3 + $0x8] sm:$0xf] }
 0x44c   :  { %v600_v60 = vpop.permute.xlu2 %599 }
 0x452   :  { %2587 = vmatmul.msk.bf16.vlgmr.msra.gmra.mxu3 %vm89_vm1, %v3164_v53 }
 0x455   :  { %509 = vrot.lane.b32.xlu0 %v3097_v8, %s3015_s15 }
 0x45d   :  { %576 = vrot.lane.b32.xlu0 %v3097_v8, %s3736_s20 }
 0x4b4   :  { %v473_v35 = vpop.xlane.xlu0 %472 }
 0x4b5   :  { %2927 = vrcp.f32 %v473_v35  ;;  %v488_v40 = vand.u32 2147483648, %v473_v35  ;;  %v486_v19 = vand.u32 2147483647, %v473_v35  ;;  %vm482_vm7 = vweird.f32 %v473_v35 }
 0x4b7   :  { %v489_v42 = vor.u32 1.1754944e-38, %v488_v40  ;;  %vm487_vm9 = vcmp.eq.f32.partialorder %v486_v19, 8.507059e+37 }
 0x4bb   :  { %v2928_v37 = vpop.eup %2927 }
 0x4bc   :  { %v478_v38 = vmul.f32 %v2928_v37, %v473_v35  ;;  %vm483_vm6 = vweird.f32 %v2928_v37 }
 0x4bd   :  { %vm484_vm8 = vmor %vm482_vm7, %vm483_vm6 }
 0x4be   :  { %v479_v58 = vsub.f32 1.0, %v478_v38  ;;  %v384_v39 = vpop.f32.mrf.mxu0 }
 0x4c0   :  { %v480_v41 = vmul.f32 %v2928_v37, %v479_v58 }
 0x4c2   :  { %v481_v53 = vadd.f32 %v2928_v37, %v480_v41 }
 0x4c4   :  { %v485_v43 = vsel %vm484_vm8, %v2928_v37, %v481_v53 }
 0x4c5   :  { %v490_v44 = vsel %vm487_vm9, %v489_v42, %v485_v43  ;;  %v363_v45 = vpop.f32.mrf.mxu3 }
 0x4c6   :  { %v505_v47 = vmul.f32 %v2926_v28, %v490_v44  ;;  %v388_v48 = vpack.c.bf16 %v384_v39, %v363_v45  ;;  %v386_v49 = vpop.f32.mrf.mxu0 }
 0x4c7   :  { %v510_v50 = vpop.permute.xlu0 %509 }
 0x4c8   :  { %v515_v51 = vsel %vm188_vm2, %v510_v50, 0  ;;  %2585 = vmatmul.msk.bf16.vlgmr.msrb.gmra.mxu1 %vm89_vm1, %v388_v48  ;;  %v507_v34 = vpack.c.bf16 %v505_v47, %v505_v47  ;;  %v558_v47 = vsel %vm188_vm2, %v2590_v46, 0 }
 0x4c9   :  { %524 = vmatpush.bf16.msrb.mxu0 %v515_v51  ;;  %567 = vmatpush.bf16.msrb.mxu2 %v558_v47  ;;  %v2857_v47 = vld [vmem:[%s3729_s7 + $0x18] sm:$0xff] }
 0x4cc   :  { %2588 = vmatmul.msk.bf16.vlgmr.msrb.gmra.mxu0 %vm89_vm1, %v507_v34 }
 0x4cd   :  { %616 = vmatpush.bf16.xpose.msra.mxu0 %v607_v52  ;;  %v365_v54 = vpop.f32.mrf.mxu3 }
 0x4cf   :  { %v577_v55 = vpop.permute.xlu0 %576 }
 0x4d0   :  { %2592 = vmatmul.msk.bf16.vlgmr.msrb.gmra.mxu3 %vm89_vm1, %v577_v55 }
 0x4d5   :  { %v455_v56 = vpop.f32.mrf.mxu3 }
 0x4d6   :  { %v456_v57 = vadd.f32 %v455_v56, %v3125_v23 }
 0x4d8   :  { %v462_v59 = vsel %vm89_vm1, %v456_v57, -inf }
 0x4d9   :  { %463 = vmax.xlane.f32.xlu0 %v462_v59 }
 0x4dc   :  { %2593 = vmatmul.msk.bf16.vlgmr.msra.gmra.mxu0 %vm89_vm1, %v600_v60 }
 0x4dd   :  { %v457_v61 = vpop.f32.mrf.mxu3 }
 0x545   :  { %v406_v0 = vpop.f32.mrf.mxu1 }
 0x546   :  { %v3228_v1 = vadd.f32 %v406_v0, %v248_v63 }
 0x549   :  { %v3230_v4 = vpop.f32.mrf.mxu0 }
 0x54c   :  { %v464_v5 = vpop.xlane.xlu0 %463 }
 0x54d   :  { %v466_v6 = vsub.f32 %v456_v57, %v464_v5 }
 0x54f   :  { %v469_v7 = vmul.f32 1.442695, %v466_v6 }
 0x551   :  { %2929 = vpow2.f32 %v469_v7  ;;  %v528_v9 = vpop.f32.mrf.mxu0 }
 0x553   :  { %v595_v10 = vpop.f32.mrf.mxu3 }
 0x554   :  { %v596_v11 = vadd.f32 %v595_v10, %v3125_v23 }
 0x556   :  { %v622_v13 = vsel %vm89_vm1, %v596_v11, -inf }
 0x557   :  { %v2930_v14 = vpop.eup %2929  ;;  %623 = vmax.xlane.f32.xlu0 %v622_v13 }
 0x558   :  { %v474_v15 = vsel %vm89_vm1, %v2930_v14, 0.0 }
 0x559   :  { %v618_v16 = vpop.f32.mrf.mxu0  ;;  %475 = vadd.xlane.f32.xlu2 %v474_v15 }
 0x55a   :  { %v619_v17 = vadd.f32 %v618_v16, %v3125_v23 }
 0x55b   :  { %v597_v18 = vpop.f32.mrf.mxu3 }
 0x55c   :  { %v625_v20 = vsel %vm89_vm1, %v619_v17, -inf }
 0x55d   :  { %626 = vmax.xlane.f32.xlu1 %v625_v20 }
 0x561   :  { %v620_v21 = vpop.f32.mrf.mxu0 }
 0x576   :  { %672 = vrot.lane.b32.xlu1 %v3097_v8, %s3734_s23 }
 0x5ca   :  { %v624_v22 = vpop.xlane.xlu0 %623 }
 0x5cb   :  { %v628_v24 = vsub.f32 %v596_v11, %v624_v22 }
 0x5cc   :  { %v476_v25 = vpop.xlane.xlu2 %475 }
 0x5cd   :  { %v630_v26 = vmul.f32 1.442695, %v628_v24  ;;  %2931 = vrcp.f32 %v476_v25  ;;  %v502_v37 = vand.u32 2147483648, %v476_v25  ;;  %v500_v8 = vand.u32 2147483647, %v476_v25 }
 0x5ce   :  { %vm496_vm11 = vweird.f32 %v476_v25 }
 0x5cf   :  { %2933 = vpow2.f32 %v630_v26  ;;  %v503_v40 = vor.u32 1.1754944e-38, %v502_v37  ;;  %vm501_vm13 = vcmp.eq.f32.partialorder %v500_v8, 8.507059e+37  ;;  %v2852_v37 = vld [vmem:[%s3728_s5] sm:$0xff]  ;;  %v2859_v8 = vld [vmem:[%s3729_s7 + $0x28] sm:$0xff] }
 0x5d0   :  { %v627_v27 = vpop.xlane.xlu1 %626 }
 0x5d1   :  { %v629_v28 = vsub.f32 %v619_v17, %v627_v27 }
 0x5d3   :  { %v2932_v29 = vpop.eup %2931  ;;  %v632_v30 = vmul.f32 1.442695, %v629_v28 }
 0x5d4   :  { %v492_v31 = vmul.f32 %v2932_v29, %v476_v25  ;;  %vm497_vm10 = vweird.f32 %v2932_v29 }
 0x5d5   :  { %v2934_v32 = vpop.eup %2933  ;;  %2935 = vpow2.f32 %v632_v30  ;;  %vm498_vm12 = vmor %vm496_vm11, %vm497_vm10 }
 0x5d6   :  { %v493_v33 = vsub.f32 1.0, %v492_v31  ;;  %v634_v35 = vsel %vm89_vm1, %v2934_v32, 0.0 }
 0x5d7   :  { %635 = vadd.xlane.f32.xlu0 %v634_v35  ;;  %v2853_v35 = vld [vmem:[%s3728_s5 + $0x8] sm:$0xff] }
 0x5d8   :  { %v494_v38 = vmul.f32 %v2932_v29, %v493_v33  ;;  %771 = vmatpush.bf16.msrb.mxu0 %v2853_v35 }
 0x5da   :  { %v495_v58 = vadd.f32 %v2932_v29, %v494_v38  ;;  %v2860_v38 = vld [vmem:[%s3729_s7 + $0x30] sm:$0xff] }
 0x5db   :  { %v2936_v39 = vpop.eup %2935 }
 0x5dc   :  { %v499_v41 = vsel %vm498_vm12, %v2932_v29, %v495_v58  ;;  %v637_v19 = vsel %vm89_vm1, %v2936_v39, 0.0  ;;  %772 = vmatpush.bf16.msrb.mxu0 %v2852_v37  ;;  %v2858_v58 = vld [vmem:[%s3729_s7 + $0x20] sm:$0xff] }
 0x5dd   :  { %v504_v53 = vsel %vm501_vm13, %v503_v40, %v499_v41  ;;  %638 = vadd.xlane.f32.xlu2 %v637_v19  ;;  %v249_v40 = vadd.f32 %v3225_v62, %v3212_v36  ;;  %v2856_v36 = vld [vmem:[%s3729_s7 + $0x10] sm:$0xff]  ;;  %v2855_v62 = vld [vmem:[%s3729_s7 + $0x8] sm:$0xff] }
 0x5de   :  { %v506_v42 = vmul.f32 %v2930_v14, %v504_v53 }
 0x5e0   :  { %v508_v43 = vpack.c.bf16 %v506_v42, %v506_v42 }
 0x5e2   :  { %2589 = vmatmul.msk.bf16.vlgmr.msra.gmra.mxu1 %vm89_vm1, %v508_v43 }
 0x5e8   :  { %v673_v44 = vpop.permute.xlu1 %672 }
 0x5e9   :  { %v678_v45 = vsel %vm188_vm2, %v673_v44, 0 }
 0x5ea   :  { %687 = vmatpush.bf16.msrb.mxu1 %v678_v45 }
 0x5f5   :  { %693 = vrot.lane.b32.xlu2 %v3101_v12, %s3734_s23  ;;  %v3249_v12 = vpop.f32.mrf.mxu1 }
 0x5f6   :  { %v412_v41 = vadd.f32 %v3249_v12, %v249_v40 }
 0x64a   :  { %v636_v48 = vpop.xlane.xlu0 %635 }
 0x64b   :  { %2937 = vrcp.f32 %v636_v48  ;;  %v651_v34 = vand.u32 2147483648, %v636_v48  ;;  %v649_v55 = vand.u32 2147483647, %v636_v48  ;;  %vm645_vm15 = vweird.f32 %v636_v48 }
 0x64d   :  { %v652_v61 = vor.u32 1.1754944e-38, %v651_v34  ;;  %vm650_vm4 = vcmp.eq.f32.partialorder %v649_v55, 8.507059e+37  ;;  %v2863_v55 = vld [vmem:[%s3722_s2 + $0x18] sm:$0xff] }
 0x650   :  { %v639_v49 = vpop.xlane.xlu2 %638 }
 0x651   :  { %v2938_v50 = vpop.eup %2937  ;;  %2939 = vrcp.f32 %v639_v49  ;;  %v665_v15 = vand.u32 2147483648, %v639_v49  ;;  %vm659_vm6 = vweird.f32 %v639_v49  ;;  %v663_v16 = vand.u32 2147483647, %v639_v49 }
 0x652   :  { %v641_v51 = vmul.f32 %v2938_v50, %v636_v48  ;;  %vm646_vm14 = vweird.f32 %v2938_v50  ;;  %v2900_v48 = vld [vmem:[%s3727_s6] ss:$0 sm:$0xff] }
 0x653   :  { %vm647_vm3 = vmor %vm645_vm15, %vm646_vm14  ;;  %v666_v18 = vor.u32 1.1754944e-38, %v665_v15  ;;  %vm664_vm8 = vcmp.eq.f32.partialorder %v663_v16, 8.507059e+37 }
 0x654   :  { %v642_v52 = vsub.f32 1.0, %v641_v51 }
 0x656   :  { %v643_v54 = vmul.f32 %v2938_v50, %v642_v52 }
 0x657   :  { %v2940_v56 = vpop.eup %2939 }
 0x658   :  { %v644_v57 = vadd.f32 %v2938_v50, %v643_v54  ;;  %v655_v59 = vmul.f32 %v2940_v56, %v639_v49  ;;  %v694_v60 = vpop.permute.xlu2 %693  ;;  %vm660_vm5 = vweird.f32 %v2940_v56 }
 0x659   :  { %v699_v63 = vsel %vm188_vm2, %v694_v60, 0  ;;  %vm661_vm7 = vmor %vm659_vm6, %vm660_vm5 }
 0x65a   :  { %v648_v0 = vsel %vm647_vm3, %v2938_v50, %v644_v57  ;;  %v656_v5 = vsub.f32 1.0, %v655_v59  ;;  %708 = vmatpush.bf16.msra.mxu2 %v699_v63  ;;  %v2901_v57 = vld [vmem:[%s3730_s8] ss:$0 sm:$0xff] }
 0x65b   :  { %v653_v6 = vsel %vm650_vm4, %v652_v61, %v648_v0 }
 0x65c   :  { %v668_v7 = vmul.f32 %v2934_v32, %v653_v6  ;;  %v657_v9 = vmul.f32 %v2940_v56, %v656_v5 }
 0x65e   :  { %v670_v10 = vpack.c.bf16 %v668_v7, %v668_v7  ;;  %v658_v14 = vadd.f32 %v2940_v56, %v657_v9 }
 0x65f   :  { %v547_v11 = vpop.f32.mrf.mxu1 }
 0x660   :  { %v551_v13 = vpack.c.bf16 %v547_v11, %v3230_v4  ;;  %2594 = vmatmul.msk.bf16.vlgmr.msrb.gmra.mxu1 %vm89_vm1, %v670_v10  ;;  %v662_v17 = vsel %vm661_vm7, %v2940_v56, %v658_v14  ;;  %v2596_v4 = vld [vmem:[%s3725_s3 + $0xc] sm:$0xf]  ;;  %v2862_v56 = vld [vmem:[%s3722_s2 + $0x10] sm:$0xff] }
 0x661   :  { %v667_v21 = vsel %vm664_vm8, %v666_v18, %v662_v17  ;;  %v721_v25 = vsel %vm188_vm2, %v2596_v4, 0 }
 0x662   :  { %2591 = vmatmul.msk.bf16.vlgmr.msrb.gmra.mxu2 %vm89_vm1, %v551_v13  ;;  %v669_v22 = vmul.f32 %v2936_v39, %v667_v21  ;;  %730 = vmatpush.bf16.msra.mxu3 %v721_v25 }
 0x663   :  { %893 = vmatpush.bf16.msrb.mxu2 %v2863_v55 }
 0x664   :  { %v671_v24 = vpack.c.bf16 %v669_v22, %v669_v22 }
 0x667   :  { %v549_v20 = vpop.f32.mrf.mxu1  ;;  %894 = vmatpush.bf16.msrb.mxu2 %v2862_v56 }
 0x672   :  { %2595 = vmatmul.msk.bf16.vlgmr.msra.gmra.mxu2 %vm89_vm1, %v671_v24 }
 0x6dd   :  { %v689_v26 = vpop.f32.mrf.mxu1 }
 0x6e5   :  { %v569_v27 = vpop.f32.mrf.mxu2  ;;  %v691_v28 = vpop.f32.mrf.mxu1 }
 0x6e6   :  { %v574_v29 = vadd.f32 %v569_v27, %v3228_v1  ;;  %v2861_v1 = vld [vmem:[%s3729_s7 + $0x38] sm:$0xff] }
 0x6e7   :  { %850 = vmatpush.bf16.msra.mxu1 %v2861_v1 }
 0x6eb   :  { %851 = vmatpush.bf16.msra.mxu1 %v2860_v38 }
 0x6ed   :  { %v571_v30 = vpop.f32.mrf.mxu2 }
 0x6ee   :  { %v575_v19 = vadd.f32 %v571_v30, %v412_v41 }
 0x6ef   :  { %852 = vmatpush.bf16.msra.mxu1 %v2859_v8 }
 0x6f3   :  { %853 = vmatpush.bf16.msra.mxu1 %v2858_v58 }
 0x6f5   :  { %v710_v31 = vpop.f32.mrf.mxu2 }
 0x6f6   :  { %v714_v32 = vpack.c.bf16 %v710_v31, %v689_v26 }
 0x6f7   :  { %854 = vmatpush.bf16.msra.mxu1 %v2857_v47 }
 0x6f8   :  { %2597 = vmatmul.msk.bf16.vlgmr.msra.gmra.mxu3 %vm89_vm1, %v714_v32 }
 0x6fb   :  { %855 = vmatpush.bf16.msra.mxu1 %v2856_v36 }
 0x6fd   :  { %v712_v33 = vpop.f32.mrf.mxu2 }
 0x6ff   :  { %856 = vmatpush.bf16.msra.mxu1 %v2855_v62 }
 0x77b   :  { %v732_v39 = vpop.f32.mrf.mxu3 }
 0x77c   :  { %v737_v53 = vadd.f32 %v732_v39, %v574_v29 }
 0x77e   :  { %v739_v44 = vadd.f32 %v737_v53, %v3087_v2  ;;  %v2854_v2 = vld [vmem:[%s3729_s7] sm:$0xff] }
 0x77f   :  { %857 = vmatpush.bf16.msra.mxu1 %v2854_v2 }
 0x783   :  { %v734_v42 = vpop.f32.mrf.mxu3 }
 0x784   :  { %v738_v43 = vadd.f32 %v734_v42, %v575_v19 }
 0x786   :  { %v740_v45 = vadd.f32 %v738_v43, %v3092_v3 }
 0x788   :  { %v741_v46 = vpack.c.bf16 %v740_v45, %v739_v44 }
 0x78a   :  { %2606 = vmatmul.msk.bf16.vlgmr.msrb.gmra.mxu0 %vm59_vm0, %v741_v46 }
 0x807   :  { %v774_v3 = vpop.f32.mrf.mxu0 }
 0x808   :  { %v775_v49 = vadd.f32 %v2900_v48, %v774_v3 }
 0x80a   :  { %v779_v52 = vmax.f32 %v775_v49, 0.0 }
 0x80f   :  { %v776_v50 = vpop.f32.mrf.mxu0 }
 0x810   :  { %v777_v51 = vadd.f32 %v2900_v48, %v776_v50 }
 0x812   :  { %v780_v34 = vmax.f32 %v777_v51, 0.0 }
 0x814   :  { %v781_v54 = vpack.c.bf16 %v780_v34, %v779_v52 }
 0x816   :  { %858 = vmatmul.bf16.vlgmr.msra.gmra.mxu1 %v781_v54 }
 0x893   :  { %v859_v12 = vpop.f32.mrf.mxu1 }
 0x894   :  { %v860_v59 = vadd.f32 %v2901_v57, %v859_v12 }
 0x896   :  { %v3310_v63 = vadd.f32 %v860_v59, %v739_v44 }
 0x89b   :  { %v861_v60 = vpop.f32.mrf.mxu1 }
 0x89c   :  { %v862_v61 = vadd.f32 %v2901_v57, %v861_v60 }
 0x89e   :  { %v3312_v0 = vadd.f32 %v862_v61, %v740_v45 }
 0x8a0   :  { %v866_v5 = vpack.c.bf16 %v3312_v0, %v3310_v63 }
 0x8a2   :  { %2651 = vmatmul.msk.bf16.vlgmr.msrb.gmra.mxu2 %vm59_vm0, %v866_v5 }
 0x925   :  { %v896_v6 = vpop.f32.mrf.mxu2 }
 0x926   :  { %v907_v7 = vpack.c.bf16 %v896_v6, %v896_v6 }
 0x928   :  { %v910_v9 = vunpack.c.l.b16 %v907_v7 }
 0x92a   :  { %v3317_v10 = vpack.c.b16 %v910_v9, %v910_v9 }
 0x92c   :  { %1074 = vrot.lane.b32.xlu1 %v3317_v10, %s3009_s26  ;;  %912 = vrot.lane.b32.xlu0 %v3317_v10, %s3007_s25 }
 0x92d   :  { %v898_v11 = vpop.f32.mrf.mxu2 }
 0x92e   :  { %v908_v13 = vpack.c.bf16 %v898_v11, %v898_v11 }
 0x930   :  { %v934_v14 = vunpack.c.l.b16 %v908_v13 }
 0x932   :  { %v3323_v15 = vpack.c.b16 %v934_v14, %v934_v14 }
 0x934   :  { %1007 = vrot.lane.b32.xlu1 %v3317_v10, %s3008_s0  ;;  %1076 = vrot.lane.b32.xlu0 %v3317_v10, %s3010_s27 }
 0x935   :  { %936 = vrot.lane.b32.xlu2 %v3323_v15, %s3007_s25 }
 0x93c   :  { %1099 = vrot.lane.b32.xlu1 %v3323_v15, %s3010_s27 }
 0x944   :  { %1097 = vrot.lane.b32.xlu1 %v3323_v15, %s3009_s26 }
 0x94c   :  { %1239 = vrot.lane.b32.xlu1 %v3317_v10, %s3013_s13 }
 0x98f   :  { %v937_v16 = vpop.permute.xlu2 %936 }
 0x990   :  { %v942_v17 = vsel %vm89_vm1, %v937_v16, 0 }
 0x991   :  { %951 = vmatpush.bf16.xpose.msra.mxu0 %v942_v17 }
 0x998   :  { %2654 = vmatmul.msk.bf16.vlgmr.msra.gmra.mxu0 %vm89_vm1, %v908_v13 }
 0x99e   :  { %v1075_v18 = vpop.permute.xlu1 %1074  ;;  %v913_v20 = vpop.permute.xlu0 %912 }
 0x99f   :  { %v918_v21 = vsel %vm89_vm1, %v913_v20, 0 }
 0x9a0   :  { %927 = vmatpush.bf16.xpose.msrb.mxu3 %v918_v21 }
 0x9a6   :  { %v1008_v22 = vpop.permute.xlu1 %1007  ;;  %v1077_v24 = vpop.permute.xlu0 %1076 }
 0x9a7   :  { %v1013_v4 = vsel %vm188_vm2, %v1008_v22, 0  ;;  %v1082_v25 = vsel %vm89_vm1, %v1077_v24, 0  ;;  %2653 = vmatmul.msk.bf16.vlgmr.msrb.gmra.mxu3 %vm89_vm1, %v907_v7 }
 0x9a8   :  { %1022 = vmatpush.bf16.msra.mxu2 %v1013_v4  ;;  %1091 = vmatpush.bf16.xpose.msrb.mxu1 %v1082_v25 }
 0x9ae   :  { %v1100_v26 = vpop.permute.xlu1 %1099 }
 0x9af   :  { %v1105_v27 = vsel %vm89_vm1, %v1100_v26, 0  ;;  %2659 = vmatmul.msk.bf16.vlgmr.msrb.gmra.mxu1 %vm89_vm1, %v1075_v18 }
 0x9b0   :  { %1114 = vmatpush.bf16.xpose.msrb.mxu2 %v1105_v27 }
 0x9b6   :  { %v3353_v8 = vpop.permute.xlu1 %1097 }
 0x9be   :  { %v1240_v58 = vpop.permute.xlu1 %1239 }
 0x9bf   :  { %v1245_v6 = vsel %vm89_vm1, %v1240_v58, 0 }
 0xa15   :  { %v953_v28 = vpop.f32.mrf.mxu0 }
 0xa16   :  { %v954_v29 = vadd.f32 %v953_v28, %v3125_v23 }
 0xa18   :  { %v960_v30 = vsel %vm89_vm1, %v954_v29, -inf }
 0xa19   :  { %961 = vmax.xlane.f32.xlu1 %v960_v30 }
 0xa1d   :  { %v955_v31 = vpop.f32.mrf.mxu0 }
 0xa2a   :  { %v929_v32 = vpop.f32.mrf.mxu3 }
 0xa2b   :  { %v930_v33 = vadd.f32 %v929_v32, %v3125_v23  ;;  %v2657_v32 = vld [vmem:[%s3725_s3 + $0x10] sm:$0xf] }
 0xa2c   :  { %v1093_v35 = vpop.f32.mrf.mxu1 }
 0xa2d   :  { %v957_v37 = vsel %vm89_vm1, %v930_v33, -inf  ;;  %v1094_v45 = vadd.f32 %v1093_v35, %v3125_v23 }
 0xa2e   :  { %958 = vmax.xlane.f32.xlu2 %v957_v37 }
 0xa2f   :  { %v1120_v46 = vsel %vm89_vm1, %v1094_v45, -inf }
 0xa32   :  { %1170 = vrot.lane.b32.xlu1 %v3317_v10, %s3012_s12  ;;  %v931_v1 = vpop.f32.mrf.mxu3 }
 0xa34   :  { %v1095_v38 = vpop.f32.mrf.mxu1 }
 0xa46   :  { %1237 = vrot.lane.b32.xlu2 %v3317_v10, %s3011_s30 }
 0xa8c   :  { %v962_v19 = vpop.xlane.xlu1 %961 }
 0xa8d   :  { %v964_v42 = vsub.f32 %v954_v29, %v962_v19 }
 0xa8f   :  { %v967_v44 = vmul.f32 1.442695, %v964_v42 }
 0xaa1   :  { %v959_v39 = vpop.xlane.xlu2 %958 }
 0xaa2   :  { %v963_v40 = vsub.f32 %v930_v33, %v959_v39  ;;  %v1056_v33 = vsel %vm188_vm2, %v2657_v32, 0 }
 0xaa3   :  { %1065 = vmatpush.bf16.msrb.mxu0 %v1056_v33 }
 0xaa4   :  { %v965_v41 = vmul.f32 1.442695, %v963_v40  ;;  %v1171_v22 = vpop.permute.xlu1 %1170 }
 0xaa5   :  { %v1176_v26 = vsel %vm188_vm2, %v1171_v22, 0 }
 0xaa6   :  { %2941 = vpow2.f32 %v965_v41 }
 0xaa7   :  { %2943 = vpow2.f32 %v967_v44 }
 0xaa9   :  { %v1238_v30 = vpop.permute.xlu2 %1237 }
 0xaac   :  { %v2942_v53 = vpop.eup %2941 }
 0xaad   :  { %v969_v43 = vsel %vm89_vm1, %v2942_v53, 0.0  ;;  %v2944_v47 = vpop.eup %2943 }
 0xaae   :  { %970 = vadd.xlane.f32.xlu0 %v969_v43  ;;  %v972_v36 = vsel %vm89_vm1, %v2944_v47, 0.0 }
 0xab6   :  { %1121 = vmax.xlane.f32.xlu0 %v1120_v46  ;;  %v3383_v46 = vld [vmem:[%s3724_s1] sm:$0xff] }
 0xabe   :  { %973 = vadd.xlane.f32.xlu0 %v972_v36 }
 0xad2   :  { %1028 = vrot.lane.b32.xlu0 %v3323_v15, %s3008_s0 }
 0xada   :  { %1262 = vrot.lane.b32.xlu0 %v3323_v15, %s3013_s13 }
 0xae2   :  { %1260 = vrot.lane.b32.xlu0 %v3323_v15, %s3011_s30 }
 0xb21   :  { %v971_v62 = vpop.xlane.xlu0 %970 }
 0xb22   :  { %2945 = vrcp.f32 %v971_v62  ;;  %v986_v50 = vand.u32 2147483648, %v971_v62  ;;  %v984_v34 = vand.u32 2147483647, %v971_v62  ;;  %vm980_vm10 = vweird.f32 %v971_v62 }
 0xb24   :  { %v987_v55 = vor.u32 1.1754944e-38, %v986_v50  ;;  %vm985_vm12 = vcmp.eq.f32.partialorder %v984_v34, 8.507059e+37 }
 0xb28   :  { %v2946_v23 = vpop.eup %2945 }
 0xb29   :  { %v976_v2 = vmul.f32 %v2946_v23, %v971_v62  ;;  %v1122_v3 = vpop.xlane.xlu0 %1121  ;;  %vm981_vm9 = vweird.f32 %v2946_v23 }
 0xb2a   :  { %v1126_v48 = vsub.f32 %v1094_v45, %v1122_v3  ;;  %vm982_vm11 = vmor %vm980_vm10, %vm981_vm9 }
 0xb2b   :  { %v977_v49 = vsub.f32 1.0, %v976_v2 }
 0xb2c   :  { %v1128_v51 = vmul.f32 1.442695, %v1126_v48 }
 0xb2d   :  { %v978_v52 = vmul.f32 %v2946_v23, %v977_v49 }
 0xb2e   :  { %2947 = vpow2.f32 %v1128_v51 }
 0xb2f   :  { %v979_v54 = vadd.f32 %v2946_v23, %v978_v52 }
 0xb31   :  { %v983_v56 = vsel %vm982_vm11, %v2946_v23, %v979_v54  ;;  %v974_v12 = vpop.xlane.xlu0 %973 }
 0xb32   :  { %v988_v57 = vsel %vm985_vm12, %v987_v55, %v983_v56  ;;  %2949 = vrcp.f32 %v974_v12  ;;  %v1000_v13 = vand.u32 2147483648, %v974_v12  ;;  %v998_v16 = vand.u32 2147483647, %v974_v12 }
 0xb33   :  { %v1003_v59 = vmul.f32 %v2942_v53, %v988_v57  ;;  %vm994_vm14 = vweird.f32 %v974_v12 }
 0xb34   :  { %v2948_v60 = vpop.eup %2947  ;;  %v1001_v18 = vor.u32 1.1754944e-38, %v1000_v13  ;;  %vm999_vm3 = vcmp.eq.f32.partialorder %v998_v16, 8.507059e+37 }
 0xb35   :  { %v1132_v61 = vsel %vm89_vm1, %v2948_v60, 0.0  ;;  %v1005_v5 = vpack.c.bf16 %v1003_v59, %v1003_v59 }
 0xb36   :  { %1133 = vadd.xlane.f32.xlu2 %v1132_v61  ;;  %v2663_v61 = vld [vmem:[%s3725_s3 + $0x14] sm:$0xf] }
 0xb37   :  { %2655 = vmatmul.msk.bf16.vlgmr.msra.gmra.mxu2 %vm89_vm1, %v1005_v5 }
 0xb38   :  { %v2950_v7 = vpop.eup %2949  ;;  %1254 = vmatpush.bf16.xpose.msra.mxu2 %v1245_v6 }
 0xb39   :  { %v990_v9 = vmul.f32 %v2950_v7, %v974_v12  ;;  %vm995_vm13 = vweird.f32 %v2950_v7 }
 0xb3a   :  { %vm996_vm15 = vmor %vm994_vm14, %vm995_vm13 }
 0xb3b   :  { %v991_v11 = vsub.f32 1.0, %v990_v9 }
 0xb3d   :  { %v992_v14 = vmul.f32 %v2950_v7, %v991_v11 }
 0xb3f   :  { %v993_v17 = vadd.f32 %v2950_v7, %v992_v14 }
 0xb41   :  { %v997_v20 = vsel %vm996_vm15, %v2950_v7, %v993_v17  ;;  %v1219_v7 = vsel %vm188_vm2, %v2663_v61, 0 }
 0xb42   :  { %v1002_v21 = vsel %vm999_vm3, %v1001_v18, %v997_v20  ;;  %1228 = vmatpush.bf16.msra.mxu1 %v1219_v7 }
 0xb43   :  { %v1004_v24 = vmul.f32 %v2944_v47, %v1002_v21 }
 0xb44   :  { %v1029_v4 = vpop.permute.xlu0 %1028 }
 0xb45   :  { %v1034_v25 = vsel %vm188_vm2, %v1029_v4, 0  ;;  %v1006_v27 = vpack.c.bf16 %v1004_v24, %v1004_v24 }
 0xb46   :  { %1043 = vmatpush.bf16.msra.mxu3 %v1034_v25 }
 0xb47   :  { %2660 = vmatmul.msk.bf16.vlgmr.msrb.gmra.mxu2 %vm89_vm1, %v3353_v8 }
 0xb49   :  { %2656 = vmatmul.msk.bf16.vlgmr.msra.gmra.mxu3 %vm89_vm1, %v1006_v27 }
 0xb4a   :  { %1185 = vmatpush.bf16.msrb.mxu3 %v1176_v26 }
 0xb4c   :  { %v1263_v28 = vpop.permute.xlu0 %1262 }
 0xb4d   :  { %v1268_v29 = vsel %vm89_vm1, %v1263_v28, 0 }
 0xb4e   :  { %1277 = vmatpush.bf16.xpose.msra.mxu3 %v1268_v29 }
 0xb54   :  { %v1261_v2 = vpop.permute.xlu0 %1260 }
 0xb57   :  { %2665 = vmatmul.msk.bf16.vlgmr.msra.gmra.mxu2 %vm89_vm1, %v1238_v30 }
 0xba9   :  { %v1134_v31 = vpop.xlane.xlu2 %1133 }
 0xbaa   :  { %2951 = vrcp.f32 %v1134_v31  ;;  %v1149_v38 = vand.u32 2147483648, %v1134_v31  ;;  %v1147_v58 = vand.u32 2147483647, %v1134_v31  ;;  %vm1143_vm5 = vweird.f32 %v1134_v31 }
 0xbac   :  { %v1150_v40 = vor.u32 1.1754944e-38, %v1149_v38  ;;  %vm1148_vm7 = vcmp.eq.f32.partialorder %v1147_v58, 8.507059e+37 }
 0xbb0   :  { %v2952_v35 = vpop.eup %2951 }
 0xbb1   :  { %v1139_v37 = vmul.f32 %v2952_v35, %v1134_v31  ;;  %vm1144_vm4 = vweird.f32 %v2952_v35 }
 0xbb2   :  { %vm1145_vm6 = vmor %vm1143_vm5, %vm1144_vm4 }
 0xbb3   :  { %v1140_v1 = vsub.f32 1.0, %v1139_v37 }
 0xbb5   :  { %v1141_v8 = vmul.f32 %v2952_v35, %v1140_v1 }
 0xbb7   :  { %v1142_v39 = vadd.f32 %v2952_v35, %v1141_v8 }
 0xbb9   :  { %v1146_v41 = vsel %vm1145_vm6, %v2952_v35, %v1142_v39 }
 0xbba   :  { %v1151_v19 = vsel %vm1148_vm7, %v1150_v40, %v1146_v41  ;;  %v1024_v53 = vpop.f32.mrf.mxu2 }
 0xbbb   :  { %v1166_v42 = vmul.f32 %v2948_v60, %v1151_v19 }
 0xbbd   :  { %v1168_v43 = vpack.c.bf16 %v1166_v42, %v1166_v42 }
 0xbbf   :  { %2661 = vmatmul.msk.bf16.vlgmr.msrb.gmra.mxu3 %vm89_vm1, %v1168_v43 }
 0xbc2   :  { %v1026_v44 = vpop.f32.mrf.mxu2 }
 0xbca   :  { %v1116_v45 = vpop.f32.mrf.mxu2 }
 0xbcb   :  { %v1117_v47 = vadd.f32 %v3383_v46, %v1116_v45 }
 0xbcc   :  { %v1045_v36 = vpop.f32.mrf.mxu3 }
 0xbcd   :  { %v1049_v62 = vpack.c.bf16 %v1045_v36, %v1024_v53  ;;  %v1123_v23 = vsel %vm89_vm1, %v1117_v47, -inf }
 0xbce   :  { %1124 = vmax.xlane.f32.xlu0 %v1123_v23 }
 0xbcf   :  { %2658 = vmatmul.msk.bf16.vlgmr.msrb.gmra.mxu0 %vm89_vm1, %v1049_v62  ;;  %2666 = vmatmul.msk.bf16.vlgmr.msra.gmra.mxu3 %vm89_vm1, %v1261_v2 }
 0xbd2   :  { %v1118_v3 = vpop.f32.mrf.mxu2 }
 0xbd4   :  { %v1047_v48 = vpop.f32.mrf.mxu3 }
 0xbda   :  { %v1256_v49 = vpop.f32.mrf.mxu2 }
 0xbdb   :  { %v1257_v50 = vadd.f32 %v3383_v46, %v1256_v49 }
 0xbdd   :  { %v1283_v51 = vsel %vm89_vm1, %v1257_v50, -inf }
 0xbde   :  { %1284 = vmax.xlane.f32.xlu1 %v1283_v51 }
 0xbe2   :  { %v1258_v52 = vpop.f32.mrf.mxu2 }
 0xbf7   :  { %1425 = vrot.lane.b32.xlu1 %v3323_v15, %s3014_s14 }
 0xbff   :  { %1354 = vrot.lane.b32.xlu1 %v3323_v15, %s3015_s15 }
 0xc41   :  { %v1125_v34 = vpop.xlane.xlu0 %1124 }
 0xc42   :  { %v1127_v54 = vsub.f32 %v1117_v47, %v1125_v34  ;;  %v3395_v55 = vpop.f32.mrf.mxu3 }
 0xc44   :  { %v1130_v56 = vmul.f32 1.442695, %v1127_v54 }
 0xc46   :  { %2953 = vpow2.f32 %v1130_v56 }
 0xc4a   :  { %v1189_v12 = vpop.f32.mrf.mxu3 }
 0xc4c   :  { %v2954_v57 = vpop.eup %2953  ;;  %v1067_v56 = vpop.f32.mrf.mxu0 }
 0xc4d   :  { %v1135_v59 = vsel %vm89_vm1, %v2954_v57, 0.0 }
 0xc4e   :  { %1136 = vadd.xlane.f32.xlu2 %v1135_v59 }
 0xc51   :  { %v1285_v60 = vpop.xlane.xlu1 %1284 }
 0xc52   :  { %v1289_v5 = vsub.f32 %v1257_v50, %v1285_v60  ;;  %v1279_v6 = vpop.f32.mrf.mxu3 }
 0xc53   :  { %v1280_v20 = vadd.f32 %v3383_v46, %v1279_v6 }
 0xc54   :  { %v1291_v9 = vmul.f32 1.442695, %v1289_v5  ;;  %v3425_v12 = vpop.f32.mrf.mxu0 }
 0xc55   :  { %v1286_v21 = vsel %vm89_vm1, %v1280_v20, -inf }
 0xc56   :  { %2955 = vpow2.f32 %v1291_v9 }
 0xc5a   :  { %v1281_v11 = vpop.f32.mrf.mxu3 }
 0xc5c   :  { %v2956_v13 = vpop.eup %2955 }
 0xc5d   :  { %v1295_v14 = vsel %vm89_vm1, %v2956_v13, 0.0 }
 0xc5e   :  { %1296 = vadd.xlane.f32.xlu0 %v1295_v14 }
 0xc66   :  { %1191 = vrot.lane.b32.xlu2 %v3323_v15, %s3012_s12 }
 0xc69   :  { %v1426_v16 = vpop.permute.xlu1 %1425 }
 0xc6a   :  { %v1431_v39 = vsel %vm89_vm1, %v1426_v16, 0 }
 0xc6e   :  { %1333 = vrot.lane.b32.xlu2 %v3317_v10, %s3015_s15 }
 0xc71   :  { %v1355_v17 = vpop.permute.xlu1 %1354 }
 0xc72   :  { %v1360_v18 = vsel %vm188_vm2, %v1355_v17, 0  ;;  %1402 = vrot.lane.b32.xlu0 %v3317_v10, %s3014_s14 }
 0xc73   :  { %1369 = vmatpush.bf16.msrb.mxu1 %v1360_v18 }
 0xc76   :  { %1400 = vrot.lane.b32.xlu2 %v3317_v10, %s3736_s20 }
 0xc7e   :  { %1423 = vrot.lane.b32.xlu2 %v3323_v15, %s3736_s20 }
 0xca7   :  { %1287 = vmax.xlane.f32.xlu2 %v1286_v21 }
 0xcc1   :  { %v1137_v22 = vpop.xlane.xlu2 %1136 }
 0xcc2   :  { %2957 = vrcp.f32 %v1137_v22  ;;  %v1163_v28 = vand.u32 2147483648, %v1137_v22  ;;  %v1161_v30 = vand.u32 2147483647, %v1137_v22  ;;  %vm1157_vm9 = vweird.f32 %v1137_v22 }
 0xcc4   :  { %v1164_v32 = vor.u32 1.1754944e-38, %v1163_v28  ;;  %vm1162_vm11 = vcmp.eq.f32.partialorder %v1161_v30, 8.507059e+37 }
 0xcc8   :  { %v2958_v24 = vpop.eup %2957 }
 0xcc9   :  { %v1153_v4 = vmul.f32 %v2958_v24, %v1137_v22  ;;  %v1192_v25 = vpop.permute.xlu2 %1191  ;;  %vm1158_vm8 = vweird.f32 %v2958_v24 }
 0xcca   :  { %v1197_v26 = vsel %vm188_vm2, %v1192_v25, 0  ;;  %vm1159_vm10 = vmor %vm1157_vm9, %vm1158_vm8 }
 0xccb   :  { %v1154_v27 = vsub.f32 1.0, %v1153_v4  ;;  %1206 = vmatpush.bf16.msra.mxu0 %v1197_v26 }
 0xccd   :  { %v1155_v29 = vmul.f32 %v2958_v24, %v1154_v27 }
 0xccf   :  { %v1156_v31 = vadd.f32 %v2958_v24, %v1155_v29 }
 0xcd1   :  { %v1160_v33 = vsel %vm1159_vm10, %v2958_v24, %v1156_v31  ;;  %v1297_v35 = vpop.xlane.xlu0 %1296  ;;  %v1334_v37 = vpop.permute.xlu2 %1333  ;;  %v3437_v31 = vld [vmem:[%s3726_s4 + $0x1] ss:$0 sm:$0xff] }
 0xcd2   :  { %v1165_v1 = vsel %vm1162_vm11, %v1164_v32, %v1160_v33  ;;  %2959 = vrcp.f32 %v1297_v35  ;;  %v1339_v8 = vsel %vm188_vm2, %v1334_v37, 0  ;;  %v1312_v53 = vand.u32 2147483648, %v1297_v35 }
 0xcd3   :  { %v1167_v38 = vmul.f32 %v2954_v57, %v1165_v1  ;;  %1348 = vmatpush.bf16.msrb.mxu0 %v1339_v8  ;;  %v1310_v43 = vand.u32 2147483647, %v1297_v35  ;;  %vm1306_vm13 = vweird.f32 %v1297_v35  ;;  %v1072_v32 = vadd.f32 %v3437_v31, %v1067_v56 }
 0xcd4   :  { %v1313_v45 = vor.u32 1.1754944e-38, %v1312_v53 }
 0xcd5   :  { %v1169_v58 = vpack.c.bf16 %v1167_v38, %v1167_v38  ;;  %vm1311_vm15 = vcmp.eq.f32.partialorder %v1310_v43, 8.507059e+37 }
 0xcd7   :  { %2662 = vmatmul.msk.bf16.vlgmr.msra.gmra.mxu0 %vm89_vm1, %v1169_v58 }
 0xcd8   :  { %v2960_v40 = vpop.eup %2959  ;;  %1440 = vmatpush.bf16.xpose.msra.mxu0 %v1431_v39 }
 0xcd9   :  { %v1302_v41 = vmul.f32 %v2960_v40, %v1297_v35  ;;  %vm1307_vm12 = vweird.f32 %v2960_v40  ;;  %v1401_v48 = vpop.permute.xlu2 %1400 }
 0xcda   :  { %vm1308_vm14 = vmor %vm1306_vm13, %vm1307_vm12 }
 0xcdb   :  { %v1303_v19 = vsub.f32 1.0, %v1302_v41 }
 0xcdd   :  { %v1304_v42 = vmul.f32 %v2960_v40, %v1303_v19 }
 0xcdf   :  { %v1305_v44 = vadd.f32 %v2960_v40, %v1304_v42  ;;  %v2669_v42 = vld [vmem:[%s3725_s3 + $0x18] sm:$0xf] }
 0xce0   :  { %v1382_v43 = vsel %vm188_vm2, %v2669_v42, 0 }
 0xce1   :  { %v1309_v47 = vsel %vm1308_vm14, %v2960_v40, %v1305_v44  ;;  %v1424_v49 = vpop.permute.xlu2 %1423  ;;  %1391 = vmatpush.bf16.msrb.mxu2 %v1382_v43 }
 0xce2   :  { %v1314_v36 = vsel %vm1311_vm15, %v1313_v45, %v1309_v47 }
 0xce3   :  { %v1329_v62 = vmul.f32 %v2956_v13, %v1314_v36 }
 0xce4   :  { %v1403_v23 = vpop.permute.xlu0 %1402 }
 0xce5   :  { %v1408_v2 = vsel %vm89_vm1, %v1403_v23, 0  ;;  %v1331_v3 = vpack.c.bf16 %v1329_v62, %v1329_v62 }
 0xce6   :  { %1417 = vmatpush.bf16.xpose.msrb.mxu3 %v1408_v2 }
 0xce7   :  { %2667 = vmatmul.msk.bf16.vlgmr.msrb.gmra.mxu0 %vm89_vm1, %v1331_v3 }
 0xced   :  { %2671 = vmatmul.msk.bf16.vlgmr.msrb.gmra.mxu3 %vm89_vm1, %v1401_v48 }
 0xcf7   :  { %2672 = vmatmul.msk.bf16.vlgmr.msra.gmra.mxu0 %vm89_vm1, %v1424_v49 }
 0xd1a   :  { %v1288_v50 = vpop.xlane.xlu2 %1287 }
 0xd1b   :  { %v1290_v51 = vsub.f32 %v1280_v20, %v1288_v50 }
 0xd1d   :  { %v1293_v52 = vmul.f32 1.442695, %v1290_v51 }
 0xd1f   :  { %2961 = vpow2.f32 %v1293_v52 }
 0xd25   :  { %v2962_v34 = vpop.eup %2961 }
 0xd26   :  { %v1298_v54 = vsel %vm89_vm1, %v2962_v34, 0.0 }
 0xd27   :  { %1299 = vadd.xlane.f32.xlu0 %v1298_v54 }
 0xd54   :  { %v1208_v57 = vpop.f32.mrf.mxu0 }
 0xd55   :  { %v1212_v59 = vpack.c.bf16 %v1208_v57, %v3395_v55 }
 0xd57   :  { %2664 = vmatmul.msk.bf16.vlgmr.msra.gmra.mxu1 %vm89_vm1, %v1212_v59 }
 0xd5c   :  { %v1210_v60 = vpop.f32.mrf.mxu0 }
 0xd64   :  { %v1350_v61 = vpop.f32.mrf.mxu0 }
 0xd6c   :  { %v1352_v5 = vpop.f32.mrf.mxu0 }
 0xd70   :  { %v1419_v6 = vpop.f32.mrf.mxu3 }
 0xd71   :  { %v1420_v7 = vadd.f32 %v3383_v46, %v1419_v6 }
 0xd73   :  { %v1446_v9 = vsel %vm89_vm1, %v1420_v7, -inf }
 0xd74   :  { %1447 = vmax.xlane.f32.xlu2 %v1446_v9  ;;  %v1442_v11 = vpop.f32.mrf.mxu0 }
 0xd75   :  { %v1443_v13 = vadd.f32 %v3383_v46, %v1442_v11 }
 0xd77   :  { %v1449_v14 = vsel %vm89_vm1, %v1443_v13, -inf }
 0xd78   :  { %v1421_v16 = vpop.f32.mrf.mxu3  ;;  %1450 = vmax.xlane.f32.xlu1 %v1449_v14 }
 0xd7c   :  { %v1444_v17 = vpop.f32.mrf.mxu0 }
 0xd9a   :  { %v1300_v55 = vpop.xlane.xlu0 %1299 }
 0xd9b   :  { %2963 = vrcp.f32 %v1300_v55  ;;  %v1326_v22 = vand.u32 2147483648, %v1300_v55  ;;  %v1324_v4 = vand.u32 2147483647, %v1300_v55  ;;  %vm1320_vm4 = vweird.f32 %v1300_v55 }
 0xd9d   :  { %v1327_v26 = vor.u32 1.1754944e-38, %v1326_v22  ;;  %vm1325_vm6 = vcmp.eq.f32.partialorder %v1324_v4, 8.507059e+37 }
 0xda1   :  { %v2964_v18 = vpop.eup %2963 }
 0xda2   :  { %v1316_v20 = vmul.f32 %v2964_v18, %v1300_v55  ;;  %vm1321_vm3 = vweird.f32 %v2964_v18 }
 0xda3   :  { %vm1322_vm5 = vmor %vm1320_vm4, %vm1321_vm3 }
 0xda4   :  { %v1317_v21 = vsub.f32 1.0, %v1316_v20 }
 0xda6   :  { %v1318_v24 = vmul.f32 %v2964_v18, %v1317_v21 }
 0xda8   :  { %v1319_v25 = vadd.f32 %v2964_v18, %v1318_v24  ;;  %v2675_v24 = vld [vmem:[%s3725_s3 + $0x1c] sm:$0xf] }
 0xda9   :  { %v1545_v4 = vsel %vm188_vm2, %v2675_v24, 0 }
 0xdaa   :  { %v1323_v27 = vsel %vm1322_vm5, %v2964_v18, %v1319_v25  ;;  %1554 = vmatpush.bf16.msra.mxu3 %v1545_v4 }
 0xdab   :  { %v1328_v28 = vsel %vm1325_vm6, %v1327_v26, %v1323_v27 }
 0xdac   :  { %v1330_v29 = vmul.f32 %v2962_v34, %v1328_v28 }
 0xdae   :  { %v1332_v30 = vpack.c.bf16 %v1330_v29, %v1330_v29 }
 0xdb0   :  { %2668 = vmatmul.msk.bf16.vlgmr.msrb.gmra.mxu1 %vm89_vm1, %v1332_v30 }
 0xdd4   :  { %v1230_v33 = vpop.f32.mrf.mxu1 }
 0xdd5   :  { %v3440_v35 = vadd.f32 %v1230_v33, %v1072_v32  ;;  %v2865_v32 = vld [vmem:[%s3728_s5 + $0x18] sm:$0xff]  ;;  %v2864_v33 = vld [vmem:[%s3728_s5 + $0x10] sm:$0xff] }
 0xdd6   :  { %1597 = vmatpush.bf16.msrb.mxu0 %v2865_v32 }
 0xdda   :  { %1598 = vmatpush.bf16.msrb.mxu0 %v2864_v33 }
 0xddc   :  { %v3452_v44 = vpop.f32.mrf.mxu1 }
 0xde7   :  { %v1448_v37 = vpop.xlane.xlu2 %1447 }
 0xde8   :  { %v1452_v1 = vsub.f32 %v1420_v7, %v1448_v37  ;;  %v2872_v37 = vld [vmem:[%s3729_s7 + $0x70] sm:$0xff] }
 0xdea   :  { %v1454_v38 = vmul.f32 1.442695, %v1452_v1  ;;  %v2871_v1 = vld [vmem:[%s3729_s7 + $0x68] sm:$0xff] }
 0xdeb   :  { %v1451_v8 = vpop.xlane.xlu1 %1450 }
 0xdec   :  { %2965 = vpow2.f32 %v1454_v38  ;;  %v1453_v58 = vsub.f32 %v1443_v13, %v1451_v8  ;;  %v2870_v38 = vld [vmem:[%s3729_s7 + $0x60] sm:$0xff] }
 0xdee   :  { %v1456_v39 = vmul.f32 1.442695, %v1453_v58  ;;  %v1073_v58 = vadd.f32 %v3437_v31, %v3425_v12  ;;  %v2868_v12 = vld [vmem:[%s3729_s7 + $0x50] sm:$0xff]  ;;  %v2867_v31 = vld [vmem:[%s3729_s7 + $0x48] sm:$0xff] }
 0xdf0   :  { %2967 = vpow2.f32 %v1456_v39  ;;  %v1236_v39 = vadd.f32 %v3452_v44, %v1073_v58  ;;  %v2903_v44 = vld [vmem:[%s3727_s6 + $0x1] ss:$0 sm:$0xff] }
 0xdf2   :  { %v2966_v40 = vpop.eup %2965 }
 0xdf3   :  { %v1458_v41 = vsel %vm89_vm1, %v2966_v40, 0.0 }
 0xdf4   :  { %1459 = vadd.xlane.f32.xlu2 %v1458_v41 }
 0xdf6   :  { %v2968_v19 = vpop.eup %2967 }
 0xdf7   :  { %v1461_v53 = vsel %vm89_vm1, %v2968_v19, 0.0 }
 0xdf8   :  { %1462 = vadd.xlane.f32.xlu0 %v1461_v53 }
 0xe0c   :  { %1517 = vrot.lane.b32.xlu0 %v3323_v15, %s3738_s24  ;;  %1496 = vrot.lane.b32.xlu2 %v3317_v10, %s3738_s24 }
 0xe2d   :  { %v1371_v45 = vpop.f32.mrf.mxu1 }
 0xe2e   :  { %v1375_v47 = vpack.c.bf16 %v1371_v45, %v1350_v61 }
 0xe30   :  { %2670 = vmatmul.msk.bf16.vlgmr.msrb.gmra.mxu2 %vm89_vm1, %v1375_v47  ;;  %v2869_v47 = vld [vmem:[%s3729_s7 + $0x58] sm:$0xff] }
 0xe35   :  { %v1373_v36 = vpop.f32.mrf.mxu1 }
 0xe67   :  { %v1460_v62 = vpop.xlane.xlu2 %1459 }
 0xe68   :  { %2969 = vrcp.f32 %v1460_v62  ;;  %v1473_v50 = vand.u32 2147483647, %v1460_v62  ;;  %v1475_v51 = vand.u32 2147483648, %v1460_v62  ;;  %vm1469_vm8 = vweird.f32 %v1460_v62 }
 0xe6a   :  { %vm1474_vm10 = vcmp.eq.f32.partialorder %v1473_v50, 8.507059e+37  ;;  %v1476_v57 = vor.u32 1.1754944e-38, %v1475_v51  ;;  %v2904_v50 = vld [vmem:[%s3730_s8 + $0x1] ss:$0 sm:$0xff] }
 0xe6b   :  { %v1463_v15 = vpop.xlane.xlu0 %1462 }
 0xe6c   :  { %2971 = vrcp.f32 %v1463_v15  ;;  %v1489_v59 = vand.u32 2147483648, %v1463_v15  ;;  %v1487_v5 = vand.u32 2147483647, %v1463_v15  ;;  %vm1483_vm12 = vweird.f32 %v1463_v15 }
 0xe6e   :  { %v2970_v23 = vpop.eup %2969  ;;  %v1490_v11 = vor.u32 1.1754944e-38, %v1489_v59  ;;  %vm1488_vm14 = vcmp.eq.f32.partialorder %v1487_v5, 8.507059e+37 }
 0xe6f   :  { %v1465_v10 = vmul.f32 %v2970_v23, %v1460_v62  ;;  %v1497_v2 = vpop.permute.xlu2 %1496  ;;  %vm1470_vm7 = vweird.f32 %v2970_v23 }
 0xe70   :  { %v1502_v3 = vsel %vm188_vm2, %v1497_v2, 0  ;;  %vm1471_vm9 = vmor %vm1469_vm8, %vm1470_vm7 }
 0xe71   :  { %v1466_v48 = vsub.f32 1.0, %v1465_v10  ;;  %1511 = vmatpush.bf16.msra.mxu1 %v1502_v3  ;;  %v2875_v3 = vld [vmem:[%s3722_s2 + $0x28] sm:$0xff] }
 0xe72   :  { %v2972_v49 = vpop.eup %2971 }
 0xe73   :  { %v1467_v52 = vmul.f32 %v2970_v23, %v1466_v48  ;;  %v1479_v34 = vmul.f32 %v2972_v49, %v1463_v15  ;;  %vm1484_vm11 = vweird.f32 %v2972_v49  ;;  %v2874_v48 = vld [vmem:[%s3722_s2 + $0x20] sm:$0xff] }
 0xe74   :  { %vm1485_vm13 = vmor %vm1483_vm12, %vm1484_vm11 }
 0xe75   :  { %v1468_v54 = vadd.f32 %v2970_v23, %v1467_v52  ;;  %v1480_v56 = vsub.f32 1.0, %v1479_v34 }
 0xe77   :  { %v1472_v60 = vsel %vm1471_vm9, %v2970_v23, %v1468_v54  ;;  %v1481_v61 = vmul.f32 %v2972_v49, %v1480_v56 }
 0xe78   :  { %v1477_v6 = vsel %vm1474_vm10, %v1476_v57, %v1472_v60 }
 0xe79   :  { %v1492_v7 = vmul.f32 %v2966_v40, %v1477_v6  ;;  %v1482_v9 = vadd.f32 %v2972_v49, %v1481_v61 }
 0xe7b   :  { %v1486_v13 = vsel %vm1485_vm13, %v2972_v49, %v1482_v9  ;;  %v1494_v14 = vpack.c.bf16 %v1492_v7, %v1492_v7 }
 0xe7c   :  { %v1491_v16 = vsel %vm1488_vm14, %v1490_v11, %v1486_v13 }
 0xe7d   :  { %v1493_v17 = vmul.f32 %v2968_v19, %v1491_v16  ;;  %2673 = vmatmul.msk.bf16.vlgmr.msra.gmra.mxu1 %vm89_vm1, %v1494_v14 }
 0xe7e   :  { %v1518_v55 = vpop.permute.xlu0 %1517 }
 0xe7f   :  { %v1523_v18 = vsel %vm188_vm2, %v1518_v55, 0  ;;  %v1495_v20 = vpack.c.bf16 %v1493_v17, %v1493_v17 }
 0xe80   :  { %1532 = vmatpush.bf16.msra.mxu2 %v1523_v18 }
 0xe83   :  { %2674 = vmatmul.msk.bf16.vlgmr.msra.gmra.mxu2 %vm89_vm1, %v1495_v20 }
 0xe84   :  { %1721 = vmatpush.bf16.msrb.mxu2 %v2875_v3 }
 0xe88   :  { %1722 = vmatpush.bf16.msrb.mxu2 %v2874_v48 }
 0xeb3   :  { %v1393_v21 = vpop.f32.mrf.mxu2 }
 0xeb4   :  { %v1398_v22 = vadd.f32 %v1393_v21, %v3440_v35  ;;  %v2873_v35 = vld [vmem:[%s3729_s7 + $0x78] sm:$0xff] }
 0xeb5   :  { %1678 = vmatpush.bf16.msrb.mxu1 %v2873_v35 }
 0xeb9   :  { %1679 = vmatpush.bf16.msrb.mxu1 %v2872_v37 }
 0xebb   :  { %v1395_v26 = vpop.f32.mrf.mxu2 }
 0xebc   :  { %v1399_v40 = vadd.f32 %v1395_v26, %v1236_v39 }
 0xebd   :  { %1680 = vmatpush.bf16.msrb.mxu1 %v2871_v1 }
 0xec1   :  { %1681 = vmatpush.bf16.msrb.mxu1 %v2870_v38 }
 0xec5   :  { %1682 = vmatpush.bf16.msrb.mxu1 %v2869_v47 }
 0xec9   :  { %1683 = vmatpush.bf16.msrb.mxu1 %v2868_v12 }
 0xecd   :  { %1684 = vmatpush.bf16.msrb.mxu1 %v2867_v31 }
 0xefa   :  { %v1513_v25 = vpop.f32.mrf.mxu1 }
 0xf02   :  { %v1515_v27 = vpop.f32.mrf.mxu1 }
 0xf06   :  { %v1534_v28 = vpop.f32.mrf.mxu2 }
 0xf07   :  { %v1538_v29 = vpack.c.bf16 %v1534_v28, %v1513_v25 }
 0xf09   :  { %2676 = vmatmul.msk.bf16.vlgmr.msra.gmra.mxu3 %vm89_vm1, %v1538_v29 }
 0xf0e   :  { %v1536_v30 = vpop.f32.mrf.mxu2 }
 0xf8c   :  { %v1556_v8 = vpop.f32.mrf.mxu3 }
 0xf8d   :  { %v1561_v41 = vadd.f32 %v1556_v8, %v1398_v22 }
 0xf8f   :  { %v1563_v42 = vadd.f32 %v1561_v41, %v3310_v63  ;;  %v2866_v63 = vld [vmem:[%s3729_s7 + $0x40] sm:$0xff] }
 0xf90   :  { %1685 = vmatpush.bf16.msrb.mxu1 %v2866_v63 }
 0xf94   :  { %v1558_v19 = vpop.f32.mrf.mxu3 }
 0xf95   :  { %v1562_v53 = vadd.f32 %v1558_v19, %v1399_v40 }
 0xf97   :  { %v1564_v43 = vadd.f32 %v1562_v53, %v3312_v0 }
 0xf99   :  { %v1565_v45 = vpack.c.bf16 %v1564_v43, %v1563_v42 }
 0xf9b   :  { %2690 = vmatmul.msk.bf16.vlgmr.msrb.gmra.mxu0 %vm59_vm0, %v1565_v45 }
0x1018   :  { %v1600_v0 = vpop.f32.mrf.mxu0 }
0x1019   :  { %v1601_v36 = vadd.f32 %v2903_v44, %v1600_v0 }
0x101b   :  { %v1605_v23 = vmax.f32 %v1601_v36, 0.0 }
0x1020   :  { %v1602_v62 = vpop.f32.mrf.mxu0 }
0x1021   :  { %v1603_v15 = vadd.f32 %v2903_v44, %v1602_v62 }
0x1023   :  { %v1606_v10 = vmax.f32 %v1603_v15, 0.0 }
0x1025   :  { %v1607_v2 = vpack.c.bf16 %v1606_v10, %v1605_v23 }
0x1027   :  { %1686 = vmatmul.bf16.vlgmr.msrb.gmra.mxu1 %v1607_v2 }
0x10a4   :  { %v1687_v49 = vpop.f32.mrf.mxu1 }
0x10a5   :  { %v1688_v51 = vadd.f32 %v2904_v50, %v1687_v49 }
0x10a7   :  { %v3513_v54 = vadd.f32 %v1688_v51, %v1563_v42 }
0x10ac   :  { %v1689_v52 = vpop.f32.mrf.mxu1 }
0x10ad   :  { %v1690_v34 = vadd.f32 %v2904_v50, %v1689_v52 }
0x10af   :  { %v3515_v56 = vadd.f32 %v1690_v34, %v1564_v43 }
0x10b1   :  { %v1694_v57 = vpack.c.bf16 %v3515_v56, %v3513_v54 }
0x10b3   :  { %2752 = vmatmul.msk.bf16.vlgmr.msrb.gmra.mxu2 %vm59_vm0, %v1694_v57 }
0x1136   :  { %v1724_v59 = vpop.f32.mrf.mxu2 }
0x1137   :  { %v1735_v60 = vpack.c.bf16 %v1724_v59, %v1724_v59 }
0x1139   :  { %v1738_v61 = vunpack.c.l.b16 %v1735_v60 }
0x113b   :  { %v3520_v5 = vpack.c.b16 %v1738_v61, %v1738_v61 }
0x113d   :  { %1904 = vrot.lane.b32.xlu2 %v3520_v5, %s3010_s27  ;;  %1740 = vrot.lane.b32.xlu1 %v3520_v5, %s3007_s25 }
0x113e   :  { %v1726_v6 = vpop.f32.mrf.mxu2 }
0x113f   :  { %v1736_v7 = vpack.c.bf16 %v1726_v6, %v1726_v6 }
0x1141   :  { %v1762_v9 = vunpack.c.l.b16 %v1736_v7 }
0x1143   :  { %v3526_v11 = vpack.c.b16 %v1762_v9, %v1762_v9 }
0x1145   :  { %1764 = vrot.lane.b32.xlu0 %v3526_v11, %s3007_s25 }
0x114d   :  { %1902 = vrot.lane.b32.xlu0 %v3520_v5, %s3009_s26 }
0x1155   :  { %1835 = vrot.lane.b32.xlu0 %v3520_v5, %s3008_s0 }
0x115d   :  { %1927 = vrot.lane.b32.xlu0 %v3526_v11, %s3010_s27 }
0x1165   :  { %1925 = vrot.lane.b32.xlu0 %v3526_v11, %s3009_s26 }
0x116d   :  { %2067 = vrot.lane.b32.xlu0 %v3520_v5, %s3013_s13 }
0x1197   :  { %v1905_v13 = vpop.permute.xlu2 %1904 }
0x1198   :  { %v1910_v14 = vsel %vm89_vm1, %v1905_v13, 0 }
0x1199   :  { %1919 = vmatpush.bf16.xpose.msra.mxu1 %v1910_v14 }
0x11af   :  { %v1741_v16 = vpop.permute.xlu1 %1740 }
0x11b0   :  { %v1746_v17 = vsel %vm89_vm1, %v1741_v16, 0 }
0x11b1   :  { %1755 = vmatpush.bf16.xpose.msrb.mxu3 %v1746_v17 }
0x11b7   :  { %v1765_v55 = vpop.permute.xlu0 %1764 }
0x11b8   :  { %v1770_v18 = vsel %vm89_vm1, %v1765_v55, 0  ;;  %2754 = vmatmul.msk.bf16.vlgmr.msrb.gmra.mxu3 %vm89_vm1, %v1735_v60 }
0x11b9   :  { %1779 = vmatpush.bf16.xpose.msra.mxu0 %v1770_v18 }
0x11bf   :  { %v1903_v20 = vpop.permute.xlu0 %1902 }
0x11c0   :  { %2755 = vmatmul.msk.bf16.vlgmr.msra.gmra.mxu0 %vm89_vm1, %v1736_v7  ;;  %2760 = vmatmul.msk.bf16.vlgmr.msra.gmra.mxu1 %vm89_vm1, %v1903_v20 }
0x11c7   :  { %v1836_v21 = vpop.permute.xlu0 %1835 }
0x11c8   :  { %v1841_v22 = vsel %vm188_vm2, %v1836_v21, 0 }
0x11c9   :  { %1850 = vmatpush.bf16.msra.mxu2 %v1841_v22 }
0x11cf   :  { %v1928_v24 = vpop.permute.xlu0 %1927 }
0x11d0   :  { %v1933_v4 = vsel %vm89_vm1, %v1928_v24, 0 }
0x11d1   :  { %1942 = vmatpush.bf16.xpose.msrb.mxu2 %v1933_v4 }
0x11d7   :  { %v3556_v1 = vpop.permute.xlu0 %1925 }
0x11df   :  { %v2068_v38 = vpop.permute.xlu0 %2067 }
0x11e0   :  { %v2073_v60 = vsel %vm89_vm1, %v2068_v38, 0 }
0x123b   :  { %v1757_v25 = vpop.f32.mrf.mxu3 }
0x123c   :  { %v1758_v26 = vadd.f32 %v3383_v46, %v1757_v25 }
0x123d   :  { %v1781_v27 = vpop.f32.mrf.mxu0  ;;  %v1921_v28 = vpop.f32.mrf.mxu1 }
0x123e   :  { %v1782_v29 = vadd.f32 %v3383_v46, %v1781_v27  ;;  %v1785_v30 = vsel %vm89_vm1, %v1758_v26, -inf  ;;  %v1922_v43 = vadd.f32 %v3383_v46, %v1921_v28 }
0x123f   :  { %1786 = vmax.xlane.f32.xlu1 %v1785_v30  ;;  %v2758_v30 = vld [vmem:[%s3725_s3 + $0x20] sm:$0xf] }
0x1240   :  { %v1788_v32 = vsel %vm89_vm1, %v1782_v29, -inf  ;;  %v1948_v45 = vsel %vm89_vm1, %v1922_v43, -inf }
0x1241   :  { %1789 = vmax.xlane.f32.xlu0 %v1788_v32  ;;  %v1884_v32 = vsel %vm188_vm2, %v2758_v30, 0 }
0x1242   :  { %1893 = vmatpush.bf16.msrb.mxu0 %v1884_v32 }
0x1243   :  { %v1759_v33 = vpop.f32.mrf.mxu3 }
0x1245   :  { %v1783_v35 = vpop.f32.mrf.mxu0  ;;  %v1923_v37 = vpop.f32.mrf.mxu1 }
0x1255   :  { %1998 = vrot.lane.b32.xlu0 %v3520_v5, %s3012_s12 }
0x1258   :  { %2065 = vrot.lane.b32.xlu1 %v3520_v5, %s3011_s30 }
0x12b2   :  { %v1787_v8 = vpop.xlane.xlu1 %1786 }
0x12b3   :  { %v1791_v58 = vsub.f32 %v1758_v26, %v1787_v8 }
0x12b4   :  { %v1790_v40 = vpop.xlane.xlu0 %1789 }
0x12b5   :  { %v1793_v39 = vmul.f32 1.442695, %v1791_v58  ;;  %v1792_v19 = vsub.f32 %v1782_v29, %v1790_v40 }
0x12b7   :  { %2973 = vpow2.f32 %v1793_v39  ;;  %v1795_v42 = vmul.f32 1.442695, %v1792_v19 }
0x12b9   :  { %2975 = vpow2.f32 %v1795_v42 }
0x12bd   :  { %v2974_v41 = vpop.eup %2973 }
0x12be   :  { %v1797_v53 = vsel %vm89_vm1, %v2974_v41, 0.0 }
0x12bf   :  { %1798 = vadd.xlane.f32.xlu2 %v1797_v53  ;;  %v2976_v47 = vpop.eup %2975 }
0x12c0   :  { %v1800_v12 = vsel %vm89_vm1, %v2976_v47, 0.0 }
0x12c7   :  { %1949 = vmax.xlane.f32.xlu2 %v1948_v45  ;;  %v1999_v6 = vpop.permute.xlu0 %1998 }
0x12c8   :  { %v2004_v14 = vsel %vm188_vm2, %v1999_v6, 0 }
0x12ca   :  { %v2066_v28 = vpop.permute.xlu1 %2065 }
0x12cf   :  { %1801 = vadd.xlane.f32.xlu2 %v1800_v12 }
0x12e7   :  { %1856 = vrot.lane.b32.xlu2 %v3526_v11, %s3008_s0  ;;  %s3739_s0 = smov 104  }
0x12ef   :  { %2090 = vrot.lane.b32.xlu2 %v3526_v11, %s3013_s13 }
0x12f7   :  { %2088 = vrot.lane.b32.xlu2 %v3526_v11, %s3011_s30 }
0x1332   :  { %v1799_v31 = vpop.xlane.xlu2 %1798 }
0x1333   :  { %2977 = vrcp.f32 %v1799_v31  ;;  %v1814_v15 = vand.u32 2147483648, %v1799_v31  ;;  %v1812_v2 = vand.u32 2147483647, %v1799_v31  ;;  %vm1808_vm3 = vweird.f32 %v1799_v31 }
0x1335   :  { %v1815_v48 = vor.u32 1.1754944e-38, %v1814_v15  ;;  %vm1813_vm5 = vcmp.eq.f32.partialorder %v1812_v2, 8.507059e+37 }
0x1339   :  { %v2978_v63 = vpop.eup %2977 }
0x133a   :  { %v1804_v0 = vmul.f32 %v2978_v63, %v1799_v31  ;;  %v1950_v44 = vpop.xlane.xlu2 %1949  ;;  %vm1809_vm15 = vweird.f32 %v2978_v63 }
0x133b   :  { %v1954_v36 = vsub.f32 %v1922_v43, %v1950_v44  ;;  %vm1810_vm4 = vmor %vm1808_vm3, %vm1809_vm15 }
0x133c   :  { %v1805_v62 = vsub.f32 1.0, %v1804_v0 }
0x133d   :  { %v1956_v23 = vmul.f32 1.442695, %v1954_v36 }
0x133e   :  { %v1806_v10 = vmul.f32 %v2978_v63, %v1805_v62 }
0x133f   :  { %2979 = vpow2.f32 %v1956_v23 }
0x1340   :  { %v1807_v3 = vadd.f32 %v2978_v63, %v1806_v10 }
0x1342   :  { %v1811_v49 = vsel %vm1810_vm4, %v2978_v63, %v1807_v3  ;;  %v1802_v50 = vpop.xlane.xlu2 %1801 }
0x1343   :  { %v1816_v51 = vsel %vm1813_vm5, %v1815_v48, %v1811_v49  ;;  %2981 = vrcp.f32 %v1802_v50  ;;  %v1828_v17 = vand.u32 2147483648, %v1802_v50  ;;  %v1826_v18 = vand.u32 2147483647, %v1802_v50 }
0x1344   :  { %v1831_v52 = vmul.f32 %v2974_v41, %v1816_v51  ;;  %vm1822_vm7 = vweird.f32 %v1802_v50 }
0x1345   :  { %v2980_v34 = vpop.eup %2979  ;;  %v1829_v21 = vor.u32 1.1754944e-38, %v1828_v17  ;;  %vm1827_vm9 = vcmp.eq.f32.partialorder %v1826_v18, 8.507059e+37 }
0x1346   :  { %v1833_v57 = vpack.c.bf16 %v1831_v52, %v1831_v52  ;;  %v1960_v59 = vsel %vm89_vm1, %v2980_v34, 0.0 }
0x1347   :  { %1961 = vadd.xlane.f32.xlu1 %v1960_v59 }
0x1348   :  { %2756 = vmatmul.msk.bf16.vlgmr.msra.gmra.mxu2 %vm89_vm1, %v1833_v57 }
0x1349   :  { %v2982_v61 = vpop.eup %2981  ;;  %2082 = vmatpush.bf16.xpose.msra.mxu2 %v2073_v60 }
0x134a   :  { %v1818_v7 = vmul.f32 %v2982_v61, %v1802_v50  ;;  %v1857_v9 = vpop.permute.xlu2 %1856  ;;  %vm1823_vm6 = vweird.f32 %v2982_v61 }
0x134b   :  { %v1862_v13 = vsel %vm188_vm2, %v1857_v9, 0  ;;  %vm1824_vm8 = vmor %vm1822_vm7, %vm1823_vm6 }
0x134c   :  { %v1819_v16 = vsub.f32 1.0, %v1818_v7  ;;  %1871 = vmatpush.bf16.msra.mxu3 %v1862_v13 }
0x134e   :  { %v1820_v55 = vmul.f32 %v2982_v61, %v1819_v16 }
0x1350   :  { %2013 = vmatpush.bf16.msrb.mxu3 %v2004_v14  ;;  %v1821_v20 = vadd.f32 %v2982_v61, %v1820_v55 }
0x1352   :  { %v1825_v22 = vsel %vm1824_vm8, %v2982_v61, %v1821_v20  ;;  %v2091_v25 = vpop.permute.xlu2 %2090 }
0x1353   :  { %v1830_v24 = vsel %vm1827_vm9, %v1829_v21, %v1825_v22  ;;  %v2096_v27 = vsel %vm89_vm1, %v2091_v25, 0  ;;  %v2764_v21 = vld [vmem:[%s3725_s3 + $0x24] sm:$0xf] }
0x1354   :  { %v1832_v4 = vmul.f32 %v2976_v47, %v1830_v24  ;;  %v2047_v24 = vsel %vm188_vm2, %v2764_v21, 0 }
0x1355   :  { %2056 = vmatpush.bf16.msrb.mxu1 %v2047_v24 }
0x1356   :  { %v1834_v26 = vpack.c.bf16 %v1832_v4, %v1832_v4 }
0x1358   :  { %2757 = vmatmul.msk.bf16.vlgmr.msra.gmra.mxu3 %vm89_vm1, %v1834_v26  ;;  %2761 = vmatmul.msk.bf16.vlgmr.msrb.gmra.mxu2 %vm89_vm1, %v3556_v1 }
0x1359   :  { %2105 = vmatpush.bf16.xpose.msra.mxu3 %v2096_v27 }
0x135a   :  { %v2089_v0 = vpop.permute.xlu2 %2088 }
0x1368   :  { %2766 = vmatmul.msk.bf16.vlgmr.msra.gmra.mxu2 %vm89_vm1, %v2066_v28 }
0x13ba   :  { %v1962_v29 = vpop.xlane.xlu1 %1961 }
0x13bb   :  { %2983 = vrcp.f32 %v1962_v29  ;;  %v1977_v38 = vand.u32 2147483648, %v1962_v29  ;;  %v1975_v1 = vand.u32 2147483647, %v1962_v29  ;;  %vm1971_vm11 = vweird.f32 %v1962_v29 }
0x13bd   :  { %v1978_v39 = vor.u32 1.1754944e-38, %v1977_v38  ;;  %vm1976_vm13 = vcmp.eq.f32.partialorder %v1975_v1, 8.507059e+37 }
0x13c1   :  { %v2984_v33 = vpop.eup %2983 }
0x13c2   :  { %v1967_v35 = vmul.f32 %v2984_v33, %v1962_v29  ;;  %vm1972_vm10 = vweird.f32 %v2984_v33 }
0x13c3   :  { %vm1973_vm12 = vmor %vm1971_vm11, %vm1972_vm10 }
0x13c4   :  { %v1968_v37 = vsub.f32 1.0, %v1967_v35 }
0x13c6   :  { %v1969_v8 = vmul.f32 %v2984_v33, %v1968_v37 }
0x13c8   :  { %v1970_v58 = vadd.f32 %v2984_v33, %v1969_v8 }
0x13ca   :  { %v1974_v40 = vsel %vm1973_vm12, %v2984_v33, %v1970_v58 }
0x13cb   :  { %v1979_v41 = vsel %vm1976_vm13, %v1978_v39, %v1974_v40  ;;  %v1852_v19 = vpop.f32.mrf.mxu2 }
0x13cc   :  { %v1994_v53 = vmul.f32 %v2980_v34, %v1979_v41 }
0x13ce   :  { %v1996_v42 = vpack.c.bf16 %v1994_v53, %v1994_v53 }
0x13d0   :  { %2762 = vmatmul.msk.bf16.vlgmr.msrb.gmra.mxu3 %vm89_vm1, %v1996_v42 }
0x13d3   :  { %v1854_v43 = vpop.f32.mrf.mxu2 }
0x13db   :  { %v1873_v45 = vpop.f32.mrf.mxu3  ;;  %v1944_v47 = vpop.f32.mrf.mxu2 }
0x13dc   :  { %v1877_v12 = vpack.c.bf16 %v1873_v45, %v1852_v19  ;;  %v1945_v31 = vadd.f32 %v3383_v46, %v1944_v47 }
0x13de   :  { %2759 = vmatmul.msk.bf16.vlgmr.msrb.gmra.mxu0 %vm89_vm1, %v1877_v12  ;;  %v1951_v63 = vsel %vm89_vm1, %v1945_v31, -inf }
0x13df   :  { %1952 = vmax.xlane.f32.xlu0 %v1951_v63 }
0x13e0   :  { %2767 = vmatmul.msk.bf16.vlgmr.msra.gmra.mxu3 %vm89_vm1, %v2089_v0 }
0x13e3   :  { %v1875_v44 = vpop.f32.mrf.mxu3  ;;  %v1946_v36 = vpop.f32.mrf.mxu2 }
0x13eb   :  { %v2084_v62 = vpop.f32.mrf.mxu2 }
0x13ec   :  { %v2085_v15 = vadd.f32 %v3383_v46, %v2084_v62 }
0x13ee   :  { %v2111_v23 = vsel %vm89_vm1, %v2085_v15, -inf }
0x13ef   :  { %2112 = vmax.xlane.f32.xlu2 %v2111_v23 }
0x13f3   :  { %v2086_v10 = vpop.f32.mrf.mxu2 }
0x1407   :  { %2230 = vrot.lane.b32.xlu2 %v3520_v5, %s3014_s14 }
0x1452   :  { %v1953_v2 = vpop.xlane.xlu0 %1952 }
0x1453   :  { %v1955_v3 = vsub.f32 %v1945_v31, %v1953_v2  ;;  %v3591_v48 = vpop.f32.mrf.mxu3 }
0x1455   :  { %v1958_v49 = vmul.f32 1.442695, %v1955_v3 }
0x1457   :  { %2985 = vpow2.f32 %v1958_v49 }
0x145b   :  { %v2017_v50 = vpop.f32.mrf.mxu3  ;;  %v1895_v3 = vpop.f32.mrf.mxu0 }
0x145d   :  { %v2986_v51 = vpop.eup %2985 }
0x145e   :  { %v1963_v52 = vsel %vm89_vm1, %v2986_v51, 0.0 }
0x145f   :  { %1964 = vadd.xlane.f32.xlu1 %v1963_v52 }
0x1462   :  { %v2113_v34 = vpop.xlane.xlu2 %2112 }
0x1463   :  { %v2117_v57 = vsub.f32 %v2085_v15, %v2113_v34  ;;  %v2107_v59 = vpop.f32.mrf.mxu3  ;;  %v3623_v49 = vpop.f32.mrf.mxu0 }
0x1464   :  { %v2108_v14 = vadd.f32 %v3383_v46, %v2107_v59  ;;  %v3006_v59 = vld [vmem:[%s3724_s1] sm:$0xff] }
0x1465   :  { %v2119_v60 = vmul.f32 1.442695, %v2117_v57 }
0x1466   :  { %v2114_v16 = vsel %vm89_vm1, %v2108_v14, -inf }
0x1467   :  { %2987 = vpow2.f32 %v2119_v60 }
0x146a   :  { %v2231_v61 = vpop.permute.xlu2 %2230 }
0x146b   :  { %v2236_v6 = vsel %vm89_vm1, %v2231_v61, 0  ;;  %v2109_v7 = vpop.f32.mrf.mxu3 }
0x146c   :  { %2245 = vmatpush.bf16.xpose.msrb.mxu3 %v2236_v6 }
0x146d   :  { %v2988_v9 = vpop.eup %2987 }
0x146e   :  { %v2123_v13 = vsel %vm89_vm1, %v2988_v9, 0.0 }
0x146f   :  { %2124 = vadd.xlane.f32.xlu0 %v2123_v13 }
0x1478   :  { %2019 = vrot.lane.b32.xlu1 %v3526_v11, %s3012_s12 }
0x1480   :  { %2161 = vrot.lane.b32.xlu1 %v3520_v5, %s3015_s15 }
0x1483   :  { %2253 = vrot.lane.b32.xlu0 %v3526_v11, %s3014_s14 }
0x1488   :  { %2228 = vrot.lane.b32.xlu1 %v3520_v5, %s3739_s0 }
0x148b   :  { %2182 = vrot.lane.b32.xlu0 %v3526_v11, %s3015_s15 }
0x1490   :  { %2251 = vrot.lane.b32.xlu1 %v3526_v11, %s3739_s0 }
0x14ba   :  { %2115 = vmax.xlane.f32.xlu1 %v2114_v16 }
0x14d2   :  { %v1965_v17 = vpop.xlane.xlu1 %1964 }
0x14d3   :  { %2989 = vrcp.f32 %v1965_v17  ;;  %v1991_v25 = vand.u32 2147483648, %v1965_v17  ;;  %vm1985_vm15 = vweird.f32 %v1965_v17  ;;  %v1989_v46 = vand.u32 2147483647, %v1965_v17 }
0x14d5   :  { %v1992_v28 = vor.u32 1.1754944e-38, %v1991_v25  ;;  %vm1990_vm4 = vcmp.eq.f32.partialorder %v1989_v46, 8.507059e+37 }
0x14d9   :  { %v2990_v55 = vpop.eup %2989 }
0x14da   :  { %v1981_v18 = vmul.f32 %v2990_v55, %v1965_v17  ;;  %vm1986_vm14 = vweird.f32 %v2990_v55 }
0x14db   :  { %vm1987_vm3 = vmor %vm1985_vm15, %vm1986_vm14 }
0x14dc   :  { %v1982_v20 = vsub.f32 1.0, %v1981_v18 }
0x14de   :  { %v1983_v22 = vmul.f32 %v2990_v55, %v1982_v20 }
0x14e0   :  { %v1984_v4 = vadd.f32 %v2990_v55, %v1983_v22 }
0x14e2   :  { %v2125_v26 = vpop.xlane.xlu0 %2124  ;;  %v1988_v27 = vsel %vm1987_vm3, %v2990_v55, %v1984_v4 }
0x14e3   :  { %2991 = vrcp.f32 %v2125_v26  ;;  %v1993_v29 = vsel %vm1990_vm4, %v1992_v28, %v1988_v27  ;;  %v2140_v39 = vand.u32 2147483648, %v2125_v26  ;;  %vm2134_vm6 = vweird.f32 %v2125_v26 }
0x14e4   :  { %v1995_v32 = vmul.f32 %v2986_v51, %v1993_v29  ;;  %v2138_v40 = vand.u32 2147483647, %v2125_v26 }
0x14e5   :  { %v2141_v42 = vor.u32 1.1754944e-38, %v2140_v39 }
0x14e6   :  { %v1997_v8 = vpack.c.bf16 %v1995_v32, %v1995_v32  ;;  %vm2139_vm8 = vcmp.eq.f32.partialorder %v2138_v40, 8.507059e+37 }
0x14e9   :  { %v2992_v30 = vpop.eup %2991 }
0x14ea   :  { %v2130_v33 = vmul.f32 %v2992_v30, %v2125_v26  ;;  %v2020_v35 = vpop.permute.xlu1 %2019  ;;  %vm2135_vm5 = vweird.f32 %v2992_v30 }
0x14eb   :  { %v2025_v37 = vsel %vm188_vm2, %v2020_v35, 0  ;;  %vm2136_vm7 = vmor %vm2134_vm6, %vm2135_vm5 }
0x14ec   :  { %v2131_v38 = vsub.f32 1.0, %v2130_v33  ;;  %2034 = vmatpush.bf16.msra.mxu0 %v2025_v37 }
0x14ee   :  { %v2132_v1 = vmul.f32 %v2992_v30, %v2131_v38 }
0x14ef   :  { %2763 = vmatmul.msk.bf16.vlgmr.msra.gmra.mxu0 %vm89_vm1, %v1997_v8 }
0x14f0   :  { %v2133_v58 = vadd.f32 %v2992_v30, %v2132_v1 }
0x14f2   :  { %v2162_v41 = vpop.permute.xlu1 %2161  ;;  %v2137_v19 = vsel %vm2136_vm7, %v2992_v30, %v2133_v58 }
0x14f3   :  { %v2167_v53 = vsel %vm188_vm2, %v2162_v41, 0  ;;  %v2142_v45 = vsel %vm2139_vm8, %v2141_v42, %v2137_v19 }
0x14f4   :  { %2176 = vmatpush.bf16.msrb.mxu0 %v2167_v53  ;;  %v2157_v12 = vmul.f32 %v2988_v9, %v2142_v45  ;;  %v2770_v53 = vld [vmem:[%s3725_s3 + $0x28] sm:$0xf] }
0x14f5   :  { %v2254_v43 = vpop.permute.xlu0 %2253  ;;  %v2210_v42 = vsel %vm188_vm2, %v2770_v53, 0  ;;  %v2881_v53 = vld [vmem:[%s3729_s7 + $0x98] sm:$0xff] }
0x14f6   :  { %v2259_v47 = vsel %vm89_vm1, %v2254_v43, 0  ;;  %v2159_v63 = vpack.c.bf16 %v2157_v12, %v2157_v12  ;;  %2219 = vmatpush.bf16.msrb.mxu2 %v2210_v42  ;;  %v2906_v42 = vld [vmem:[%s3727_s6 + $0x2] ss:$0 sm:$0xff] }
0x14f8   :  { %2268 = vmatpush.bf16.xpose.msra.mxu0 %v2259_v47 }
0x14fa   :  { %v2229_v31 = vpop.permute.xlu1 %2228 }
0x14fb   :  { %2772 = vmatmul.msk.bf16.vlgmr.msrb.gmra.mxu3 %vm89_vm1, %v2229_v31 }
0x14fd   :  { %v2183_v0 = vpop.permute.xlu0 %2182 }
0x14fe   :  { %v2188_v44 = vsel %vm188_vm2, %v2183_v0, 0 }
0x14ff   :  { %2768 = vmatmul.msk.bf16.vlgmr.msrb.gmra.mxu0 %vm89_vm1, %v2159_v63  ;;  %2197 = vmatpush.bf16.msra.mxu1 %v2188_v44 }
0x1502   :  { %v2252_v36 = vpop.permute.xlu1 %2251 }
0x150f   :  { %2773 = vmatmul.msk.bf16.vlgmr.msra.gmra.mxu0 %vm89_vm1, %v2252_v36 }
0x152d   :  { %v2116_v62 = vpop.xlane.xlu1 %2115 }
0x152e   :  { %v2118_v15 = vsub.f32 %v2108_v14, %v2116_v62 }
0x1530   :  { %v2121_v23 = vmul.f32 1.442695, %v2118_v15 }
0x1532   :  { %2993 = vpow2.f32 %v2121_v23 }
0x1538   :  { %v2994_v10 = vpop.eup %2993 }
0x1539   :  { %v2126_v2 = vsel %vm89_vm1, %v2994_v10, 0.0 }
0x153a   :  { %2127 = vadd.xlane.f32.xlu2 %v2126_v2 }
0x156c   :  { %v2036_v50 = vpop.f32.mrf.mxu0 }
0x156d   :  { %v2040_v51 = vpack.c.bf16 %v2036_v50, %v3591_v48 }
0x156f   :  { %2765 = vmatmul.msk.bf16.vlgmr.msrb.gmra.mxu1 %vm89_vm1, %v2040_v51 }
0x1574   :  { %v2038_v52 = vpop.f32.mrf.mxu0 }
0x157c   :  { %v2178_v34 = vpop.f32.mrf.mxu0 }
0x157e   :  { %v2247_v57 = vpop.f32.mrf.mxu3 }
0x157f   :  { %v2248_v60 = vadd.f32 %v3006_v59, %v2247_v57 }
0x1581   :  { %v2274_v61 = vsel %vm89_vm1, %v2248_v60, -inf }
0x1582   :  { %2275 = vmax.xlane.f32.xlu1 %v2274_v61 }
0x1584   :  { %v2180_v6 = vpop.f32.mrf.mxu0 }
0x1586   :  { %v2249_v7 = vpop.f32.mrf.mxu3 }
0x158c   :  { %v2270_v9 = vpop.f32.mrf.mxu0 }
0x158d   :  { %v2271_v13 = vadd.f32 %v3006_v59, %v2270_v9 }
0x158f   :  { %v2277_v14 = vsel %vm89_vm1, %v2271_v13, -inf }
0x1590   :  { %2278 = vmax.xlane.f32.xlu0 %v2277_v14 }
0x1594   :  { %v2272_v48 = vpop.f32.mrf.mxu0 }
0x15a4   :  { %2324 = vrot.lane.b32.xlu0 %v3520_v5, %s3738_s24  ;;  %v3638_v5 = vld [vmem:[%s3726_s4 + $0x2] ss:$0 sm:$0xff] }
0x15a5   :  { %v1900_v28 = vadd.f32 %v3638_v5, %v1895_v3 }
0x15ad   :  { %v2128_v16 = vpop.xlane.xlu2 %2127 }
0x15ae   :  { %2995 = vrcp.f32 %v2128_v16  ;;  %v2154_v20 = vand.u32 2147483648, %v2128_v16  ;;  %v2152_v22 = vand.u32 2147483647, %v2128_v16  ;;  %vm2148_vm10 = vweird.f32 %v2128_v16 }
0x15b0   :  { %v2155_v4 = vor.u32 1.1754944e-38, %v2154_v20  ;;  %vm2153_vm12 = vcmp.eq.f32.partialorder %v2152_v22, 8.507059e+37  ;;  %v2776_v20 = vld [vmem:[%s3725_s3 + $0x2c] sm:$0xf] }
0x15b4   :  { %v2996_v17 = vpop.eup %2995 }
0x15b5   :  { %v2144_v55 = vmul.f32 %v2996_v17, %v2128_v16  ;;  %vm2149_vm9 = vweird.f32 %v2996_v17 }
0x15b6   :  { %vm2150_vm11 = vmor %vm2148_vm10, %vm2149_vm9 }
0x15b7   :  { %v2145_v18 = vsub.f32 1.0, %v2144_v55 }
0x15b9   :  { %v2146_v21 = vmul.f32 %v2996_v17, %v2145_v18 }
0x15bb   :  { %v2147_v24 = vadd.f32 %v2996_v17, %v2146_v21  ;;  %v2373_v21 = vsel %vm188_vm2, %v2776_v20, 0 }
0x15bc   :  { %2382 = vmatpush.bf16.msra.mxu3 %v2373_v21 }
0x15bd   :  { %v2151_v25 = vsel %vm2150_vm11, %v2996_v17, %v2147_v24 }
0x15be   :  { %v2156_v46 = vsel %vm2153_vm12, %v2155_v4, %v2151_v25 }
0x15bf   :  { %v2158_v26 = vmul.f32 %v2994_v10, %v2156_v46 }
0x15c1   :  { %v2160_v27 = vpack.c.bf16 %v2158_v26, %v2158_v26 }
0x15c3   :  { %2769 = vmatmul.msk.bf16.vlgmr.msra.gmra.mxu1 %vm89_vm1, %v2160_v27  ;;  %v2877_v27 = vld [vmem:[%s3728_s5 + $0x28] sm:$0xff] }
0x15c4   :  { %2425 = vmatpush.bf16.msrb.mxu0 %v2877_v27 }
0x15ec   :  { %v2058_v29 = vpop.f32.mrf.mxu1 }
0x15ed   :  { %v3641_v30 = vadd.f32 %v2058_v29, %v1900_v28  ;;  %v2876_v28 = vld [vmem:[%s3728_s5 + $0x20] sm:$0xff]  ;;  %v2885_v29 = vld [vmem:[%s3729_s7 + $0xb8] sm:$0xff] }
0x15ee   :  { %2426 = vmatpush.bf16.msrb.mxu0 %v2876_v28 }
0x15f4   :  { %v3652_v43 = vpop.f32.mrf.mxu1 }
0x15f5   :  { %v2276_v32 = vpop.xlane.xlu1 %2275 }
0x15f6   :  { %v2280_v33 = vsub.f32 %v2248_v60, %v2276_v32  ;;  %v2883_v32 = vld [vmem:[%s3729_s7 + $0xa8] sm:$0xff] }
0x15f8   :  { %v2282_v35 = vmul.f32 1.442695, %v2280_v33  ;;  %v2882_v33 = vld [vmem:[%s3729_s7 + $0xa0] sm:$0xff] }
0x15fa   :  { %2997 = vpow2.f32 %v2282_v35 }
0x1600   :  { %v2998_v37 = vpop.eup %2997 }
0x1601   :  { %v2286_v38 = vsel %vm89_vm1, %v2998_v37, 0.0 }
0x1602   :  { %2287 = vadd.xlane.f32.xlu1 %v2286_v38 }
0x1603   :  { %v2279_v8 = vpop.xlane.xlu0 %2278 }
0x1604   :  { %v2281_v1 = vsub.f32 %v2271_v13, %v2279_v8 }
0x1606   :  { %v2284_v58 = vmul.f32 1.442695, %v2281_v1 }
0x1608   :  { %2999 = vpow2.f32 %v2284_v58 }
0x160e   :  { %v3000_v39 = vpop.eup %2999 }
0x160f   :  { %v2289_v40 = vsel %vm89_vm1, %v3000_v39, 0.0 }
0x1610   :  { %2290 = vadd.xlane.f32.xlu2 %v2289_v40 }
0x1616   :  { %v2325_v41 = vpop.permute.xlu0 %2324 }
0x1617   :  { %v2330_v19 = vsel %vm188_vm2, %v2325_v41, 0 }
0x1618   :  { %2339 = vmatpush.bf16.msrb.mxu1 %v2330_v19 }
0x161c   :  { %2506 = vmatpush.bf16.msra.mxu1 %v2885_v29 }
0x1628   :  { %2345 = vrot.lane.b32.xlu2 %v3526_v11, %s3738_s24 }
0x1640   :  { %v2199_v45 = vpop.f32.mrf.mxu1 }
0x1641   :  { %v2203_v47 = vpack.c.bf16 %v2199_v45, %v2178_v34 }
0x1643   :  { %2771 = vmatmul.msk.bf16.vlgmr.msrb.gmra.mxu2 %vm89_vm1, %v2203_v47 }
0x1648   :  { %v2201_v12 = vpop.f32.mrf.mxu1 }
0x1675   :  { %v2288_v31 = vpop.xlane.xlu1 %2287 }
0x1676   :  { %3001 = vrcp.f32 %v2288_v31  ;;  %v2303_v36 = vand.u32 2147483648, %v2288_v31  ;;  %v2301_v15 = vand.u32 2147483647, %v2288_v31  ;;  %vm2297_vm14 = vweird.f32 %v2288_v31 }
0x1678   :  { %v2304_v11 = vor.u32 1.1754944e-38, %v2303_v36  ;;  %vm2302_vm3 = vcmp.eq.f32.partialorder %v2301_v15, 8.507059e+37 }
0x167c   :  { %v3002_v63 = vpop.eup %3001 }
0x167d   :  { %v2293_v0 = vmul.f32 %v3002_v63, %v2288_v31  ;;  %vm2298_vm13 = vweird.f32 %v3002_v63 }
0x167e   :  { %vm2299_vm15 = vmor %vm2297_vm14, %vm2298_vm13 }
0x167f   :  { %v2294_v44 = vsub.f32 1.0, %v2293_v0  ;;  %v2887_v0 = vld [vmem:[%s3732_s9 + $0x8] sm:$0xff] }
0x1681   :  { %v2295_v62 = vmul.f32 %v3002_v63, %v2294_v44  ;;  %v2886_v44 = vld [vmem:[%s3732_s9] sm:$0xff] }
0x1683   :  { %v2296_v23 = vadd.f32 %v3002_v63, %v2295_v62  ;;  %v2291_v10 = vpop.xlane.xlu2 %2290  ;;  %v2907_v62 = vld [vmem:[%s3730_s8 + $0x2] ss:$0 sm:$0xff] }
0x1684   :  { %3003 = vrcp.f32 %v2291_v10  ;;  %v2317_v61 = vand.u32 2147483648, %v2291_v10  ;;  %v2315_v7 = vand.u32 2147483647, %v2291_v10  ;;  %vm2311_vm5 = vweird.f32 %v2291_v10 }
0x1685   :  { %v2300_v2 = vsel %vm2299_vm15, %v3002_v63, %v2296_v23 }
0x1686   :  { %v2305_v3 = vsel %vm2302_vm3, %v2304_v11, %v2300_v2  ;;  %v2318_v13 = vor.u32 1.1754944e-38, %v2317_v61  ;;  %vm2316_vm7 = vcmp.eq.f32.partialorder %v2315_v7, 8.507059e+37 }
0x1687   :  { %v2320_v50 = vmul.f32 %v2998_v37, %v2305_v3  ;;  %v1901_v37 = vadd.f32 %v3638_v5, %v3623_v49  ;;  %v2880_v49 = vld [vmem:[%s3729_s7 + $0x90] sm:$0xff]  ;;  %v2879_v5 = vld [vmem:[%s3729_s7 + $0x88] sm:$0xff] }
0x1689   :  { %v2322_v51 = vpack.c.bf16 %v2320_v50, %v2320_v50  ;;  %v2064_v38 = vadd.f32 %v3652_v43, %v1901_v37  ;;  %v2908_v50 = vld [vmem:[%s3731_s10] ss:$0 sm:$0xff] }
0x168a   :  { %v3004_v52 = vpop.eup %3003 }
0x168b   :  { %v2307_v34 = vmul.f32 %v3004_v52, %v2291_v10  ;;  %v2346_v57 = vpop.permute.xlu2 %2345  ;;  %2774 = vmatmul.msk.bf16.vlgmr.msrb.gmra.mxu1 %vm89_vm1, %v2322_v51  ;;  %vm2312_vm4 = vweird.f32 %v3004_v52 }
0x168c   :  { %v2351_v59 = vsel %vm188_vm2, %v2346_v57, 0  ;;  %vm2313_vm6 = vmor %vm2311_vm5, %vm2312_vm4 }
0x168d   :  { %v2308_v60 = vsub.f32 1.0, %v2307_v34  ;;  %2360 = vmatpush.bf16.msra.mxu2 %v2351_v59 }
0x168f   :  { %v2309_v6 = vmul.f32 %v3004_v52, %v2308_v60 }
0x1691   :  { %v2310_v9 = vadd.f32 %v3004_v52, %v2309_v6  ;;  %2552 = vmatpush.bf16.msrb.mxu2 %v2887_v0 }
0x1693   :  { %v2314_v14 = vsel %vm2313_vm6, %v3004_v52, %v2310_v9 }
0x1694   :  { %v2319_v48 = vsel %vm2316_vm7, %v2318_v13, %v2314_v14 }
0x1695   :  { %v2321_v16 = vmul.f32 %v3000_v39, %v2319_v48  ;;  %2553 = vmatpush.bf16.msrb.mxu2 %v2886_v44 }
0x1697   :  { %v2323_v17 = vpack.c.bf16 %v2321_v16, %v2321_v16 }
0x1699   :  { %2775 = vmatmul.msk.bf16.vlgmr.msra.gmra.mxu2 %vm89_vm1, %v2323_v17 }
0x16c6   :  { %v2221_v55 = vpop.f32.mrf.mxu2 }
0x16c7   :  { %v2226_v18 = vadd.f32 %v2221_v55, %v3641_v30  ;;  %v2884_v30 = vld [vmem:[%s3729_s7 + $0xb0] sm:$0xff] }
0x16c8   :  { %2507 = vmatpush.bf16.msra.mxu1 %v2884_v30 }
0x16cc   :  { %2508 = vmatpush.bf16.msra.mxu1 %v2883_v32 }
0x16ce   :  { %v2223_v4 = vpop.f32.mrf.mxu2 }
0x16cf   :  { %v2227_v8 = vadd.f32 %v2223_v4, %v2064_v38 }
0x16d0   :  { %2509 = vmatpush.bf16.msra.mxu1 %v2882_v33 }
0x16d4   :  { %2510 = vmatpush.bf16.msra.mxu1 %v2881_v53 }
0x16d8   :  { %2511 = vmatpush.bf16.msra.mxu1 %v2880_v49 }
0x16dc   :  { %2512 = vmatpush.bf16.msra.mxu1 %v2879_v5 }
0x1708   :  { %v2341_v22 = vpop.f32.mrf.mxu1 }
0x1710   :  { %v2343_v24 = vpop.f32.mrf.mxu1 }
0x171c   :  { %v2362_v25 = vpop.f32.mrf.mxu2 }
0x171d   :  { %v2366_v46 = vpack.c.bf16 %v2362_v25, %v2341_v22 }
0x171f   :  { %2777 = vmatmul.msk.bf16.vlgmr.msra.gmra.mxu3 %vm89_vm1, %v2366_v46 }
0x1724   :  { %v2364_v26 = vpop.f32.mrf.mxu2 }
0x17a2   :  { %v2384_v35 = vpop.f32.mrf.mxu3 }
0x17a3   :  { %v2389_v1 = vadd.f32 %v2384_v35, %v2226_v18 }
0x17a5   :  { %v2391_v40 = vadd.f32 %v2389_v1, %v3513_v54  ;;  %v2878_v54 = vld [vmem:[%s3729_s7 + $0x80] sm:$0xff] }
0x17a6   :  { %2513 = vmatpush.bf16.msra.mxu1 %v2878_v54 }
0x17aa   :  { %v2386_v58 = vpop.f32.mrf.mxu3 }
0x17ab   :  { %v2390_v39 = vadd.f32 %v2386_v58, %v2227_v8 }
0x17ad   :  { %v2392_v41 = vadd.f32 %v2390_v39, %v3515_v56 }
0x17af   :  { %v2393_v19 = vpack.c.bf16 %v2392_v41, %v2391_v40 }
0x17b1   :  { %2791 = vmatmul.msk.bf16.vlgmr.msrb.gmra.mxu0 %vm59_vm0, %v2393_v19 }
0x182e   :  { %v2428_v56 = vpop.f32.mrf.mxu0 }
0x182f   :  { %v2429_v43 = vadd.f32 %v2906_v42, %v2428_v56 }
0x1831   :  { %v2433_v12 = vmax.f32 %v2429_v43, 0.0 }
0x1836   :  { %v2430_v45 = vpop.f32.mrf.mxu0 }
0x1837   :  { %v2431_v47 = vadd.f32 %v2906_v42, %v2430_v45 }
0x1839   :  { %v2434_v31 = vmax.f32 %v2431_v47, 0.0 }
0x183b   :  { %v2435_v63 = vpack.c.bf16 %v2434_v31, %v2433_v12 }
0x183d   :  { %2514 = vmatmul.bf16.vlgmr.msra.gmra.mxu1 %v2435_v63 }
0x18ba   :  { %v2515_v36 = vpop.f32.mrf.mxu1 }
0x18bb   :  { %v2516_v15 = vadd.f32 %v2907_v62, %v2515_v36 }
0x18bd   :  { %v2520_v11 = vadd.f32 %v2516_v15, %v2391_v40 }
0x18c2   :  { %v2517_v23 = vpop.f32.mrf.mxu1 }
0x18c3   :  { %v2518_v10 = vadd.f32 %v2907_v62, %v2517_v23 }
0x18c5   :  { %v2521_v2 = vadd.f32 %v2518_v10, %v2392_v41 }
0x18c7   :  { %v2522_v3 = vpack.c.bf16 %v2521_v2, %v2520_v11 }
0x18c9   :  { %2849 = vmatmul.msk.bf16.vlgmr.msrb.gmra.mxu2 %vm59_vm0, %v2522_v3 }
0x194c   :  { %v2555_v51 = vpop.f32.mrf.mxu2 }
0x194d   :  { %v2556_v52 = vadd.f32 %v2908_v50, %v2555_v51 }
0x194f   :  { %2560 = vst [vmem:[%s3733_s11] sm:$0xff] %v2556_v52 }
0x1954   :  { %v2557_v34 = vpop.f32.mrf.mxu2 }
0x1955   :  { %v2558_v57 = vadd.f32 %v2908_v50, %v2557_v34 }
0x1957   :  { %2561 = vst [vmem:[%s3733_s11 + $0x8] sm:$0xff] %v2558_v57 }

</bundles_post_ra>
